<compile_context>
chip_gen: v5e
topology: v5e:2x2
jax: 0.10.0
libtpu: 0.0.40
codegen_flags: <defaults>
</compile_context>

<pallas_src>
import functools
import math

import jax
import jax.numpy as jnp
from jax.experimental import pallas as pl
from jax.experimental.pallas import tpu as pltpu

CFG = dict(
    dim_model=32,      # D
    dim_ff=64,         # FFN hidden
    dim_final_fc=32,   # prediction head hidden
    num_head=2,        # H (d_k = 16)
    num_block=1,       # blocks_1 has 1 layer, blocks_2 has 2 layers
    num_question=50,
    num_concept=20,
    separate_qa=False,
)
BATCH, SEQ_LEN = 2, 8


def _build_layer_plan(num_block):
    """Static encoder schedule: (param_idx, q/k stream, v stream, out stream,
    mask_flag, apply_pos).  Mirrors AKT's Architecture.forward loop."""
    plan = []
    li = 0
    for _ in range(num_block):                       # blocks_1: interaction stream
        plan.append((li, 'y', 'y', 'y', 1, True))
        li += 1
    flag_first = True
    for _ in range(2 * num_block):                   # blocks_2
        if flag_first:
            plan.append((li, 'x', 'x', 'x', 1, False))
            flag_first = False
        else:
            plan.append((li, 'x', 'y', 'x', 0, True))
            flag_first = True
        li += 1
    return tuple(plan)


def _akt_fused_kernel(
    gam_ref,                                    # (NL*H,) SMEM: -softplus(gamma)
    c_ref, cv_ref, i_ref, iv_ref, d_ref,        # rasch inputs (M,D)/(M,1)
    wk_ref, bk_ref, wv_ref, bv_ref, wo_ref, bo_ref,
    ln1w_ref, ln1b_ref, ff1w_ref, ff1b_ref, ff2w_ref, ff2b_ref,
    ln2w_ref, ln2b_ref,                         # stacked (NL, ...) layer params
    fc1w_ref, fc1b_ref, fc2w_ref, fc2b_ref, fc3w_ref, fc3b_ref,
    out_ref,                                    # (M, 1) prediction scores
    *, B, L, D, H, plan):
    f32 = jnp.float32
    dk = D // H
    neg = f32(-1e32)
    inv_sqrt_dk = 1.0 / math.sqrt(dk)

    # ---- constants shared by every layer / head (hoisted, built once) ----
    row = jax.lax.broadcasted_iota(jnp.int32, (L, L), 0)
    col = jax.lax.broadcasted_iota(jnp.int32, (L, L), 1)
    masks = {1: col <= row,                     # attend to self + past
             0: col < row}                      # strictly past (zero_pad row 0)
    cum_mat = (row <= col).astype(f32)          # inclusive cumsum via one matmul
    pos_eff = jnp.abs(col - row).astype(f32)
    first_row = row == 0

    def softmax(s):
        m = jnp.max(s, axis=-1, keepdims=True)
        e = jnp.exp(s - m)
        return e / jnp.sum(e, axis=-1, keepdims=True)

    def layernorm(v, w, b):                     # PyTorch LayerNorm, eps=1e-5
        mu = jnp.mean(v, axis=-1, keepdims=True)
        var = jnp.mean(jnp.square(v - mu), axis=-1, keepdims=True)
        return (v - mu) * jax.lax.rsqrt(var + 1e-5) * w + b

    # ---- Rasch embedding combination (separate_qa=False) ----
    c = c_ref[...]
    cv = cv_ref[...]
    d = d_ref[...]                                       # (M, 1) difficulty
    q_emb = c + d * cv                                   # question_emb
    y = (i_ref[...] + c) + d * (iv_ref[...] + cv)        # interaction_emb

    streams = {'x': q_emb, 'y': y}

    # ---- encoder: fully unrolled transformer layers ----
    for (li, qs, vs, os, mask_flag, apply_pos) in plan:
        q_in = streams[qs]
        v_in = streams[vs]

        # kq_same=True and query==key at every call site -> project once.
        qk = jnp.dot(q_in, wk_ref[li], preferred_element_type=f32) + bk_ref[li]
        vv = jnp.dot(v_in, wv_ref[li], preferred_element_type=f32) + bv_ref[li]

        mask = masks[mask_flag]
        maskf = mask.astype(f32)
        zero_pad = (mask_flag == 0)              # keep coupling with mask_flag

        batch_rows = []
        for b in range(B):
            r0 = b * L
            head_outs = []
            for h in range(H):
                c0 = h * dk
                qh = qk[r0:r0 + L, c0:c0 + dk]   # (L, dk), also the key head
                vh = vv[r0:r0 + L, c0:c0 + dk]
                scores = jax.lax.dot_general(    # q @ k^T without a transpose
                    qh, qh, (((1,), (1,)), ((), ())),
                    preferred_element_type=f32) * inv_sqrt_dk

                # monotonic distance decay (torch.no_grad block)
                p1 = softmax(jnp.where(mask, scores, neg)) * maskf
                distcum = jnp.dot(p1, cum_mat, preferred_element_type=f32)
                disttot = jnp.sum(p1, axis=-1, keepdims=True)
                dist_scores = jnp.sqrt(
                    jnp.maximum((disttot - distcum) * pos_eff, 0.0))
                gamma = gam_ref[li * H + h]      # scalar -softplus(gamma_h)
                total_effect = jnp.clip(jnp.exp(dist_scores * gamma), 1e-5, 1e5)

                attn = softmax(jnp.where(mask, scores * total_effect, neg))
                if zero_pad:
                    attn = jnp.where(first_row, 0.0, attn)
                head_outs.append(jnp.dot(attn, vh, preferred_element_type=f32))
            batch_rows.append(jnp.concatenate(head_outs, axis=1))   # (L, D)
        attn_out = jnp.concatenate(batch_rows, axis=0)              # (M, D)

        proj = (jnp.dot(attn_out, wo_ref[li], preferred_element_type=f32)
                + bo_ref[li])
        hx = layernorm(proj + q_in, ln1w_ref[li], ln1b_ref[li])
        if apply_pos:                            # FFN (dropout = identity)
            ff = jnp.maximum(
                jnp.dot(hx, ff1w_ref[li], preferred_element_type=f32)
                + ff1b_ref[li], 0.0)
            ff = (jnp.dot(ff, ff2w_ref[li], preferred_element_type=f32)
                  + ff2b_ref[li])
            hx = layernorm(ff + hx, ln2w_ref[li], ln2b_ref[li])
        streams[os] = hx

    latent = streams['x']

    # ---- fused prediction MLP: fc1 -> relu -> fc2 -> relu -> fc3 -> sigmoid ----
    pred_in = jnp.concatenate([latent, q_emb], axis=1)              # (M, 2D)
    hh = jnp.maximum(
        jnp.dot(pred_in, fc1w_ref[...], preferred_element_type=f32)
        + fc1b_ref[...], 0.0)
    hh = jnp.maximum(
        jnp.dot(hh, fc2w_ref[...], preferred_element_type=f32)
        + fc2b_ref[...], 0.0)
    score = jax.nn.sigmoid(
        jnp.dot(hh, fc3w_ref[...], preferred_element_type=f32) + fc3b_ref[...])
    out_ref[...] = score.astype(out_ref.dtype)


def akt_forward(params, question_seq, concept_seq, correct_seq, cfg):
    B, L = question_seq.shape
    D, H = cfg['dim_model'], cfg['num_head']
    M = B * L

    # Embedding gathers stay in XLA (no clean Pallas equivalent for gather).
    concept_emb = params['embed_concept'][concept_seq].reshape(M, D)
    concept_var_emb = params['embed_concept_variation'][concept_seq].reshape(M, D)
    inter_emb = params['embed_interaction'][correct_seq].reshape(M, D)   # separate_qa=False
    inter_var_emb = params['embed_interaction_variation'][correct_seq].reshape(M, D)
    q_diff = params['embed_question_difficulty'][question_seq].reshape(M, 1)

    enc = params['encoder']
    gamma_neg = (-jax.nn.softplus(enc['gammas'])).reshape(-1)        # (NL*H,)

    plan = _build_layer_plan(cfg['num_block'])
    n_inputs = 26
    in_specs = ([pl.BlockSpec(memory_space=pltpu.MemorySpace.SMEM)]
                + [pl.BlockSpec(memory_space=pltpu.MemorySpace.VMEM)]
                * (n_inputs - 1))

    score = pl.pallas_call(
        functools.partial(_akt_fused_kernel, B=B, L=L, D=D, H=H, plan=plan),
        in_specs=in_specs,
        out_specs=pl.BlockSpec(memory_space=pltpu.MemorySpace.VMEM),
        out_shape=jax.ShapeDtypeStruct((M, 1), jnp.float32),
    )(gamma_neg,
      concept_emb, concept_var_emb, inter_emb, inter_var_emb, q_diff,
      enc['Wk'], enc['bk'], enc['Wv'], enc['bv'], enc['Wo'], enc['bo'],
      enc['ln1_w'], enc['ln1_b'],
      enc['ff1_w'], enc['ff1_b'], enc['ff2_w'], enc['ff2_b'],
      enc['ln2_w'], enc['ln2_b'],
      params['fc1']['w'], params['fc1']['b'],
      params['fc2']['w'], params['fc2']['b'],
      params['fc3']['w'], params['fc3']['b'])
    return score.reshape(B, L)                                       # squeeze(-1)


# ----------------------------------------------------------------------------
# Deterministic parameter init (synthetic; shapes follow the module __init__,
# encoder-layer weights stacked along a leading layer axis for the fused kernel)
# ----------------------------------------------------------------------------
def init_params(key, cfg):
    D, H, F = cfg['dim_model'], cfg['num_head'], cfg['dim_ff']
    NL = 3 * cfg['num_block']            # blocks_1 (nb) + blocks_2 (2*nb)
    keys = iter(jax.random.split(key, 64))

    def nrm(shape, scale=0.05):
        return jax.random.normal(next(keys), shape, jnp.float32) * scale

    enc = {
        'Wk': nrm((NL, D, D)), 'bk': nrm((NL, 1, D)),
        'Wv': nrm((NL, D, D)), 'bv': nrm((NL, 1, D)),
        'Wo': nrm((NL, D, D)), 'bo': nrm((NL, 1, D)),
        'gammas': nrm((NL, H), 1.0),
        'ln1_w': jnp.ones((NL, 1, D), jnp.float32),
        'ln1_b': jnp.zeros((NL, 1, D), jnp.float32),
        'ff1_w': nrm((NL, D, F)), 'ff1_b': nrm((NL, 1, F)),
        'ff2_w': nrm((NL, F, D)), 'ff2_b': nrm((NL, 1, D)),
        'ln2_w': jnp.ones((NL, 1, D), jnp.float32),
        'ln2_b': jnp.zeros((NL, 1, D), jnp.float32),
    }
    return {
        'embed_question_difficulty': nrm((cfg['num_question'], 1)),
        'embed_concept_variation': nrm((cfg['num_concept'], D)),
        'embed_interaction_variation': nrm((2, D)),
        'embed_concept': nrm((cfg['num_concept'], D)),
        'embed_interaction': nrm((2, D)),
        'encoder': enc,
        'fc1': {'w': nrm((2 * D, cfg['dim_final_fc'])),
                'b': nrm((1, cfg['dim_final_fc']))},
        'fc2': {'w': nrm((cfg['dim_final_fc'], 256)), 'b': nrm((1, 256))},
        'fc3': {'w': nrm((256, 1)), 'b': nrm((1, 1))},
    }


if __name__ == "__main__":
    key = jax.random.PRNGKey(0)
    kq, kc, kr, kp = jax.random.split(key, 4)
    question_seq = jax.random.randint(kq, (BATCH, SEQ_LEN), 0, CFG['num_question'])
    concept_seq = jax.random.randint(kc, (BATCH, SEQ_LEN), 0, CFG['num_concept'])
    correct_seq = jax.random.randint(kr, (BATCH, SEQ_LEN), 0, 2)

    params = init_params(kp, CFG)

    forward = jax.jit(lambda p, q, c, r: akt_forward(p, q, c, r, CFG))
    out = jax.block_until_ready(
        forward(params, question_seq, concept_seq, correct_seq))

    assert out.shape == (BATCH, SEQ_LEN), out.shape
    assert bool(jnp.all(jnp.isfinite(out)))
    assert bool(jnp.all((out >= 0.0) & (out <= 1.0)))   # sigmoid outputs
    print("KERNEL_OK")
</pallas_src>

<mosaic_0001>
module attributes {stable_mosaic.version = 11 : i64} {
  func.func @_akt_fused_kernel(%arg0: memref<6xf32, #tpu.memory_space<smem>>, %arg1: memref<16x32xf32, #tpu.memory_space<vmem>>, %arg2: memref<16x32xf32, #tpu.memory_space<vmem>>, %arg3: memref<16x32xf32, #tpu.memory_space<vmem>>, %arg4: memref<16x32xf32, #tpu.memory_space<vmem>>, %arg5: memref<16x1xf32, #tpu.memory_space<vmem>>, %arg6: memref<3x32x32xf32, #tpu.memory_space<vmem>>, %arg7: memref<3x1x32xf32, #tpu.memory_space<vmem>>, %arg8: memref<3x32x32xf32, #tpu.memory_space<vmem>>, %arg9: memref<3x1x32xf32, #tpu.memory_space<vmem>>, %arg10: memref<3x32x32xf32, #tpu.memory_space<vmem>>, %arg11: memref<3x1x32xf32, #tpu.memory_space<vmem>>, %arg12: memref<3x1x32xf32, #tpu.memory_space<vmem>>, %arg13: memref<3x1x32xf32, #tpu.memory_space<vmem>>, %arg14: memref<3x32x64xf32, #tpu.memory_space<vmem>>, %arg15: memref<3x1x64xf32, #tpu.memory_space<vmem>>, %arg16: memref<3x64x32xf32, #tpu.memory_space<vmem>>, %arg17: memref<3x1x32xf32, #tpu.memory_space<vmem>>, %arg18: memref<3x1x32xf32, #tpu.memory_space<vmem>>, %arg19: memref<3x1x32xf32, #tpu.memory_space<vmem>>, %arg20: memref<64x32xf32, #tpu.memory_space<vmem>>, %arg21: memref<1x32xf32, #tpu.memory_space<vmem>>, %arg22: memref<32x256xf32, #tpu.memory_space<vmem>>, %arg23: memref<1x256xf32, #tpu.memory_space<vmem>>, %arg24: memref<256x1xf32, #tpu.memory_space<vmem>>, %arg25: memref<1x1xf32, #tpu.memory_space<vmem>>, %arg26: memref<16x1xf32, #tpu.memory_space<vmem>>) attributes {dimension_semantics = [], scalar_prefetch = 0 : i64, scratch_operands = 0 : i64, tpu.core_type = #tpu.core_type<tc>} {
    %0 = tpu.iota {dimensions = array<i32: 0>} : vector<8x8xi32>
    %1 = tpu.iota {dimensions = array<i32: 1>} : vector<8x8xi32>
    %2 = arith.cmpi sle, %1, %0 : vector<8x8xi32>
    %3 = arith.cmpi slt, %1, %0 : vector<8x8xi32>
    %4 = arith.cmpi sle, %0, %1 : vector<8x8xi32>
    %5 = arith.extui %4 : vector<8x8xi1> to vector<8x8xi32>
    %6 = arith.sitofp %5 : vector<8x8xi32> to vector<8x8xf32>
    %7 = arith.subi %1, %0 : vector<8x8xi32>
    %8 = math.absi %7 : vector<8x8xi32>
    %9 = arith.sitofp %8 : vector<8x8xi32> to vector<8x8xf32>
    %c0_i32 = arith.constant 0 : i32
    %10 = vector.broadcast %c0_i32 : i32 to vector<8x8xi32>
    %11 = arith.cmpi eq, %0, %10 : vector<8x8xi32>
    %c0 = arith.constant 0 : index
    %c0_0 = arith.constant 0 : index
    %12 = vector.load %arg1[%c0, %c0_0] : memref<16x32xf32, #tpu.memory_space<vmem>>, vector<16x32xf32>
    %c0_1 = arith.constant 0 : index
    %c0_2 = arith.constant 0 : index
    %13 = vector.load %arg2[%c0_1, %c0_2] : memref<16x32xf32, #tpu.memory_space<vmem>>, vector<16x32xf32>
    %c0_3 = arith.constant 0 : index
    %c0_4 = arith.constant 0 : index
    %14 = vector.load %arg5[%c0_3, %c0_4] : memref<16x1xf32, #tpu.memory_space<vmem>>, vector<16x1xf32>
    %15 = vector.broadcast %14 : vector<16x1xf32> to vector<16x32xf32>
    %16 = arith.mulf %15, %13 : vector<16x32xf32>
    %17 = arith.addf %12, %16 : vector<16x32xf32>
    %c0_5 = arith.constant 0 : index
    %c0_6 = arith.constant 0 : index
    %18 = vector.load %arg3[%c0_5, %c0_6] : memref<16x32xf32, #tpu.memory_space<vmem>>, vector<16x32xf32>
    %19 = arith.addf %18, %12 : vector<16x32xf32>
    %c0_7 = arith.constant 0 : index
    %c0_8 = arith.constant 0 : index
    %20 = vector.load %arg4[%c0_7, %c0_8] : memref<16x32xf32, #tpu.memory_space<vmem>>, vector<16x32xf32>
    %21 = arith.addf %20, %13 : vector<16x32xf32>
    %22 = vector.broadcast %14 : vector<16x1xf32> to vector<16x32xf32>
    %23 = arith.mulf %22, %21 : vector<16x32xf32>
    %24 = arith.addf %19, %23 : vector<16x32xf32>
    %c0_9 = arith.constant 0 : index
    %c0_10 = arith.constant 0 : index
    %c0_11 = arith.constant 0 : index
    %25 = vector.load %arg6[%c0_9, %c0_10, %c0_11] : memref<3x32x32xf32, #tpu.memory_space<vmem>>, vector<1x32x32xf32>
    %26 = vector.shape_cast %25 : vector<1x32x32xf32> to vector<32x32xf32>
    %cst = arith.constant dense<0.000000e+00> : vector<16x32xf32>
    %27 = tpu.matmul %24, %26, %cst {dimension_numbers = #tpu.dot_dimension_numbers<[1], [0], [0], [1], [0, 0, 1, 1], [], []>} : vector<16x32xf32>, vector<32x32xf32>, vector<16x32xf32> -> vector<16x32xf32>
    %c0_12 = arith.constant 0 : index
    %c0_13 = arith.constant 0 : index
    %c0_14 = arith.constant 0 : index
    %28 = vector.load %arg7[%c0_12, %c0_13, %c0_14] : memref<3x1x32xf32, #tpu.memory_space<vmem>>, vector<1x1x32xf32>
    %29 = vector.shape_cast %28 : vector<1x1x32xf32> to vector<1x32xf32>
    %30 = vector.broadcast %29 : vector<1x32xf32> to vector<16x32xf32>
    %31 = arith.addf %27, %30 : vector<16x32xf32>
    %c0_15 = arith.constant 0 : index
    %c0_16 = arith.constant 0 : index
    %c0_17 = arith.constant 0 : index
    %32 = vector.load %arg8[%c0_15, %c0_16, %c0_17] : memref<3x32x32xf32, #tpu.memory_space<vmem>>, vector<1x32x32xf32>
    %33 = vector.shape_cast %32 : vector<1x32x32xf32> to vector<32x32xf32>
    %cst_18 = arith.constant dense<0.000000e+00> : vector<16x32xf32>
    %34 = tpu.matmul %24, %33, %cst_18 {dimension_numbers = #tpu.dot_dimension_numbers<[1], [0], [0], [1], [0, 0, 1, 1], [], []>} : vector<16x32xf32>, vector<32x32xf32>, vector<16x32xf32> -> vector<16x32xf32>
    %c0_19 = arith.constant 0 : index
    %c0_20 = arith.constant 0 : index
    %c0_21 = arith.constant 0 : index
    %35 = vector.load %arg9[%c0_19, %c0_20, %c0_21] : memref<3x1x32xf32, #tpu.memory_space<vmem>>, vector<1x1x32xf32>
    %36 = vector.shape_cast %35 : vector<1x1x32xf32> to vector<1x32xf32>
    %37 = vector.broadcast %36 : vector<1x32xf32> to vector<16x32xf32>
    %38 = arith.addf %34, %37 : vector<16x32xf32>
    %39 = arith.extui %2 : vector<8x8xi1> to vector<8x8xi32>
    %40 = arith.sitofp %39 : vector<8x8xi32> to vector<8x8xf32>
    %41 = vector.extract_strided_slice %31 {offsets = [0, 0], sizes = [8, 16], strides = [1, 1]} : vector<16x32xf32> to vector<8x16xf32>
    %42 = vector.extract_strided_slice %38 {offsets = [0, 0], sizes = [8, 16], strides = [1, 1]} : vector<16x32xf32> to vector<8x16xf32>
    %cst_22 = arith.constant dense<0.000000e+00> : vector<8x8xf32>
    %43 = tpu.matmul %41, %41, %cst_22 {dimension_numbers = #tpu.dot_dimension_numbers<[1], [1], [0], [0], [0, 0, 1, 0], [], []>} : vector<8x16xf32>, vector<8x16xf32>, vector<8x8xf32> -> vector<8x8xf32>
    %cst_23 = arith.constant 2.500000e-01 : f32
    %44 = vector.broadcast %cst_23 : f32 to vector<8x8xf32>
    %45 = arith.mulf %43, %44 : vector<8x8xf32>
    %cst_24 = arith.constant -1.000000e+32 : f32
    %46 = vector.broadcast %cst_24 : f32 to vector<8x8xf32>
    %47 = arith.select %2, %45, %46 : vector<8x8xi1>, vector<8x8xf32>
    %cst_25 = arith.constant dense<0xFF800000> : vector<8xf32>
    %48 = vector.multi_reduction <maximumf>, %47, %cst_25 [1] : vector<8x8xf32> to vector<8xf32>
    %49 = vector.shape_cast %48 : vector<8xf32> to vector<8x1xf32>
    %50 = vector.broadcast %49 : vector<8x1xf32> to vector<8x8xf32>
    %51 = arith.subf %47, %50 : vector<8x8xf32>
    %52 = math.exp %51 : vector<8x8xf32>
    %cst_26 = arith.constant dense<0.000000e+00> : vector<8xf32>
    %53 = vector.multi_reduction <add>, %52, %cst_26 [1] : vector<8x8xf32> to vector<8xf32>
    %54 = vector.shape_cast %53 : vector<8xf32> to vector<8x1xf32>
    %55 = vector.broadcast %54 : vector<8x1xf32> to vector<8x8xf32>
    %56 = arith.divf %52, %55 : vector<8x8xf32>
    %57 = arith.mulf %56, %40 : vector<8x8xf32>
    %cst_27 = arith.constant dense<0.000000e+00> : vector<8x8xf32>
    %58 = tpu.matmul %57, %6, %cst_27 {dimension_numbers = #tpu.dot_dimension_numbers<[1], [0], [0], [1], [0, 0, 1, 1], [], []>} : vector<8x8xf32>, vector<8x8xf32>, vector<8x8xf32> -> vector<8x8xf32>
    %cst_28 = arith.constant dense<0.000000e+00> : vector<8xf32>
    %59 = vector.multi_reduction <add>, %57, %cst_28 [1] : vector<8x8xf32> to vector<8xf32>
    %60 = vector.shape_cast %59 : vector<8xf32> to vector<8x1xf32>
    %61 = vector.broadcast %60 : vector<8x1xf32> to vector<8x8xf32>
    %62 = arith.subf %61, %58 : vector<8x8xf32>
    %63 = arith.mulf %62, %9 : vector<8x8xf32>
    %cst_29 = arith.constant 0.000000e+00 : f32
    %64 = vector.broadcast %cst_29 : f32 to vector<8x8xf32>
    %65 = arith.maximumf %63, %64 : vector<8x8xf32>
    %66 = math.sqrt %65 : vector<8x8xf32>
    %c0_30 = arith.constant 0 : index
    %67 = memref.load %arg0[%c0_30] : memref<6xf32, #tpu.memory_space<smem>>
    %68 = vector.broadcast %67 : f32 to vector<8x8xf32>
    %69 = arith.mulf %66, %68 : vector<8x8xf32>
    %70 = math.exp %69 : vector<8x8xf32>
    %cst_31 = arith.constant 9.99999974E-6 : f32
    %cst_32 = arith.constant 1.000000e+05 : f32
    %71 = vector.broadcast %cst_31 : f32 to vector<8x8xf32>
    %72 = arith.maximumf %71, %70 : vector<8x8xf32>
    %73 = vector.broadcast %cst_32 : f32 to vector<8x8xf32>
    %74 = arith.minimumf %73, %72 : vector<8x8xf32>
    %75 = arith.mulf %45, %74 : vector<8x8xf32>
    %cst_33 = arith.constant -1.000000e+32 : f32
    %76 = vector.broadcast %cst_33 : f32 to vector<8x8xf32>
    %77 = arith.select %2, %75, %76 : vector<8x8xi1>, vector<8x8xf32>
    %cst_34 = arith.constant dense<0xFF800000> : vector<8xf32>
    %78 = vector.multi_reduction <maximumf>, %77, %cst_34 [1] : vector<8x8xf32> to vector<8xf32>
    %79 = vector.shape_cast %78 : vector<8xf32> to vector<8x1xf32>
    %80 = vector.broadcast %79 : vector<8x1xf32> to vector<8x8xf32>
    %81 = arith.subf %77, %80 : vector<8x8xf32>
    %82 = math.exp %81 : vector<8x8xf32>
    %cst_35 = arith.constant dense<0.000000e+00> : vector<8xf32>
    %83 = vector.multi_reduction <add>, %82, %cst_35 [1] : vector<8x8xf32> to vector<8xf32>
    %84 = vector.shape_cast %83 : vector<8xf32> to vector<8x1xf32>
    %85 = vector.broadcast %84 : vector<8x1xf32> to vector<8x8xf32>
    %86 = arith.divf %82, %85 : vector<8x8xf32>
    %cst_36 = arith.constant dense<0.000000e+00> : vector<8x16xf32>
    %87 = tpu.matmul %86, %42, %cst_36 {dimension_numbers = #tpu.dot_dimension_numbers<[1], [0], [0], [1], [0, 0, 1, 1], [], []>} : vector<8x8xf32>, vector<8x16xf32>, vector<8x16xf32> -> vector<8x16xf32>
    %88 = vector.extract_strided_slice %31 {offsets = [0, 16], sizes = [8, 16], strides = [1, 1]} : vector<16x32xf32> to vector<8x16xf32>
    %89 = vector.extract_strided_slice %38 {offsets = [0, 16], sizes = [8, 16], strides = [1, 1]} : vector<16x32xf32> to vector<8x16xf32>
    %cst_37 = arith.constant dense<0.000000e+00> : vector<8x8xf32>
    %90 = tpu.matmul %88, %88, %cst_37 {dimension_numbers = #tpu.dot_dimension_numbers<[1], [1], [0], [0], [0, 0, 1, 0], [], []>} : vector<8x16xf32>, vector<8x16xf32>, vector<8x8xf32> -> vector<8x8xf32>
    %cst_38 = arith.constant 2.500000e-01 : f32
    %91 = vector.broadcast %cst_38 : f32 to vector<8x8xf32>
    %92 = arith.mulf %90, %91 : vector<8x8xf32>
    %cst_39 = arith.constant -1.000000e+32 : f32
    %93 = vector.broadcast %cst_39 : f32 to vector<8x8xf32>
    %94 = arith.select %2, %92, %93 : vector<8x8xi1>, vector<8x8xf32>
    %cst_40 = arith.constant dense<0xFF800000> : vector<8xf32>
    %95 = vector.multi_reduction <maximumf>, %94, %cst_40 [1] : vector<8x8xf32> to vector<8xf32>
    %96 = vector.shape_cast %95 : vector<8xf32> to vector<8x1xf32>
    %97 = vector.broadcast %96 : vector<8x1xf32> to vector<8x8xf32>
    %98 = arith.subf %94, %97 : vector<8x8xf32>
    %99 = math.exp %98 : vector<8x8xf32>
    %cst_41 = arith.constant dense<0.000000e+00> : vector<8xf32>
    %100 = vector.multi_reduction <add>, %99, %cst_41 [1] : vector<8x8xf32> to vector<8xf32>
    %101 = vector.shape_cast %100 : vector<8xf32> to vector<8x1xf32>
    %102 = vector.broadcast %101 : vector<8x1xf32> to vector<8x8xf32>
    %103 = arith.divf %99, %102 : vector<8x8xf32>
    %104 = arith.mulf %103, %40 : vector<8x8xf32>
    %cst_42 = arith.constant dense<0.000000e+00> : vector<8x8xf32>
    %105 = tpu.matmul %104, %6, %cst_42 {dimension_numbers = #tpu.dot_dimension_numbers<[1], [0], [0], [1], [0, 0, 1, 1], [], []>} : vector<8x8xf32>, vector<8x8xf32>, vector<8x8xf32> -> vector<8x8xf32>
    %cst_43 = arith.constant dense<0.000000e+00> : vector<8xf32>
    %106 = vector.multi_reduction <add>, %104, %cst_43 [1] : vector<8x8xf32> to vector<8xf32>
    %107 = vector.shape_cast %106 : vector<8xf32> to vector<8x1xf32>
    %108 = vector.broadcast %107 : vector<8x1xf32> to vector<8x8xf32>
    %109 = arith.subf %108, %105 : vector<8x8xf32>
    %110 = arith.mulf %109, %9 : vector<8x8xf32>
    %cst_44 = arith.constant 0.000000e+00 : f32
    %111 = vector.broadcast %cst_44 : f32 to vector<8x8xf32>
    %112 = arith.maximumf %110, %111 : vector<8x8xf32>
    %113 = math.sqrt %112 : vector<8x8xf32>
    %c1 = arith.constant 1 : index
    %114 = memref.load %arg0[%c1] : memref<6xf32, #tpu.memory_space<smem>>
    %115 = vector.broadcast %114 : f32 to vector<8x8xf32>
    %116 = arith.mulf %113, %115 : vector<8x8xf32>
    %117 = math.exp %116 : vector<8x8xf32>
    %cst_45 = arith.constant 9.99999974E-6 : f32
    %cst_46 = arith.constant 1.000000e+05 : f32
    %118 = vector.broadcast %cst_45 : f32 to vector<8x8xf32>
    %119 = arith.maximumf %118, %117 : vector<8x8xf32>
    %120 = vector.broadcast %cst_46 : f32 to vector<8x8xf32>
    %121 = arith.minimumf %120, %119 : vector<8x8xf32>
    %122 = arith.mulf %92, %121 : vector<8x8xf32>
    %cst_47 = arith.constant -1.000000e+32 : f32
    %123 = vector.broadcast %cst_47 : f32 to vector<8x8xf32>
    %124 = arith.select %2, %122, %123 : vector<8x8xi1>, vector<8x8xf32>
    %cst_48 = arith.constant dense<0xFF800000> : vector<8xf32>
    %125 = vector.multi_reduction <maximumf>, %124, %cst_48 [1] : vector<8x8xf32> to vector<8xf32>
    %126 = vector.shape_cast %125 : vector<8xf32> to vector<8x1xf32>
    %127 = vector.broadcast %126 : vector<8x1xf32> to vector<8x8xf32>
    %128 = arith.subf %124, %127 : vector<8x8xf32>
    %129 = math.exp %128 : vector<8x8xf32>
    %cst_49 = arith.constant dense<0.000000e+00> : vector<8xf32>
    %130 = vector.multi_reduction <add>, %129, %cst_49 [1] : vector<8x8xf32> to vector<8xf32>
    %131 = vector.shape_cast %130 : vector<8xf32> to vector<8x1xf32>
    %132 = vector.broadcast %131 : vector<8x1xf32> to vector<8x8xf32>
    %133 = arith.divf %129, %132 : vector<8x8xf32>
    %cst_50 = arith.constant dense<0.000000e+00> : vector<8x16xf32>
    %134 = tpu.matmul %133, %89, %cst_50 {dimension_numbers = #tpu.dot_dimension_numbers<[1], [0], [0], [1], [0, 0, 1, 1], [], []>} : vector<8x8xf32>, vector<8x16xf32>, vector<8x16xf32> -> vector<8x16xf32>
    %135 = tpu.concatenate %87, %134 in 1 : vector<8x16xf32>, vector<8x16xf32> -> vector<8x32xf32>
    %136 = vector.extract_strided_slice %31 {offsets = [8, 0], sizes = [8, 16], strides = [1, 1]} : vector<16x32xf32> to vector<8x16xf32>
    %137 = vector.extract_strided_slice %38 {offsets = [8, 0], sizes = [8, 16], strides = [1, 1]} : vector<16x32xf32> to vector<8x16xf32>
    %cst_51 = arith.constant dense<0.000000e+00> : vector<8x8xf32>
    %138 = tpu.matmul %136, %136, %cst_51 {dimension_numbers = #tpu.dot_dimension_numbers<[1], [1], [0], [0], [0, 0, 1, 0], [], []>} : vector<8x16xf32>, vector<8x16xf32>, vector<8x8xf32> -> vector<8x8xf32>
    %cst_52 = arith.constant 2.500000e-01 : f32
    %139 = vector.broadcast %cst_52 : f32 to vector<8x8xf32>
    %140 = arith.mulf %138, %139 : vector<8x8xf32>
    %cst_53 = arith.constant -1.000000e+32 : f32
    %141 = vector.broadcast %cst_53 : f32 to vector<8x8xf32>
    %142 = arith.select %2, %140, %141 : vector<8x8xi1>, vector<8x8xf32>
    %cst_54 = arith.constant dense<0xFF800000> : vector<8xf32>
    %143 = vector.multi_reduction <maximumf>, %142, %cst_54 [1] : vector<8x8xf32> to vector<8xf32>
    %144 = vector.shape_cast %143 : vector<8xf32> to vector<8x1xf32>
    %145 = vector.broadcast %144 : vector<8x1xf32> to vector<8x8xf32>
    %146 = arith.subf %142, %145 : vector<8x8xf32>
    %147 = math.exp %146 : vector<8x8xf32>
    %cst_55 = arith.constant dense<0.000000e+00> : vector<8xf32>
    %148 = vector.multi_reduction <add>, %147, %cst_55 [1] : vector<8x8xf32> to vector<8xf32>
    %149 = vector.shape_cast %148 : vector<8xf32> to vector<8x1xf32>
    %150 = vector.broadcast %149 : vector<8x1xf32> to vector<8x8xf32>
    %151 = arith.divf %147, %150 : vector<8x8xf32>
    %152 = arith.mulf %151, %40 : vector<8x8xf32>
    %cst_56 = arith.constant dense<0.000000e+00> : vector<8x8xf32>
    %153 = tpu.matmul %152, %6, %cst_56 {dimension_numbers = #tpu.dot_dimension_numbers<[1], [0], [0], [1], [0, 0, 1, 1], [], []>} : vector<8x8xf32>, vector<8x8xf32>, vector<8x8xf32> -> vector<8x8xf32>
    %cst_57 = arith.constant dense<0.000000e+00> : vector<8xf32>
    %154 = vector.multi_reduction <add>, %152, %cst_57 [1] : vector<8x8xf32> to vector<8xf32>
    %155 = vector.shape_cast %154 : vector<8xf32> to vector<8x1xf32>
    %156 = vector.broadcast %155 : vector<8x1xf32> to vector<8x8xf32>
    %157 = arith.subf %156, %153 : vector<8x8xf32>
    %158 = arith.mulf %157, %9 : vector<8x8xf32>
    %cst_58 = arith.constant 0.000000e+00 : f32
    %159 = vector.broadcast %cst_58 : f32 to vector<8x8xf32>
    %160 = arith.maximumf %158, %159 : vector<8x8xf32>
    %161 = math.sqrt %160 : vector<8x8xf32>
    %c0_59 = arith.constant 0 : index
    %162 = memref.load %arg0[%c0_59] : memref<6xf32, #tpu.memory_space<smem>>
    %163 = vector.broadcast %162 : f32 to vector<8x8xf32>
    %164 = arith.mulf %161, %163 : vector<8x8xf32>
    %165 = math.exp %164 : vector<8x8xf32>
    %cst_60 = arith.constant 9.99999974E-6 : f32
    %cst_61 = arith.constant 1.000000e+05 : f32
    %166 = vector.broadcast %cst_60 : f32 to vector<8x8xf32>
    %167 = arith.maximumf %166, %165 : vector<8x8xf32>
    %168 = vector.broadcast %cst_61 : f32 to vector<8x8xf32>
    %169 = arith.minimumf %168, %167 : vector<8x8xf32>
    %170 = arith.mulf %140, %169 : vector<8x8xf32>
    %cst_62 = arith.constant -1.000000e+32 : f32
    %171 = vector.broadcast %cst_62 : f32 to vector<8x8xf32>
    %172 = arith.select %2, %170, %171 : vector<8x8xi1>, vector<8x8xf32>
    %cst_63 = arith.constant dense<0xFF800000> : vector<8xf32>
    %173 = vector.multi_reduction <maximumf>, %172, %cst_63 [1] : vector<8x8xf32> to vector<8xf32>
    %174 = vector.shape_cast %173 : vector<8xf32> to vector<8x1xf32>
    %175 = vector.broadcast %174 : vector<8x1xf32> to vector<8x8xf32>
    %176 = arith.subf %172, %175 : vector<8x8xf32>
    %177 = math.exp %176 : vector<8x8xf32>
    %cst_64 = arith.constant dense<0.000000e+00> : vector<8xf32>
    %178 = vector.multi_reduction <add>, %177, %cst_64 [1] : vector<8x8xf32> to vector<8xf32>
    %179 = vector.shape_cast %178 : vector<8xf32> to vector<8x1xf32>
    %180 = vector.broadcast %179 : vector<8x1xf32> to vector<8x8xf32>
    %181 = arith.divf %177, %180 : vector<8x8xf32>
    %cst_65 = arith.constant dense<0.000000e+00> : vector<8x16xf32>
    %182 = tpu.matmul %181, %137, %cst_65 {dimension_numbers = #tpu.dot_dimension_numbers<[1], [0], [0], [1], [0, 0, 1, 1], [], []>} : vector<8x8xf32>, vector<8x16xf32>, vector<8x16xf32> -> vector<8x16xf32>
    %183 = vector.extract_strided_slice %31 {offsets = [8, 16], sizes = [8, 16], strides = [1, 1]} : vector<16x32xf32> to vector<8x16xf32>
    %184 = vector.extract_strided_slice %38 {offsets = [8, 16], sizes = [8, 16], strides = [1, 1]} : vector<16x32xf32> to vector<8x16xf32>
    %cst_66 = arith.constant dense<0.000000e+00> : vector<8x8xf32>
    %185 = tpu.matmul %183, %183, %cst_66 {dimension_numbers = #tpu.dot_dimension_numbers<[1], [1], [0], [0], [0, 0, 1, 0], [], []>} : vector<8x16xf32>, vector<8x16xf32>, vector<8x8xf32> -> vector<8x8xf32>
    %cst_67 = arith.constant 2.500000e-01 : f32
    %186 = vector.broadcast %cst_67 : f32 to vector<8x8xf32>
    %187 = arith.mulf %185, %186 : vector<8x8xf32>
    %cst_68 = arith.constant -1.000000e+32 : f32
    %188 = vector.broadcast %cst_68 : f32 to vector<8x8xf32>
    %189 = arith.select %2, %187, %188 : vector<8x8xi1>, vector<8x8xf32>
    %cst_69 = arith.constant dense<0xFF800000> : vector<8xf32>
    %190 = vector.multi_reduction <maximumf>, %189, %cst_69 [1] : vector<8x8xf32> to vector<8xf32>
    %191 = vector.shape_cast %190 : vector<8xf32> to vector<8x1xf32>
    %192 = vector.broadcast %191 : vector<8x1xf32> to vector<8x8xf32>
    %193 = arith.subf %189, %192 : vector<8x8xf32>
    %194 = math.exp %193 : vector<8x8xf32>
    %cst_70 = arith.constant dense<0.000000e+00> : vector<8xf32>
    %195 = vector.multi_reduction <add>, %194, %cst_70 [1] : vector<8x8xf32> to vector<8xf32>
    %196 = vector.shape_cast %195 : vector<8xf32> to vector<8x1xf32>
    %197 = vector.broadcast %196 : vector<8x1xf32> to vector<8x8xf32>
    %198 = arith.divf %194, %197 : vector<8x8xf32>
    %199 = arith.mulf %198, %40 : vector<8x8xf32>
    %cst_71 = arith.constant dense<0.000000e+00> : vector<8x8xf32>
    %200 = tpu.matmul %199, %6, %cst_71 {dimension_numbers = #tpu.dot_dimension_numbers<[1], [0], [0], [1], [0, 0, 1, 1], [], []>} : vector<8x8xf32>, vector<8x8xf32>, vector<8x8xf32> -> vector<8x8xf32>
    %cst_72 = arith.constant dense<0.000000e+00> : vector<8xf32>
    %201 = vector.multi_reduction <add>, %199, %cst_72 [1] : vector<8x8xf32> to vector<8xf32>
    %202 = vector.shape_cast %201 : vector<8xf32> to vector<8x1xf32>
    %203 = vector.broadcast %202 : vector<8x1xf32> to vector<8x8xf32>
    %204 = arith.subf %203, %200 : vector<8x8xf32>
    %205 = arith.mulf %204, %9 : vector<8x8xf32>
    %cst_73 = arith.constant 0.000000e+00 : f32
    %206 = vector.broadcast %cst_73 : f32 to vector<8x8xf32>
    %207 = arith.maximumf %205, %206 : vector<8x8xf32>
    %208 = math.sqrt %207 : vector<8x8xf32>
    %c1_74 = arith.constant 1 : index
    %209 = memref.load %arg0[%c1_74] : memref<6xf32, #tpu.memory_space<smem>>
    %210 = vector.broadcast %209 : f32 to vector<8x8xf32>
    %211 = arith.mulf %208, %210 : vector<8x8xf32>
    %212 = math.exp %211 : vector<8x8xf32>
    %cst_75 = arith.constant 9.99999974E-6 : f32
    %cst_76 = arith.constant 1.000000e+05 : f32
    %213 = vector.broadcast %cst_75 : f32 to vector<8x8xf32>
    %214 = arith.maximumf %213, %212 : vector<8x8xf32>
    %215 = vector.broadcast %cst_76 : f32 to vector<8x8xf32>
    %216 = arith.minimumf %215, %214 : vector<8x8xf32>
    %217 = arith.mulf %187, %216 : vector<8x8xf32>
    %cst_77 = arith.constant -1.000000e+32 : f32
    %218 = vector.broadcast %cst_77 : f32 to vector<8x8xf32>
    %219 = arith.select %2, %217, %218 : vector<8x8xi1>, vector<8x8xf32>
    %cst_78 = arith.constant dense<0xFF800000> : vector<8xf32>
    %220 = vector.multi_reduction <maximumf>, %219, %cst_78 [1] : vector<8x8xf32> to vector<8xf32>
    %221 = vector.shape_cast %220 : vector<8xf32> to vector<8x1xf32>
    %222 = vector.broadcast %221 : vector<8x1xf32> to vector<8x8xf32>
    %223 = arith.subf %219, %222 : vector<8x8xf32>
    %224 = math.exp %223 : vector<8x8xf32>
    %cst_79 = arith.constant dense<0.000000e+00> : vector<8xf32>
    %225 = vector.multi_reduction <add>, %224, %cst_79 [1] : vector<8x8xf32> to vector<8xf32>
    %226 = vector.shape_cast %225 : vector<8xf32> to vector<8x1xf32>
    %227 = vector.broadcast %226 : vector<8x1xf32> to vector<8x8xf32>
    %228 = arith.divf %224, %227 : vector<8x8xf32>
    %cst_80 = arith.constant dense<0.000000e+00> : vector<8x16xf32>
    %229 = tpu.matmul %228, %184, %cst_80 {dimension_numbers = #tpu.dot_dimension_numbers<[1], [0], [0], [1], [0, 0, 1, 1], [], []>} : vector<8x8xf32>, vector<8x16xf32>, vector<8x16xf32> -> vector<8x16xf32>
    %230 = tpu.concatenate %182, %229 in 1 : vector<8x16xf32>, vector<8x16xf32> -> vector<8x32xf32>
    %231 = tpu.concatenate %135, %230 in 0 : vector<8x32xf32>, vector<8x32xf32> -> vector<16x32xf32>
    %c0_81 = arith.constant 0 : index
    %c0_82 = arith.constant 0 : index
    %c0_83 = arith.constant 0 : index
    %232 = vector.load %arg10[%c0_81, %c0_82, %c0_83] : memref<3x32x32xf32, #tpu.memory_space<vmem>>, vector<1x32x32xf32>
    %233 = vector.shape_cast %232 : vector<1x32x32xf32> to vector<32x32xf32>
    %cst_84 = arith.constant dense<0.000000e+00> : vector<16x32xf32>
    %234 = tpu.matmul %231, %233, %cst_84 {dimension_numbers = #tpu.dot_dimension_numbers<[1], [0], [0], [1], [0, 0, 1, 1], [], []>} : vector<16x32xf32>, vector<32x32xf32>, vector<16x32xf32> -> vector<16x32xf32>
    %c0_85 = arith.constant 0 : index
    %c0_86 = arith.constant 0 : index
    %c0_87 = arith.constant 0 : index
    %235 = vector.load %arg11[%c0_85, %c0_86, %c0_87] : memref<3x1x32xf32, #tpu.memory_space<vmem>>, vector<1x1x32xf32>
    %236 = vector.shape_cast %235 : vector<1x1x32xf32> to vector<1x32xf32>
    %237 = vector.broadcast %236 : vector<1x32xf32> to vector<16x32xf32>
    %238 = arith.addf %234, %237 : vector<16x32xf32>
    %239 = arith.addf %238, %24 : vector<16x32xf32>
    %c0_88 = arith.constant 0 : index
    %c0_89 = arith.constant 0 : index
    %c0_90 = arith.constant 0 : index
    %240 = vector.load %arg12[%c0_88, %c0_89, %c0_90] : memref<3x1x32xf32, #tpu.memory_space<vmem>>, vector<1x1x32xf32>
    %241 = vector.shape_cast %240 : vector<1x1x32xf32> to vector<1x32xf32>
    %c0_91 = arith.constant 0 : index
    %c0_92 = arith.constant 0 : index
    %c0_93 = arith.constant 0 : index
    %242 = vector.load %arg13[%c0_91, %c0_92, %c0_93] : memref<3x1x32xf32, #tpu.memory_space<vmem>>, vector<1x1x32xf32>
    %243 = vector.shape_cast %242 : vector<1x1x32xf32> to vector<1x32xf32>
    %cst_94 = arith.constant dense<0.000000e+00> : vector<16xf32>
    %244 = vector.multi_reduction <add>, %239, %cst_94 [1] : vector<16x32xf32> to vector<16xf32>
    %245 = vector.shape_cast %244 : vector<16xf32> to vector<16x1xf32>
    %cst_95 = arith.constant 3.200000e+01 : f32
    %246 = vector.broadcast %cst_95 : f32 to vector<16x1xf32>
    %247 = arith.divf %245, %246 : vector<16x1xf32>
    %248 = vector.broadcast %247 : vector<16x1xf32> to vector<16x32xf32>
    %249 = arith.subf %239, %248 : vector<16x32xf32>
    %250 = arith.mulf %249, %249 : vector<16x32xf32>
    %cst_96 = arith.constant dense<0.000000e+00> : vector<16xf32>
    %251 = vector.multi_reduction <add>, %250, %cst_96 [1] : vector<16x32xf32> to vector<16xf32>
    %252 = vector.shape_cast %251 : vector<16xf32> to vector<16x1xf32>
    %cst_97 = arith.constant 3.200000e+01 : f32
    %253 = vector.broadcast %cst_97 : f32 to vector<16x1xf32>
    %254 = arith.divf %252, %253 : vector<16x1xf32>
    %255 = vector.broadcast %247 : vector<16x1xf32> to vector<16x32xf32>
    %256 = arith.subf %239, %255 : vector<16x32xf32>
    %cst_98 = arith.constant 9.99999974E-6 : f32
    %257 = vector.broadcast %cst_98 : f32 to vector<16x1xf32>
    %258 = arith.addf %254, %257 : vector<16x1xf32>
    %259 = math.rsqrt %258 : vector<16x1xf32>
    %260 = vector.broadcast %259 : vector<16x1xf32> to vector<16x32xf32>
    %261 = arith.mulf %256, %260 : vector<16x32xf32>
    %262 = vector.broadcast %241 : vector<1x32xf32> to vector<16x32xf32>
    %263 = arith.mulf %261, %262 : vector<16x32xf32>
    %264 = vector.broadcast %243 : vector<1x32xf32> to vector<16x32xf32>
    %265 = arith.addf %263, %264 : vector<16x32xf32>
    %c0_99 = arith.constant 0 : index
    %c0_100 = arith.constant 0 : index
    %c0_101 = arith.constant 0 : index
    %266 = vector.load %arg14[%c0_99, %c0_100, %c0_101] : memref<3x32x64xf32, #tpu.memory_space<vmem>>, vector<1x32x64xf32>
    %267 = vector.shape_cast %266 : vector<1x32x64xf32> to vector<32x64xf32>
    %cst_102 = arith.constant dense<0.000000e+00> : vector<16x64xf32>
    %268 = tpu.matmul %265, %267, %cst_102 {dimension_numbers = #tpu.dot_dimension_numbers<[1], [0], [0], [1], [0, 0, 1, 1], [], []>} : vector<16x32xf32>, vector<32x64xf32>, vector<16x64xf32> -> vector<16x64xf32>
    %c0_103 = arith.constant 0 : index
    %c0_104 = arith.constant 0 : index
    %c0_105 = arith.constant 0 : index
    %269 = vector.load %arg15[%c0_103, %c0_104, %c0_105] : memref<3x1x64xf32, #tpu.memory_space<vmem>>, vector<1x1x64xf32>
    %270 = vector.shape_cast %269 : vector<1x1x64xf32> to vector<1x64xf32>
    %271 = vector.broadcast %270 : vector<1x64xf32> to vector<16x64xf32>
    %272 = arith.addf %268, %271 : vector<16x64xf32>
    %cst_106 = arith.constant 0.000000e+00 : f32
    %273 = vector.broadcast %cst_106 : f32 to vector<16x64xf32>
    %274 = arith.maximumf %272, %273 : vector<16x64xf32>
    %c0_107 = arith.constant 0 : index
    %c0_108 = arith.constant 0 : index
    %c0_109 = arith.constant 0 : index
    %275 = vector.load %arg16[%c0_107, %c0_108, %c0_109] : memref<3x64x32xf32, #tpu.memory_space<vmem>>, vector<1x64x32xf32>
    %276 = vector.shape_cast %275 : vector<1x64x32xf32> to vector<64x32xf32>
    %cst_110 = arith.constant dense<0.000000e+00> : vector<16x32xf32>
    %277 = tpu.matmul %274, %276, %cst_110 {dimension_numbers = #tpu.dot_dimension_numbers<[1], [0], [0], [1], [0, 0, 1, 1], [], []>} : vector<16x64xf32>, vector<64x32xf32>, vector<16x32xf32> -> vector<16x32xf32>
    %c0_111 = arith.constant 0 : index
    %c0_112 = arith.constant 0 : index
    %c0_113 = arith.constant 0 : index
    %278 = vector.load %arg17[%c0_111, %c0_112, %c0_113] : memref<3x1x32xf32, #tpu.memory_space<vmem>>, vector<1x1x32xf32>
    %279 = vector.shape_cast %278 : vector<1x1x32xf32> to vector<1x32xf32>
    %280 = vector.broadcast %279 : vector<1x32xf32> to vector<16x32xf32>
    %281 = arith.addf %277, %280 : vector<16x32xf32>
    %282 = arith.addf %281, %265 : vector<16x32xf32>
    %c0_114 = arith.constant 0 : index
    %c0_115 = arith.constant 0 : index
    %c0_116 = arith.constant 0 : index
    %283 = vector.load %arg18[%c0_114, %c0_115, %c0_116] : memref<3x1x32xf32, #tpu.memory_space<vmem>>, vector<1x1x32xf32>
    %284 = vector.shape_cast %283 : vector<1x1x32xf32> to vector<1x32xf32>
    %c0_117 = arith.constant 0 : index
    %c0_118 = arith.constant 0 : index
    %c0_119 = arith.constant 0 : index
    %285 = vector.load %arg19[%c0_117, %c0_118, %c0_119] : memref<3x1x32xf32, #tpu.memory_space<vmem>>, vector<1x1x32xf32>
    %286 = vector.shape_cast %285 : vector<1x1x32xf32> to vector<1x32xf32>
    %cst_120 = arith.constant dense<0.000000e+00> : vector<16xf32>
    %287 = vector.multi_reduction <add>, %282, %cst_120 [1] : vector<16x32xf32> to vector<16xf32>
    %288 = vector.shape_cast %287 : vector<16xf32> to vector<16x1xf32>
    %cst_121 = arith.constant 3.200000e+01 : f32
    %289 = vector.broadcast %cst_121 : f32 to vector<16x1xf32>
    %290 = arith.divf %288, %289 : vector<16x1xf32>
    %291 = vector.broadcast %290 : vector<16x1xf32> to vector<16x32xf32>
    %292 = arith.subf %282, %291 : vector<16x32xf32>
    %293 = arith.mulf %292, %292 : vector<16x32xf32>
    %cst_122 = arith.constant dense<0.000000e+00> : vector<16xf32>
    %294 = vector.multi_reduction <add>, %293, %cst_122 [1] : vector<16x32xf32> to vector<16xf32>
    %295 = vector.shape_cast %294 : vector<16xf32> to vector<16x1xf32>
    %cst_123 = arith.constant 3.200000e+01 : f32
    %296 = vector.broadcast %cst_123 : f32 to vector<16x1xf32>
    %297 = arith.divf %295, %296 : vector<16x1xf32>
    %298 = vector.broadcast %290 : vector<16x1xf32> to vector<16x32xf32>
    %299 = arith.subf %282, %298 : vector<16x32xf32>
    %cst_124 = arith.constant 9.99999974E-6 : f32
    %300 = vector.broadcast %cst_124 : f32 to vector<16x1xf32>
    %301 = arith.addf %297, %300 : vector<16x1xf32>
    %302 = math.rsqrt %301 : vector<16x1xf32>
    %303 = vector.broadcast %302 : vector<16x1xf32> to vector<16x32xf32>
    %304 = arith.mulf %299, %303 : vector<16x32xf32>
    %305 = vector.broadcast %284 : vector<1x32xf32> to vector<16x32xf32>
    %306 = arith.mulf %304, %305 : vector<16x32xf32>
    %307 = vector.broadcast %286 : vector<1x32xf32> to vector<16x32xf32>
    %308 = arith.addf %306, %307 : vector<16x32xf32>
    %c1_125 = arith.constant 1 : index
    %c0_126 = arith.constant 0 : index
    %c0_127 = arith.constant 0 : index
    %309 = vector.load %arg6[%c1_125, %c0_126, %c0_127] : memref<3x32x32xf32, #tpu.memory_space<vmem>>, vector<1x32x32xf32>
    %310 = vector.shape_cast %309 : vector<1x32x32xf32> to vector<32x32xf32>
    %cst_128 = arith.constant dense<0.000000e+00> : vector<16x32xf32>
    %311 = tpu.matmul %17, %310, %cst_128 {dimension_numbers = #tpu.dot_dimension_numbers<[1], [0], [0], [1], [0, 0, 1, 1], [], []>} : vector<16x32xf32>, vector<32x32xf32>, vector<16x32xf32> -> vector<16x32xf32>
    %c1_129 = arith.constant 1 : index
    %c0_130 = arith.constant 0 : index
    %c0_131 = arith.constant 0 : index
    %312 = vector.load %arg7[%c1_129, %c0_130, %c0_131] : memref<3x1x32xf32, #tpu.memory_space<vmem>>, vector<1x1x32xf32>
    %313 = vector.shape_cast %312 : vector<1x1x32xf32> to vector<1x32xf32>
    %314 = vector.broadcast %313 : vector<1x32xf32> to vector<16x32xf32>
    %315 = arith.addf %311, %314 : vector<16x32xf32>
    %c1_132 = arith.constant 1 : index
    %c0_133 = arith.constant 0 : index
    %c0_134 = arith.constant 0 : index
    %316 = vector.load %arg8[%c1_132, %c0_133, %c0_134] : memref<3x32x32xf32, #tpu.memory_space<vmem>>, vector<1x32x32xf32>
    %317 = vector.shape_cast %316 : vector<1x32x32xf32> to vector<32x32xf32>
    %cst_135 = arith.constant dense<0.000000e+00> : vector<16x32xf32>
    %318 = tpu.matmul %17, %317, %cst_135 {dimension_numbers = #tpu.dot_dimension_numbers<[1], [0], [0], [1], [0, 0, 1, 1], [], []>} : vector<16x32xf32>, vector<32x32xf32>, vector<16x32xf32> -> vector<16x32xf32>
    %c1_136 = arith.constant 1 : index
    %c0_137 = arith.constant 0 : index
    %c0_138 = arith.constant 0 : index
    %319 = vector.load %arg9[%c1_136, %c0_137, %c0_138] : memref<3x1x32xf32, #tpu.memory_space<vmem>>, vector<1x1x32xf32>
    %320 = vector.shape_cast %319 : vector<1x1x32xf32> to vector<1x32xf32>
    %321 = vector.broadcast %320 : vector<1x32xf32> to vector<16x32xf32>
    %322 = arith.addf %318, %321 : vector<16x32xf32>
    %323 = arith.extui %2 : vector<8x8xi1> to vector<8x8xi32>
    %324 = arith.sitofp %323 : vector<8x8xi32> to vector<8x8xf32>
    %325 = vector.extract_strided_slice %315 {offsets = [0, 0], sizes = [8, 16], strides = [1, 1]} : vector<16x32xf32> to vector<8x16xf32>
    %326 = vector.extract_strided_slice %322 {offsets = [0, 0], sizes = [8, 16], strides = [1, 1]} : vector<16x32xf32> to vector<8x16xf32>
    %cst_139 = arith.constant dense<0.000000e+00> : vector<8x8xf32>
    %327 = tpu.matmul %325, %325, %cst_139 {dimension_numbers = #tpu.dot_dimension_numbers<[1], [1], [0], [0], [0, 0, 1, 0], [], []>} : vector<8x16xf32>, vector<8x16xf32>, vector<8x8xf32> -> vector<8x8xf32>
    %cst_140 = arith.constant 2.500000e-01 : f32
    %328 = vector.broadcast %cst_140 : f32 to vector<8x8xf32>
    %329 = arith.mulf %327, %328 : vector<8x8xf32>
    %cst_141 = arith.constant -1.000000e+32 : f32
    %330 = vector.broadcast %cst_141 : f32 to vector<8x8xf32>
    %331 = arith.select %2, %329, %330 : vector<8x8xi1>, vector<8x8xf32>
    %cst_142 = arith.constant dense<0xFF800000> : vector<8xf32>
    %332 = vector.multi_reduction <maximumf>, %331, %cst_142 [1] : vector<8x8xf32> to vector<8xf32>
    %333 = vector.shape_cast %332 : vector<8xf32> to vector<8x1xf32>
    %334 = vector.broadcast %333 : vector<8x1xf32> to vector<8x8xf32>
    %335 = arith.subf %331, %334 : vector<8x8xf32>
    %336 = math.exp %335 : vector<8x8xf32>
    %cst_143 = arith.constant dense<0.000000e+00> : vector<8xf32>
    %337 = vector.multi_reduction <add>, %336, %cst_143 [1] : vector<8x8xf32> to vector<8xf32>
    %338 = vector.shape_cast %337 : vector<8xf32> to vector<8x1xf32>
    %339 = vector.broadcast %338 : vector<8x1xf32> to vector<8x8xf32>
    %340 = arith.divf %336, %339 : vector<8x8xf32>
    %341 = arith.mulf %340, %324 : vector<8x8xf32>
    %cst_144 = arith.constant dense<0.000000e+00> : vector<8x8xf32>
    %342 = tpu.matmul %341, %6, %cst_144 {dimension_numbers = #tpu.dot_dimension_numbers<[1], [0], [0], [1], [0, 0, 1, 1], [], []>} : vector<8x8xf32>, vector<8x8xf32>, vector<8x8xf32> -> vector<8x8xf32>
    %cst_145 = arith.constant dense<0.000000e+00> : vector<8xf32>
    %343 = vector.multi_reduction <add>, %341, %cst_145 [1] : vector<8x8xf32> to vector<8xf32>
    %344 = vector.shape_cast %343 : vector<8xf32> to vector<8x1xf32>
    %345 = vector.broadcast %344 : vector<8x1xf32> to vector<8x8xf32>
    %346 = arith.subf %345, %342 : vector<8x8xf32>
    %347 = arith.mulf %346, %9 : vector<8x8xf32>
    %cst_146 = arith.constant 0.000000e+00 : f32
    %348 = vector.broadcast %cst_146 : f32 to vector<8x8xf32>
    %349 = arith.maximumf %347, %348 : vector<8x8xf32>
    %350 = math.sqrt %349 : vector<8x8xf32>
    %c2 = arith.constant 2 : index
    %351 = memref.load %arg0[%c2] : memref<6xf32, #tpu.memory_space<smem>>
    %352 = vector.broadcast %351 : f32 to vector<8x8xf32>
    %353 = arith.mulf %350, %352 : vector<8x8xf32>
    %354 = math.exp %353 : vector<8x8xf32>
    %cst_147 = arith.constant 9.99999974E-6 : f32
    %cst_148 = arith.constant 1.000000e+05 : f32
    %355 = vector.broadcast %cst_147 : f32 to vector<8x8xf32>
    %356 = arith.maximumf %355, %354 : vector<8x8xf32>
    %357 = vector.broadcast %cst_148 : f32 to vector<8x8xf32>
    %358 = arith.minimumf %357, %356 : vector<8x8xf32>
    %359 = arith.mulf %329, %358 : vector<8x8xf32>
    %cst_149 = arith.constant -1.000000e+32 : f32
    %360 = vector.broadcast %cst_149 : f32 to vector<8x8xf32>
    %361 = arith.select %2, %359, %360 : vector<8x8xi1>, vector<8x8xf32>
    %cst_150 = arith.constant dense<0xFF800000> : vector<8xf32>
    %362 = vector.multi_reduction <maximumf>, %361, %cst_150 [1] : vector<8x8xf32> to vector<8xf32>
    %363 = vector.shape_cast %362 : vector<8xf32> to vector<8x1xf32>
    %364 = vector.broadcast %363 : vector<8x1xf32> to vector<8x8xf32>
    %365 = arith.subf %361, %364 : vector<8x8xf32>
    %366 = math.exp %365 : vector<8x8xf32>
    %cst_151 = arith.constant dense<0.000000e+00> : vector<8xf32>
    %367 = vector.multi_reduction <add>, %366, %cst_151 [1] : vector<8x8xf32> to vector<8xf32>
    %368 = vector.shape_cast %367 : vector<8xf32> to vector<8x1xf32>
    %369 = vector.broadcast %368 : vector<8x1xf32> to vector<8x8xf32>
    %370 = arith.divf %366, %369 : vector<8x8xf32>
    %cst_152 = arith.constant dense<0.000000e+00> : vector<8x16xf32>
    %371 = tpu.matmul %370, %326, %cst_152 {dimension_numbers = #tpu.dot_dimension_numbers<[1], [0], [0], [1], [0, 0, 1, 1], [], []>} : vector<8x8xf32>, vector<8x16xf32>, vector<8x16xf32> -> vector<8x16xf32>
    %372 = vector.extract_strided_slice %315 {offsets = [0, 16], sizes = [8, 16], strides = [1, 1]} : vector<16x32xf32> to vector<8x16xf32>
    %373 = vector.extract_strided_slice %322 {offsets = [0, 16], sizes = [8, 16], strides = [1, 1]} : vector<16x32xf32> to vector<8x16xf32>
    %cst_153 = arith.constant dense<0.000000e+00> : vector<8x8xf32>
    %374 = tpu.matmul %372, %372, %cst_153 {dimension_numbers = #tpu.dot_dimension_numbers<[1], [1], [0], [0], [0, 0, 1, 0], [], []>} : vector<8x16xf32>, vector<8x16xf32>, vector<8x8xf32> -> vector<8x8xf32>
    %cst_154 = arith.constant 2.500000e-01 : f32
    %375 = vector.broadcast %cst_154 : f32 to vector<8x8xf32>
    %376 = arith.mulf %374, %375 : vector<8x8xf32>
    %cst_155 = arith.constant -1.000000e+32 : f32
    %377 = vector.broadcast %cst_155 : f32 to vector<8x8xf32>
    %378 = arith.select %2, %376, %377 : vector<8x8xi1>, vector<8x8xf32>
    %cst_156 = arith.constant dense<0xFF800000> : vector<8xf32>
    %379 = vector.multi_reduction <maximumf>, %378, %cst_156 [1] : vector<8x8xf32> to vector<8xf32>
    %380 = vector.shape_cast %379 : vector<8xf32> to vector<8x1xf32>
    %381 = vector.broadcast %380 : vector<8x1xf32> to vector<8x8xf32>
    %382 = arith.subf %378, %381 : vector<8x8xf32>
    %383 = math.exp %382 : vector<8x8xf32>
    %cst_157 = arith.constant dense<0.000000e+00> : vector<8xf32>
    %384 = vector.multi_reduction <add>, %383, %cst_157 [1] : vector<8x8xf32> to vector<8xf32>
    %385 = vector.shape_cast %384 : vector<8xf32> to vector<8x1xf32>
    %386 = vector.broadcast %385 : vector<8x1xf32> to vector<8x8xf32>
    %387 = arith.divf %383, %386 : vector<8x8xf32>
    %388 = arith.mulf %387, %324 : vector<8x8xf32>
    %cst_158 = arith.constant dense<0.000000e+00> : vector<8x8xf32>
    %389 = tpu.matmul %388, %6, %cst_158 {dimension_numbers = #tpu.dot_dimension_numbers<[1], [0], [0], [1], [0, 0, 1, 1], [], []>} : vector<8x8xf32>, vector<8x8xf32>, vector<8x8xf32> -> vector<8x8xf32>
    %cst_159 = arith.constant dense<0.000000e+00> : vector<8xf32>
    %390 = vector.multi_reduction <add>, %388, %cst_159 [1] : vector<8x8xf32> to vector<8xf32>
    %391 = vector.shape_cast %390 : vector<8xf32> to vector<8x1xf32>
    %392 = vector.broadcast %391 : vector<8x1xf32> to vector<8x8xf32>
    %393 = arith.subf %392, %389 : vector<8x8xf32>
    %394 = arith.mulf %393, %9 : vector<8x8xf32>
    %cst_160 = arith.constant 0.000000e+00 : f32
    %395 = vector.broadcast %cst_160 : f32 to vector<8x8xf32>
    %396 = arith.maximumf %394, %395 : vector<8x8xf32>
    %397 = math.sqrt %396 : vector<8x8xf32>
    %c3 = arith.constant 3 : index
    %398 = memref.load %arg0[%c3] : memref<6xf32, #tpu.memory_space<smem>>
    %399 = vector.broadcast %398 : f32 to vector<8x8xf32>
    %400 = arith.mulf %397, %399 : vector<8x8xf32>
    %401 = math.exp %400 : vector<8x8xf32>
    %cst_161 = arith.constant 9.99999974E-6 : f32
    %cst_162 = arith.constant 1.000000e+05 : f32
    %402 = vector.broadcast %cst_161 : f32 to vector<8x8xf32>
    %403 = arith.maximumf %402, %401 : vector<8x8xf32>
    %404 = vector.broadcast %cst_162 : f32 to vector<8x8xf32>
    %405 = arith.minimumf %404, %403 : vector<8x8xf32>
    %406 = arith.mulf %376, %405 : vector<8x8xf32>
    %cst_163 = arith.constant -1.000000e+32 : f32
    %407 = vector.broadcast %cst_163 : f32 to vector<8x8xf32>
    %408 = arith.select %2, %406, %407 : vector<8x8xi1>, vector<8x8xf32>
    %cst_164 = arith.constant dense<0xFF800000> : vector<8xf32>
    %409 = vector.multi_reduction <maximumf>, %408, %cst_164 [1] : vector<8x8xf32> to vector<8xf32>
    %410 = vector.shape_cast %409 : vector<8xf32> to vector<8x1xf32>
    %411 = vector.broadcast %410 : vector<8x1xf32> to vector<8x8xf32>
    %412 = arith.subf %408, %411 : vector<8x8xf32>
    %413 = math.exp %412 : vector<8x8xf32>
    %cst_165 = arith.constant dense<0.000000e+00> : vector<8xf32>
    %414 = vector.multi_reduction <add>, %413, %cst_165 [1] : vector<8x8xf32> to vector<8xf32>
    %415 = vector.shape_cast %414 : vector<8xf32> to vector<8x1xf32>
    %416 = vector.broadcast %415 : vector<8x1xf32> to vector<8x8xf32>
    %417 = arith.divf %413, %416 : vector<8x8xf32>
    %cst_166 = arith.constant dense<0.000000e+00> : vector<8x16xf32>
    %418 = tpu.matmul %417, %373, %cst_166 {dimension_numbers = #tpu.dot_dimension_numbers<[1], [0], [0], [1], [0, 0, 1, 1], [], []>} : vector<8x8xf32>, vector<8x16xf32>, vector<8x16xf32> -> vector<8x16xf32>
    %419 = tpu.concatenate %371, %418 in 1 : vector<8x16xf32>, vector<8x16xf32> -> vector<8x32xf32>
    %420 = vector.extract_strided_slice %315 {offsets = [8, 0], sizes = [8, 16], strides = [1, 1]} : vector<16x32xf32> to vector<8x16xf32>
    %421 = vector.extract_strided_slice %322 {offsets = [8, 0], sizes = [8, 16], strides = [1, 1]} : vector<16x32xf32> to vector<8x16xf32>
    %cst_167 = arith.constant dense<0.000000e+00> : vector<8x8xf32>
    %422 = tpu.matmul %420, %420, %cst_167 {dimension_numbers = #tpu.dot_dimension_numbers<[1], [1], [0], [0], [0, 0, 1, 0], [], []>} : vector<8x16xf32>, vector<8x16xf32>, vector<8x8xf32> -> vector<8x8xf32>
    %cst_168 = arith.constant 2.500000e-01 : f32
    %423 = vector.broadcast %cst_168 : f32 to vector<8x8xf32>
    %424 = arith.mulf %422, %423 : vector<8x8xf32>
    %cst_169 = arith.constant -1.000000e+32 : f32
    %425 = vector.broadcast %cst_169 : f32 to vector<8x8xf32>
    %426 = arith.select %2, %424, %425 : vector<8x8xi1>, vector<8x8xf32>
    %cst_170 = arith.constant dense<0xFF800000> : vector<8xf32>
    %427 = vector.multi_reduction <maximumf>, %426, %cst_170 [1] : vector<8x8xf32> to vector<8xf32>
    %428 = vector.shape_cast %427 : vector<8xf32> to vector<8x1xf32>
    %429 = vector.broadcast %428 : vector<8x1xf32> to vector<8x8xf32>
    %430 = arith.subf %426, %429 : vector<8x8xf32>
    %431 = math.exp %430 : vector<8x8xf32>
    %cst_171 = arith.constant dense<0.000000e+00> : vector<8xf32>
    %432 = vector.multi_reduction <add>, %431, %cst_171 [1] : vector<8x8xf32> to vector<8xf32>
    %433 = vector.shape_cast %432 : vector<8xf32> to vector<8x1xf32>
    %434 = vector.broadcast %433 : vector<8x1xf32> to vector<8x8xf32>
    %435 = arith.divf %431, %434 : vector<8x8xf32>
    %436 = arith.mulf %435, %324 : vector<8x8xf32>
    %cst_172 = arith.constant dense<0.000000e+00> : vector<8x8xf32>
    %437 = tpu.matmul %436, %6, %cst_172 {dimension_numbers = #tpu.dot_dimension_numbers<[1], [0], [0], [1], [0, 0, 1, 1], [], []>} : vector<8x8xf32>, vector<8x8xf32>, vector<8x8xf32> -> vector<8x8xf32>
    %cst_173 = arith.constant dense<0.000000e+00> : vector<8xf32>
    %438 = vector.multi_reduction <add>, %436, %cst_173 [1] : vector<8x8xf32> to vector<8xf32>
    %439 = vector.shape_cast %438 : vector<8xf32> to vector<8x1xf32>
    %440 = vector.broadcast %439 : vector<8x1xf32> to vector<8x8xf32>
    %441 = arith.subf %440, %437 : vector<8x8xf32>
    %442 = arith.mulf %441, %9 : vector<8x8xf32>
    %cst_174 = arith.constant 0.000000e+00 : f32
    %443 = vector.broadcast %cst_174 : f32 to vector<8x8xf32>
    %444 = arith.maximumf %442, %443 : vector<8x8xf32>
    %445 = math.sqrt %444 : vector<8x8xf32>
    %c2_175 = arith.constant 2 : index
    %446 = memref.load %arg0[%c2_175] : memref<6xf32, #tpu.memory_space<smem>>
    %447 = vector.broadcast %446 : f32 to vector<8x8xf32>
    %448 = arith.mulf %445, %447 : vector<8x8xf32>
    %449 = math.exp %448 : vector<8x8xf32>
    %cst_176 = arith.constant 9.99999974E-6 : f32
    %cst_177 = arith.constant 1.000000e+05 : f32
    %450 = vector.broadcast %cst_176 : f32 to vector<8x8xf32>
    %451 = arith.maximumf %450, %449 : vector<8x8xf32>
    %452 = vector.broadcast %cst_177 : f32 to vector<8x8xf32>
    %453 = arith.minimumf %452, %451 : vector<8x8xf32>
    %454 = arith.mulf %424, %453 : vector<8x8xf32>
    %cst_178 = arith.constant -1.000000e+32 : f32
    %455 = vector.broadcast %cst_178 : f32 to vector<8x8xf32>
    %456 = arith.select %2, %454, %455 : vector<8x8xi1>, vector<8x8xf32>
    %cst_179 = arith.constant dense<0xFF800000> : vector<8xf32>
    %457 = vector.multi_reduction <maximumf>, %456, %cst_179 [1] : vector<8x8xf32> to vector<8xf32>
    %458 = vector.shape_cast %457 : vector<8xf32> to vector<8x1xf32>
    %459 = vector.broadcast %458 : vector<8x1xf32> to vector<8x8xf32>
    %460 = arith.subf %456, %459 : vector<8x8xf32>
    %461 = math.exp %460 : vector<8x8xf32>
    %cst_180 = arith.constant dense<0.000000e+00> : vector<8xf32>
    %462 = vector.multi_reduction <add>, %461, %cst_180 [1] : vector<8x8xf32> to vector<8xf32>
    %463 = vector.shape_cast %462 : vector<8xf32> to vector<8x1xf32>
    %464 = vector.broadcast %463 : vector<8x1xf32> to vector<8x8xf32>
    %465 = arith.divf %461, %464 : vector<8x8xf32>
    %cst_181 = arith.constant dense<0.000000e+00> : vector<8x16xf32>
    %466 = tpu.matmul %465, %421, %cst_181 {dimension_numbers = #tpu.dot_dimension_numbers<[1], [0], [0], [1], [0, 0, 1, 1], [], []>} : vector<8x8xf32>, vector<8x16xf32>, vector<8x16xf32> -> vector<8x16xf32>
    %467 = vector.extract_strided_slice %315 {offsets = [8, 16], sizes = [8, 16], strides = [1, 1]} : vector<16x32xf32> to vector<8x16xf32>
    %468 = vector.extract_strided_slice %322 {offsets = [8, 16], sizes = [8, 16], strides = [1, 1]} : vector<16x32xf32> to vector<8x16xf32>
    %cst_182 = arith.constant dense<0.000000e+00> : vector<8x8xf32>
    %469 = tpu.matmul %467, %467, %cst_182 {dimension_numbers = #tpu.dot_dimension_numbers<[1], [1], [0], [0], [0, 0, 1, 0], [], []>} : vector<8x16xf32>, vector<8x16xf32>, vector<8x8xf32> -> vector<8x8xf32>
    %cst_183 = arith.constant 2.500000e-01 : f32
    %470 = vector.broadcast %cst_183 : f32 to vector<8x8xf32>
    %471 = arith.mulf %469, %470 : vector<8x8xf32>
    %cst_184 = arith.constant -1.000000e+32 : f32
    %472 = vector.broadcast %cst_184 : f32 to vector<8x8xf32>
    %473 = arith.select %2, %471, %472 : vector<8x8xi1>, vector<8x8xf32>
    %cst_185 = arith.constant dense<0xFF800000> : vector<8xf32>
    %474 = vector.multi_reduction <maximumf>, %473, %cst_185 [1] : vector<8x8xf32> to vector<8xf32>
    %475 = vector.shape_cast %474 : vector<8xf32> to vector<8x1xf32>
    %476 = vector.broadcast %475 : vector<8x1xf32> to vector<8x8xf32>
    %477 = arith.subf %473, %476 : vector<8x8xf32>
    %478 = math.exp %477 : vector<8x8xf32>
    %cst_186 = arith.constant dense<0.000000e+00> : vector<8xf32>
    %479 = vector.multi_reduction <add>, %478, %cst_186 [1] : vector<8x8xf32> to vector<8xf32>
    %480 = vector.shape_cast %479 : vector<8xf32> to vector<8x1xf32>
    %481 = vector.broadcast %480 : vector<8x1xf32> to vector<8x8xf32>
    %482 = arith.divf %478, %481 : vector<8x8xf32>
    %483 = arith.mulf %482, %324 : vector<8x8xf32>
    %cst_187 = arith.constant dense<0.000000e+00> : vector<8x8xf32>
    %484 = tpu.matmul %483, %6, %cst_187 {dimension_numbers = #tpu.dot_dimension_numbers<[1], [0], [0], [1], [0, 0, 1, 1], [], []>} : vector<8x8xf32>, vector<8x8xf32>, vector<8x8xf32> -> vector<8x8xf32>
    %cst_188 = arith.constant dense<0.000000e+00> : vector<8xf32>
    %485 = vector.multi_reduction <add>, %483, %cst_188 [1] : vector<8x8xf32> to vector<8xf32>
    %486 = vector.shape_cast %485 : vector<8xf32> to vector<8x1xf32>
    %487 = vector.broadcast %486 : vector<8x1xf32> to vector<8x8xf32>
    %488 = arith.subf %487, %484 : vector<8x8xf32>
    %489 = arith.mulf %488, %9 : vector<8x8xf32>
    %cst_189 = arith.constant 0.000000e+00 : f32
    %490 = vector.broadcast %cst_189 : f32 to vector<8x8xf32>
    %491 = arith.maximumf %489, %490 : vector<8x8xf32>
    %492 = math.sqrt %491 : vector<8x8xf32>
    %c3_190 = arith.constant 3 : index
    %493 = memref.load %arg0[%c3_190] : memref<6xf32, #tpu.memory_space<smem>>
    %494 = vector.broadcast %493 : f32 to vector<8x8xf32>
    %495 = arith.mulf %492, %494 : vector<8x8xf32>
    %496 = math.exp %495 : vector<8x8xf32>
    %cst_191 = arith.constant 9.99999974E-6 : f32
    %cst_192 = arith.constant 1.000000e+05 : f32
    %497 = vector.broadcast %cst_191 : f32 to vector<8x8xf32>
    %498 = arith.maximumf %497, %496 : vector<8x8xf32>
    %499 = vector.broadcast %cst_192 : f32 to vector<8x8xf32>
    %500 = arith.minimumf %499, %498 : vector<8x8xf32>
    %501 = arith.mulf %471, %500 : vector<8x8xf32>
    %cst_193 = arith.constant -1.000000e+32 : f32
    %502 = vector.broadcast %cst_193 : f32 to vector<8x8xf32>
    %503 = arith.select %2, %501, %502 : vector<8x8xi1>, vector<8x8xf32>
    %cst_194 = arith.constant dense<0xFF800000> : vector<8xf32>
    %504 = vector.multi_reduction <maximumf>, %503, %cst_194 [1] : vector<8x8xf32> to vector<8xf32>
    %505 = vector.shape_cast %504 : vector<8xf32> to vector<8x1xf32>
    %506 = vector.broadcast %505 : vector<8x1xf32> to vector<8x8xf32>
    %507 = arith.subf %503, %506 : vector<8x8xf32>
    %508 = math.exp %507 : vector<8x8xf32>
    %cst_195 = arith.constant dense<0.000000e+00> : vector<8xf32>
    %509 = vector.multi_reduction <add>, %508, %cst_195 [1] : vector<8x8xf32> to vector<8xf32>
    %510 = vector.shape_cast %509 : vector<8xf32> to vector<8x1xf32>
    %511 = vector.broadcast %510 : vector<8x1xf32> to vector<8x8xf32>
    %512 = arith.divf %508, %511 : vector<8x8xf32>
    %cst_196 = arith.constant dense<0.000000e+00> : vector<8x16xf32>
    %513 = tpu.matmul %512, %468, %cst_196 {dimension_numbers = #tpu.dot_dimension_numbers<[1], [0], [0], [1], [0, 0, 1, 1], [], []>} : vector<8x8xf32>, vector<8x16xf32>, vector<8x16xf32> -> vector<8x16xf32>
    %514 = tpu.concatenate %466, %513 in 1 : vector<8x16xf32>, vector<8x16xf32> -> vector<8x32xf32>
    %515 = tpu.concatenate %419, %514 in 0 : vector<8x32xf32>, vector<8x32xf32> -> vector<16x32xf32>
    %c1_197 = arith.constant 1 : index
    %c0_198 = arith.constant 0 : index
    %c0_199 = arith.constant 0 : index
    %516 = vector.load %arg10[%c1_197, %c0_198, %c0_199] : memref<3x32x32xf32, #tpu.memory_space<vmem>>, vector<1x32x32xf32>
    %517 = vector.shape_cast %516 : vector<1x32x32xf32> to vector<32x32xf32>
    %cst_200 = arith.constant dense<0.000000e+00> : vector<16x32xf32>
    %518 = tpu.matmul %515, %517, %cst_200 {dimension_numbers = #tpu.dot_dimension_numbers<[1], [0], [0], [1], [0, 0, 1, 1], [], []>} : vector<16x32xf32>, vector<32x32xf32>, vector<16x32xf32> -> vector<16x32xf32>
    %c1_201 = arith.constant 1 : index
    %c0_202 = arith.constant 0 : index
    %c0_203 = arith.constant 0 : index
    %519 = vector.load %arg11[%c1_201, %c0_202, %c0_203] : memref<3x1x32xf32, #tpu.memory_space<vmem>>, vector<1x1x32xf32>
    %520 = vector.shape_cast %519 : vector<1x1x32xf32> to vector<1x32xf32>
    %521 = vector.broadcast %520 : vector<1x32xf32> to vector<16x32xf32>
    %522 = arith.addf %518, %521 : vector<16x32xf32>
    %523 = arith.addf %522, %17 : vector<16x32xf32>
    %c1_204 = arith.constant 1 : index
    %c0_205 = arith.constant 0 : index
    %c0_206 = arith.constant 0 : index
    %524 = vector.load %arg12[%c1_204, %c0_205, %c0_206] : memref<3x1x32xf32, #tpu.memory_space<vmem>>, vector<1x1x32xf32>
    %525 = vector.shape_cast %524 : vector<1x1x32xf32> to vector<1x32xf32>
    %c1_207 = arith.constant 1 : index
    %c0_208 = arith.constant 0 : index
    %c0_209 = arith.constant 0 : index
    %526 = vector.load %arg13[%c1_207, %c0_208, %c0_209] : memref<3x1x32xf32, #tpu.memory_space<vmem>>, vector<1x1x32xf32>
    %527 = vector.shape_cast %526 : vector<1x1x32xf32> to vector<1x32xf32>
    %cst_210 = arith.constant dense<0.000000e+00> : vector<16xf32>
    %528 = vector.multi_reduction <add>, %523, %cst_210 [1] : vector<16x32xf32> to vector<16xf32>
    %529 = vector.shape_cast %528 : vector<16xf32> to vector<16x1xf32>
    %cst_211 = arith.constant 3.200000e+01 : f32
    %530 = vector.broadcast %cst_211 : f32 to vector<16x1xf32>
    %531 = arith.divf %529, %530 : vector<16x1xf32>
    %532 = vector.broadcast %531 : vector<16x1xf32> to vector<16x32xf32>
    %533 = arith.subf %523, %532 : vector<16x32xf32>
    %534 = arith.mulf %533, %533 : vector<16x32xf32>
    %cst_212 = arith.constant dense<0.000000e+00> : vector<16xf32>
    %535 = vector.multi_reduction <add>, %534, %cst_212 [1] : vector<16x32xf32> to vector<16xf32>
    %536 = vector.shape_cast %535 : vector<16xf32> to vector<16x1xf32>
    %cst_213 = arith.constant 3.200000e+01 : f32
    %537 = vector.broadcast %cst_213 : f32 to vector<16x1xf32>
    %538 = arith.divf %536, %537 : vector<16x1xf32>
    %539 = vector.broadcast %531 : vector<16x1xf32> to vector<16x32xf32>
    %540 = arith.subf %523, %539 : vector<16x32xf32>
    %cst_214 = arith.constant 9.99999974E-6 : f32
    %541 = vector.broadcast %cst_214 : f32 to vector<16x1xf32>
    %542 = arith.addf %538, %541 : vector<16x1xf32>
    %543 = math.rsqrt %542 : vector<16x1xf32>
    %544 = vector.broadcast %543 : vector<16x1xf32> to vector<16x32xf32>
    %545 = arith.mulf %540, %544 : vector<16x32xf32>
    %546 = vector.broadcast %525 : vector<1x32xf32> to vector<16x32xf32>
    %547 = arith.mulf %545, %546 : vector<16x32xf32>
    %548 = vector.broadcast %527 : vector<1x32xf32> to vector<16x32xf32>
    %549 = arith.addf %547, %548 : vector<16x32xf32>
    %c2_215 = arith.constant 2 : index
    %c0_216 = arith.constant 0 : index
    %c0_217 = arith.constant 0 : index
    %550 = vector.load %arg6[%c2_215, %c0_216, %c0_217] : memref<3x32x32xf32, #tpu.memory_space<vmem>>, vector<1x32x32xf32>
    %551 = vector.shape_cast %550 : vector<1x32x32xf32> to vector<32x32xf32>
    %cst_218 = arith.constant dense<0.000000e+00> : vector<16x32xf32>
    %552 = tpu.matmul %549, %551, %cst_218 {dimension_numbers = #tpu.dot_dimension_numbers<[1], [0], [0], [1], [0, 0, 1, 1], [], []>} : vector<16x32xf32>, vector<32x32xf32>, vector<16x32xf32> -> vector<16x32xf32>
    %c2_219 = arith.constant 2 : index
    %c0_220 = arith.constant 0 : index
    %c0_221 = arith.constant 0 : index
    %553 = vector.load %arg7[%c2_219, %c0_220, %c0_221] : memref<3x1x32xf32, #tpu.memory_space<vmem>>, vector<1x1x32xf32>
    %554 = vector.shape_cast %553 : vector<1x1x32xf32> to vector<1x32xf32>
    %555 = vector.broadcast %554 : vector<1x32xf32> to vector<16x32xf32>
    %556 = arith.addf %552, %555 : vector<16x32xf32>
    %c2_222 = arith.constant 2 : index
    %c0_223 = arith.constant 0 : index
    %c0_224 = arith.constant 0 : index
    %557 = vector.load %arg8[%c2_222, %c0_223, %c0_224] : memref<3x32x32xf32, #tpu.memory_space<vmem>>, vector<1x32x32xf32>
    %558 = vector.shape_cast %557 : vector<1x32x32xf32> to vector<32x32xf32>
    %cst_225 = arith.constant dense<0.000000e+00> : vector<16x32xf32>
    %559 = tpu.matmul %308, %558, %cst_225 {dimension_numbers = #tpu.dot_dimension_numbers<[1], [0], [0], [1], [0, 0, 1, 1], [], []>} : vector<16x32xf32>, vector<32x32xf32>, vector<16x32xf32> -> vector<16x32xf32>
    %c2_226 = arith.constant 2 : index
    %c0_227 = arith.constant 0 : index
    %c0_228 = arith.constant 0 : index
    %560 = vector.load %arg9[%c2_226, %c0_227, %c0_228] : memref<3x1x32xf32, #tpu.memory_space<vmem>>, vector<1x1x32xf32>
    %561 = vector.shape_cast %560 : vector<1x1x32xf32> to vector<1x32xf32>
    %562 = vector.broadcast %561 : vector<1x32xf32> to vector<16x32xf32>
    %563 = arith.addf %559, %562 : vector<16x32xf32>
    %564 = arith.extui %3 : vector<8x8xi1> to vector<8x8xi32>
    %565 = arith.sitofp %564 : vector<8x8xi32> to vector<8x8xf32>
    %566 = vector.extract_strided_slice %556 {offsets = [0, 0], sizes = [8, 16], strides = [1, 1]} : vector<16x32xf32> to vector<8x16xf32>
    %567 = vector.extract_strided_slice %563 {offsets = [0, 0], sizes = [8, 16], strides = [1, 1]} : vector<16x32xf32> to vector<8x16xf32>
    %cst_229 = arith.constant dense<0.000000e+00> : vector<8x8xf32>
    %568 = tpu.matmul %566, %566, %cst_229 {dimension_numbers = #tpu.dot_dimension_numbers<[1], [1], [0], [0], [0, 0, 1, 0], [], []>} : vector<8x16xf32>, vector<8x16xf32>, vector<8x8xf32> -> vector<8x8xf32>
    %cst_230 = arith.constant 2.500000e-01 : f32
    %569 = vector.broadcast %cst_230 : f32 to vector<8x8xf32>
    %570 = arith.mulf %568, %569 : vector<8x8xf32>
    %cst_231 = arith.constant -1.000000e+32 : f32
    %571 = vector.broadcast %cst_231 : f32 to vector<8x8xf32>
    %572 = arith.select %3, %570, %571 : vector<8x8xi1>, vector<8x8xf32>
    %cst_232 = arith.constant dense<0xFF800000> : vector<8xf32>
    %573 = vector.multi_reduction <maximumf>, %572, %cst_232 [1] : vector<8x8xf32> to vector<8xf32>
    %574 = vector.shape_cast %573 : vector<8xf32> to vector<8x1xf32>
    %575 = vector.broadcast %574 : vector<8x1xf32> to vector<8x8xf32>
    %576 = arith.subf %572, %575 : vector<8x8xf32>
    %577 = math.exp %576 : vector<8x8xf32>
    %cst_233 = arith.constant dense<0.000000e+00> : vector<8xf32>
    %578 = vector.multi_reduction <add>, %577, %cst_233 [1] : vector<8x8xf32> to vector<8xf32>
    %579 = vector.shape_cast %578 : vector<8xf32> to vector<8x1xf32>
    %580 = vector.broadcast %579 : vector<8x1xf32> to vector<8x8xf32>
    %581 = arith.divf %577, %580 : vector<8x8xf32>
    %582 = arith.mulf %581, %565 : vector<8x8xf32>
    %cst_234 = arith.constant dense<0.000000e+00> : vector<8x8xf32>
    %583 = tpu.matmul %582, %6, %cst_234 {dimension_numbers = #tpu.dot_dimension_numbers<[1], [0], [0], [1], [0, 0, 1, 1], [], []>} : vector<8x8xf32>, vector<8x8xf32>, vector<8x8xf32> -> vector<8x8xf32>
    %cst_235 = arith.constant dense<0.000000e+00> : vector<8xf32>
    %584 = vector.multi_reduction <add>, %582, %cst_235 [1] : vector<8x8xf32> to vector<8xf32>
    %585 = vector.shape_cast %584 : vector<8xf32> to vector<8x1xf32>
    %586 = vector.broadcast %585 : vector<8x1xf32> to vector<8x8xf32>
    %587 = arith.subf %586, %583 : vector<8x8xf32>
    %588 = arith.mulf %587, %9 : vector<8x8xf32>
    %cst_236 = arith.constant 0.000000e+00 : f32
    %589 = vector.broadcast %cst_236 : f32 to vector<8x8xf32>
    %590 = arith.maximumf %588, %589 : vector<8x8xf32>
    %591 = math.sqrt %590 : vector<8x8xf32>
    %c4 = arith.constant 4 : index
    %592 = memref.load %arg0[%c4] : memref<6xf32, #tpu.memory_space<smem>>
    %593 = vector.broadcast %592 : f32 to vector<8x8xf32>
    %594 = arith.mulf %591, %593 : vector<8x8xf32>
    %595 = math.exp %594 : vector<8x8xf32>
    %cst_237 = arith.constant 9.99999974E-6 : f32
    %cst_238 = arith.constant 1.000000e+05 : f32
    %596 = vector.broadcast %cst_237 : f32 to vector<8x8xf32>
    %597 = arith.maximumf %596, %595 : vector<8x8xf32>
    %598 = vector.broadcast %cst_238 : f32 to vector<8x8xf32>
    %599 = arith.minimumf %598, %597 : vector<8x8xf32>
    %600 = arith.mulf %570, %599 : vector<8x8xf32>
    %cst_239 = arith.constant -1.000000e+32 : f32
    %601 = vector.broadcast %cst_239 : f32 to vector<8x8xf32>
    %602 = arith.select %3, %600, %601 : vector<8x8xi1>, vector<8x8xf32>
    %cst_240 = arith.constant dense<0xFF800000> : vector<8xf32>
    %603 = vector.multi_reduction <maximumf>, %602, %cst_240 [1] : vector<8x8xf32> to vector<8xf32>
    %604 = vector.shape_cast %603 : vector<8xf32> to vector<8x1xf32>
    %605 = vector.broadcast %604 : vector<8x1xf32> to vector<8x8xf32>
    %606 = arith.subf %602, %605 : vector<8x8xf32>
    %607 = math.exp %606 : vector<8x8xf32>
    %cst_241 = arith.constant dense<0.000000e+00> : vector<8xf32>
    %608 = vector.multi_reduction <add>, %607, %cst_241 [1] : vector<8x8xf32> to vector<8xf32>
    %609 = vector.shape_cast %608 : vector<8xf32> to vector<8x1xf32>
    %610 = vector.broadcast %609 : vector<8x1xf32> to vector<8x8xf32>
    %611 = arith.divf %607, %610 : vector<8x8xf32>
    %cst_242 = arith.constant 0.000000e+00 : f32
    %612 = vector.broadcast %cst_242 : f32 to vector<8x8xf32>
    %613 = arith.select %11, %612, %611 : vector<8x8xi1>, vector<8x8xf32>
    %cst_243 = arith.constant dense<0.000000e+00> : vector<8x16xf32>
    %614 = tpu.matmul %613, %567, %cst_243 {dimension_numbers = #tpu.dot_dimension_numbers<[1], [0], [0], [1], [0, 0, 1, 1], [], []>} : vector<8x8xf32>, vector<8x16xf32>, vector<8x16xf32> -> vector<8x16xf32>
    %615 = vector.extract_strided_slice %556 {offsets = [0, 16], sizes = [8, 16], strides = [1, 1]} : vector<16x32xf32> to vector<8x16xf32>
    %616 = vector.extract_strided_slice %563 {offsets = [0, 16], sizes = [8, 16], strides = [1, 1]} : vector<16x32xf32> to vector<8x16xf32>
    %cst_244 = arith.constant dense<0.000000e+00> : vector<8x8xf32>
    %617 = tpu.matmul %615, %615, %cst_244 {dimension_numbers = #tpu.dot_dimension_numbers<[1], [1], [0], [0], [0, 0, 1, 0], [], []>} : vector<8x16xf32>, vector<8x16xf32>, vector<8x8xf32> -> vector<8x8xf32>
    %cst_245 = arith.constant 2.500000e-01 : f32
    %618 = vector.broadcast %cst_245 : f32 to vector<8x8xf32>
    %619 = arith.mulf %617, %618 : vector<8x8xf32>
    %cst_246 = arith.constant -1.000000e+32 : f32
    %620 = vector.broadcast %cst_246 : f32 to vector<8x8xf32>
    %621 = arith.select %3, %619, %620 : vector<8x8xi1>, vector<8x8xf32>
    %cst_247 = arith.constant dense<0xFF800000> : vector<8xf32>
    %622 = vector.multi_reduction <maximumf>, %621, %cst_247 [1] : vector<8x8xf32> to vector<8xf32>
    %623 = vector.shape_cast %622 : vector<8xf32> to vector<8x1xf32>
    %624 = vector.broadcast %623 : vector<8x1xf32> to vector<8x8xf32>
    %625 = arith.subf %621, %624 : vector<8x8xf32>
    %626 = math.exp %625 : vector<8x8xf32>
    %cst_248 = arith.constant dense<0.000000e+00> : vector<8xf32>
    %627 = vector.multi_reduction <add>, %626, %cst_248 [1] : vector<8x8xf32> to vector<8xf32>
    %628 = vector.shape_cast %627 : vector<8xf32> to vector<8x1xf32>
    %629 = vector.broadcast %628 : vector<8x1xf32> to vector<8x8xf32>
    %630 = arith.divf %626, %629 : vector<8x8xf32>
    %631 = arith.mulf %630, %565 : vector<8x8xf32>
    %cst_249 = arith.constant dense<0.000000e+00> : vector<8x8xf32>
    %632 = tpu.matmul %631, %6, %cst_249 {dimension_numbers = #tpu.dot_dimension_numbers<[1], [0], [0], [1], [0, 0, 1, 1], [], []>} : vector<8x8xf32>, vector<8x8xf32>, vector<8x8xf32> -> vector<8x8xf32>
    %cst_250 = arith.constant dense<0.000000e+00> : vector<8xf32>
    %633 = vector.multi_reduction <add>, %631, %cst_250 [1] : vector<8x8xf32> to vector<8xf32>
    %634 = vector.shape_cast %633 : vector<8xf32> to vector<8x1xf32>
    %635 = vector.broadcast %634 : vector<8x1xf32> to vector<8x8xf32>
    %636 = arith.subf %635, %632 : vector<8x8xf32>
    %637 = arith.mulf %636, %9 : vector<8x8xf32>
    %cst_251 = arith.constant 0.000000e+00 : f32
    %638 = vector.broadcast %cst_251 : f32 to vector<8x8xf32>
    %639 = arith.maximumf %637, %638 : vector<8x8xf32>
    %640 = math.sqrt %639 : vector<8x8xf32>
    %c5 = arith.constant 5 : index
    %641 = memref.load %arg0[%c5] : memref<6xf32, #tpu.memory_space<smem>>
    %642 = vector.broadcast %641 : f32 to vector<8x8xf32>
    %643 = arith.mulf %640, %642 : vector<8x8xf32>
    %644 = math.exp %643 : vector<8x8xf32>
    %cst_252 = arith.constant 9.99999974E-6 : f32
    %cst_253 = arith.constant 1.000000e+05 : f32
    %645 = vector.broadcast %cst_252 : f32 to vector<8x8xf32>
    %646 = arith.maximumf %645, %644 : vector<8x8xf32>
    %647 = vector.broadcast %cst_253 : f32 to vector<8x8xf32>
    %648 = arith.minimumf %647, %646 : vector<8x8xf32>
    %649 = arith.mulf %619, %648 : vector<8x8xf32>
    %cst_254 = arith.constant -1.000000e+32 : f32
    %650 = vector.broadcast %cst_254 : f32 to vector<8x8xf32>
    %651 = arith.select %3, %649, %650 : vector<8x8xi1>, vector<8x8xf32>
    %cst_255 = arith.constant dense<0xFF800000> : vector<8xf32>
    %652 = vector.multi_reduction <maximumf>, %651, %cst_255 [1] : vector<8x8xf32> to vector<8xf32>
    %653 = vector.shape_cast %652 : vector<8xf32> to vector<8x1xf32>
    %654 = vector.broadcast %653 : vector<8x1xf32> to vector<8x8xf32>
    %655 = arith.subf %651, %654 : vector<8x8xf32>
    %656 = math.exp %655 : vector<8x8xf32>
    %cst_256 = arith.constant dense<0.000000e+00> : vector<8xf32>
    %657 = vector.multi_reduction <add>, %656, %cst_256 [1] : vector<8x8xf32> to vector<8xf32>
    %658 = vector.shape_cast %657 : vector<8xf32> to vector<8x1xf32>
    %659 = vector.broadcast %658 : vector<8x1xf32> to vector<8x8xf32>
    %660 = arith.divf %656, %659 : vector<8x8xf32>
    %cst_257 = arith.constant 0.000000e+00 : f32
    %661 = vector.broadcast %cst_257 : f32 to vector<8x8xf32>
    %662 = arith.select %11, %661, %660 : vector<8x8xi1>, vector<8x8xf32>
    %cst_258 = arith.constant dense<0.000000e+00> : vector<8x16xf32>
    %663 = tpu.matmul %662, %616, %cst_258 {dimension_numbers = #tpu.dot_dimension_numbers<[1], [0], [0], [1], [0, 0, 1, 1], [], []>} : vector<8x8xf32>, vector<8x16xf32>, vector<8x16xf32> -> vector<8x16xf32>
    %664 = tpu.concatenate %614, %663 in 1 : vector<8x16xf32>, vector<8x16xf32> -> vector<8x32xf32>
    %665 = vector.extract_strided_slice %556 {offsets = [8, 0], sizes = [8, 16], strides = [1, 1]} : vector<16x32xf32> to vector<8x16xf32>
    %666 = vector.extract_strided_slice %563 {offsets = [8, 0], sizes = [8, 16], strides = [1, 1]} : vector<16x32xf32> to vector<8x16xf32>
    %cst_259 = arith.constant dense<0.000000e+00> : vector<8x8xf32>
    %667 = tpu.matmul %665, %665, %cst_259 {dimension_numbers = #tpu.dot_dimension_numbers<[1], [1], [0], [0], [0, 0, 1, 0], [], []>} : vector<8x16xf32>, vector<8x16xf32>, vector<8x8xf32> -> vector<8x8xf32>
    %cst_260 = arith.constant 2.500000e-01 : f32
    %668 = vector.broadcast %cst_260 : f32 to vector<8x8xf32>
    %669 = arith.mulf %667, %668 : vector<8x8xf32>
    %cst_261 = arith.constant -1.000000e+32 : f32
    %670 = vector.broadcast %cst_261 : f32 to vector<8x8xf32>
    %671 = arith.select %3, %669, %670 : vector<8x8xi1>, vector<8x8xf32>
    %cst_262 = arith.constant dense<0xFF800000> : vector<8xf32>
    %672 = vector.multi_reduction <maximumf>, %671, %cst_262 [1] : vector<8x8xf32> to vector<8xf32>
    %673 = vector.shape_cast %672 : vector<8xf32> to vector<8x1xf32>
    %674 = vector.broadcast %673 : vector<8x1xf32> to vector<8x8xf32>
    %675 = arith.subf %671, %674 : vector<8x8xf32>
    %676 = math.exp %675 : vector<8x8xf32>
    %cst_263 = arith.constant dense<0.000000e+00> : vector<8xf32>
    %677 = vector.multi_reduction <add>, %676, %cst_263 [1] : vector<8x8xf32> to vector<8xf32>
    %678 = vector.shape_cast %677 : vector<8xf32> to vector<8x1xf32>
    %679 = vector.broadcast %678 : vector<8x1xf32> to vector<8x8xf32>
    %680 = arith.divf %676, %679 : vector<8x8xf32>
    %681 = arith.mulf %680, %565 : vector<8x8xf32>
    %cst_264 = arith.constant dense<0.000000e+00> : vector<8x8xf32>
    %682 = tpu.matmul %681, %6, %cst_264 {dimension_numbers = #tpu.dot_dimension_numbers<[1], [0], [0], [1], [0, 0, 1, 1], [], []>} : vector<8x8xf32>, vector<8x8xf32>, vector<8x8xf32> -> vector<8x8xf32>
    %cst_265 = arith.constant dense<0.000000e+00> : vector<8xf32>
    %683 = vector.multi_reduction <add>, %681, %cst_265 [1] : vector<8x8xf32> to vector<8xf32>
    %684 = vector.shape_cast %683 : vector<8xf32> to vector<8x1xf32>
    %685 = vector.broadcast %684 : vector<8x1xf32> to vector<8x8xf32>
    %686 = arith.subf %685, %682 : vector<8x8xf32>
    %687 = arith.mulf %686, %9 : vector<8x8xf32>
    %cst_266 = arith.constant 0.000000e+00 : f32
    %688 = vector.broadcast %cst_266 : f32 to vector<8x8xf32>
    %689 = arith.maximumf %687, %688 : vector<8x8xf32>
    %690 = math.sqrt %689 : vector<8x8xf32>
    %c4_267 = arith.constant 4 : index
    %691 = memref.load %arg0[%c4_267] : memref<6xf32, #tpu.memory_space<smem>>
    %692 = vector.broadcast %691 : f32 to vector<8x8xf32>
    %693 = arith.mulf %690, %692 : vector<8x8xf32>
    %694 = math.exp %693 : vector<8x8xf32>
    %cst_268 = arith.constant 9.99999974E-6 : f32
    %cst_269 = arith.constant 1.000000e+05 : f32
    %695 = vector.broadcast %cst_268 : f32 to vector<8x8xf32>
    %696 = arith.maximumf %695, %694 : vector<8x8xf32>
    %697 = vector.broadcast %cst_269 : f32 to vector<8x8xf32>
    %698 = arith.minimumf %697, %696 : vector<8x8xf32>
    %699 = arith.mulf %669, %698 : vector<8x8xf32>
    %cst_270 = arith.constant -1.000000e+32 : f32
    %700 = vector.broadcast %cst_270 : f32 to vector<8x8xf32>
    %701 = arith.select %3, %699, %700 : vector<8x8xi1>, vector<8x8xf32>
    %cst_271 = arith.constant dense<0xFF800000> : vector<8xf32>
    %702 = vector.multi_reduction <maximumf>, %701, %cst_271 [1] : vector<8x8xf32> to vector<8xf32>
    %703 = vector.shape_cast %702 : vector<8xf32> to vector<8x1xf32>
    %704 = vector.broadcast %703 : vector<8x1xf32> to vector<8x8xf32>
    %705 = arith.subf %701, %704 : vector<8x8xf32>
    %706 = math.exp %705 : vector<8x8xf32>
    %cst_272 = arith.constant dense<0.000000e+00> : vector<8xf32>
    %707 = vector.multi_reduction <add>, %706, %cst_272 [1] : vector<8x8xf32> to vector<8xf32>
    %708 = vector.shape_cast %707 : vector<8xf32> to vector<8x1xf32>
    %709 = vector.broadcast %708 : vector<8x1xf32> to vector<8x8xf32>
    %710 = arith.divf %706, %709 : vector<8x8xf32>
    %cst_273 = arith.constant 0.000000e+00 : f32
    %711 = vector.broadcast %cst_273 : f32 to vector<8x8xf32>
    %712 = arith.select %11, %711, %710 : vector<8x8xi1>, vector<8x8xf32>
    %cst_274 = arith.constant dense<0.000000e+00> : vector<8x16xf32>
    %713 = tpu.matmul %712, %666, %cst_274 {dimension_numbers = #tpu.dot_dimension_numbers<[1], [0], [0], [1], [0, 0, 1, 1], [], []>} : vector<8x8xf32>, vector<8x16xf32>, vector<8x16xf32> -> vector<8x16xf32>
    %714 = vector.extract_strided_slice %556 {offsets = [8, 16], sizes = [8, 16], strides = [1, 1]} : vector<16x32xf32> to vector<8x16xf32>
    %715 = vector.extract_strided_slice %563 {offsets = [8, 16], sizes = [8, 16], strides = [1, 1]} : vector<16x32xf32> to vector<8x16xf32>
    %cst_275 = arith.constant dense<0.000000e+00> : vector<8x8xf32>
    %716 = tpu.matmul %714, %714, %cst_275 {dimension_numbers = #tpu.dot_dimension_numbers<[1], [1], [0], [0], [0, 0, 1, 0], [], []>} : vector<8x16xf32>, vector<8x16xf32>, vector<8x8xf32> -> vector<8x8xf32>
    %cst_276 = arith.constant 2.500000e-01 : f32
    %717 = vector.broadcast %cst_276 : f32 to vector<8x8xf32>
    %718 = arith.mulf %716, %717 : vector<8x8xf32>
    %cst_277 = arith.constant -1.000000e+32 : f32
    %719 = vector.broadcast %cst_277 : f32 to vector<8x8xf32>
    %720 = arith.select %3, %718, %719 : vector<8x8xi1>, vector<8x8xf32>
    %cst_278 = arith.constant dense<0xFF800000> : vector<8xf32>
    %721 = vector.multi_reduction <maximumf>, %720, %cst_278 [1] : vector<8x8xf32> to vector<8xf32>
    %722 = vector.shape_cast %721 : vector<8xf32> to vector<8x1xf32>
    %723 = vector.broadcast %722 : vector<8x1xf32> to vector<8x8xf32>
    %724 = arith.subf %720, %723 : vector<8x8xf32>
    %725 = math.exp %724 : vector<8x8xf32>
    %cst_279 = arith.constant dense<0.000000e+00> : vector<8xf32>
    %726 = vector.multi_reduction <add>, %725, %cst_279 [1] : vector<8x8xf32> to vector<8xf32>
    %727 = vector.shape_cast %726 : vector<8xf32> to vector<8x1xf32>
    %728 = vector.broadcast %727 : vector<8x1xf32> to vector<8x8xf32>
    %729 = arith.divf %725, %728 : vector<8x8xf32>
    %730 = arith.mulf %729, %565 : vector<8x8xf32>
    %cst_280 = arith.constant dense<0.000000e+00> : vector<8x8xf32>
    %731 = tpu.matmul %730, %6, %cst_280 {dimension_numbers = #tpu.dot_dimension_numbers<[1], [0], [0], [1], [0, 0, 1, 1], [], []>} : vector<8x8xf32>, vector<8x8xf32>, vector<8x8xf32> -> vector<8x8xf32>
    %cst_281 = arith.constant dense<0.000000e+00> : vector<8xf32>
    %732 = vector.multi_reduction <add>, %730, %cst_281 [1] : vector<8x8xf32> to vector<8xf32>
    %733 = vector.shape_cast %732 : vector<8xf32> to vector<8x1xf32>
    %734 = vector.broadcast %733 : vector<8x1xf32> to vector<8x8xf32>
    %735 = arith.subf %734, %731 : vector<8x8xf32>
    %736 = arith.mulf %735, %9 : vector<8x8xf32>
    %cst_282 = arith.constant 0.000000e+00 : f32
    %737 = vector.broadcast %cst_282 : f32 to vector<8x8xf32>
    %738 = arith.maximumf %736, %737 : vector<8x8xf32>
    %739 = math.sqrt %738 : vector<8x8xf32>
    %c5_283 = arith.constant 5 : index
    %740 = memref.load %arg0[%c5_283] : memref<6xf32, #tpu.memory_space<smem>>
    %741 = vector.broadcast %740 : f32 to vector<8x8xf32>
    %742 = arith.mulf %739, %741 : vector<8x8xf32>
    %743 = math.exp %742 : vector<8x8xf32>
    %cst_284 = arith.constant 9.99999974E-6 : f32
    %cst_285 = arith.constant 1.000000e+05 : f32
    %744 = vector.broadcast %cst_284 : f32 to vector<8x8xf32>
    %745 = arith.maximumf %744, %743 : vector<8x8xf32>
    %746 = vector.broadcast %cst_285 : f32 to vector<8x8xf32>
    %747 = arith.minimumf %746, %745 : vector<8x8xf32>
    %748 = arith.mulf %718, %747 : vector<8x8xf32>
    %cst_286 = arith.constant -1.000000e+32 : f32
    %749 = vector.broadcast %cst_286 : f32 to vector<8x8xf32>
    %750 = arith.select %3, %748, %749 : vector<8x8xi1>, vector<8x8xf32>
    %cst_287 = arith.constant dense<0xFF800000> : vector<8xf32>
    %751 = vector.multi_reduction <maximumf>, %750, %cst_287 [1] : vector<8x8xf32> to vector<8xf32>
    %752 = vector.shape_cast %751 : vector<8xf32> to vector<8x1xf32>
    %753 = vector.broadcast %752 : vector<8x1xf32> to vector<8x8xf32>
    %754 = arith.subf %750, %753 : vector<8x8xf32>
    %755 = math.exp %754 : vector<8x8xf32>
    %cst_288 = arith.constant dense<0.000000e+00> : vector<8xf32>
    %756 = vector.multi_reduction <add>, %755, %cst_288 [1] : vector<8x8xf32> to vector<8xf32>
    %757 = vector.shape_cast %756 : vector<8xf32> to vector<8x1xf32>
    %758 = vector.broadcast %757 : vector<8x1xf32> to vector<8x8xf32>
    %759 = arith.divf %755, %758 : vector<8x8xf32>
    %cst_289 = arith.constant 0.000000e+00 : f32
    %760 = vector.broadcast %cst_289 : f32 to vector<8x8xf32>
    %761 = arith.select %11, %760, %759 : vector<8x8xi1>, vector<8x8xf32>
    %cst_290 = arith.constant dense<0.000000e+00> : vector<8x16xf32>
    %762 = tpu.matmul %761, %715, %cst_290 {dimension_numbers = #tpu.dot_dimension_numbers<[1], [0], [0], [1], [0, 0, 1, 1], [], []>} : vector<8x8xf32>, vector<8x16xf32>, vector<8x16xf32> -> vector<8x16xf32>
    %763 = tpu.concatenate %713, %762 in 1 : vector<8x16xf32>, vector<8x16xf32> -> vector<8x32xf32>
    %764 = tpu.concatenate %664, %763 in 0 : vector<8x32xf32>, vector<8x32xf32> -> vector<16x32xf32>
    %c2_291 = arith.constant 2 : index
    %c0_292 = arith.constant 0 : index
    %c0_293 = arith.constant 0 : index
    %765 = vector.load %arg10[%c2_291, %c0_292, %c0_293] : memref<3x32x32xf32, #tpu.memory_space<vmem>>, vector<1x32x32xf32>
    %766 = vector.shape_cast %765 : vector<1x32x32xf32> to vector<32x32xf32>
    %cst_294 = arith.constant dense<0.000000e+00> : vector<16x32xf32>
    %767 = tpu.matmul %764, %766, %cst_294 {dimension_numbers = #tpu.dot_dimension_numbers<[1], [0], [0], [1], [0, 0, 1, 1], [], []>} : vector<16x32xf32>, vector<32x32xf32>, vector<16x32xf32> -> vector<16x32xf32>
    %c2_295 = arith.constant 2 : index
    %c0_296 = arith.constant 0 : index
    %c0_297 = arith.constant 0 : index
    %768 = vector.load %arg11[%c2_295, %c0_296, %c0_297] : memref<3x1x32xf32, #tpu.memory_space<vmem>>, vector<1x1x32xf32>
    %769 = vector.shape_cast %768 : vector<1x1x32xf32> to vector<1x32xf32>
    %770 = vector.broadcast %769 : vector<1x32xf32> to vector<16x32xf32>
    %771 = arith.addf %767, %770 : vector<16x32xf32>
    %772 = arith.addf %771, %549 : vector<16x32xf32>
    %c2_298 = arith.constant 2 : index
    %c0_299 = arith.constant 0 : index
    %c0_300 = arith.constant 0 : index
    %773 = vector.load %arg12[%c2_298, %c0_299, %c0_300] : memref<3x1x32xf32, #tpu.memory_space<vmem>>, vector<1x1x32xf32>
    %774 = vector.shape_cast %773 : vector<1x1x32xf32> to vector<1x32xf32>
    %c2_301 = arith.constant 2 : index
    %c0_302 = arith.constant 0 : index
    %c0_303 = arith.constant 0 : index
    %775 = vector.load %arg13[%c2_301, %c0_302, %c0_303] : memref<3x1x32xf32, #tpu.memory_space<vmem>>, vector<1x1x32xf32>
    %776 = vector.shape_cast %775 : vector<1x1x32xf32> to vector<1x32xf32>
    %cst_304 = arith.constant dense<0.000000e+00> : vector<16xf32>
    %777 = vector.multi_reduction <add>, %772, %cst_304 [1] : vector<16x32xf32> to vector<16xf32>
    %778 = vector.shape_cast %777 : vector<16xf32> to vector<16x1xf32>
    %cst_305 = arith.constant 3.200000e+01 : f32
    %779 = vector.broadcast %cst_305 : f32 to vector<16x1xf32>
    %780 = arith.divf %778, %779 : vector<16x1xf32>
    %781 = vector.broadcast %780 : vector<16x1xf32> to vector<16x32xf32>
    %782 = arith.subf %772, %781 : vector<16x32xf32>
    %783 = arith.mulf %782, %782 : vector<16x32xf32>
    %cst_306 = arith.constant dense<0.000000e+00> : vector<16xf32>
    %784 = vector.multi_reduction <add>, %783, %cst_306 [1] : vector<16x32xf32> to vector<16xf32>
    %785 = vector.shape_cast %784 : vector<16xf32> to vector<16x1xf32>
    %cst_307 = arith.constant 3.200000e+01 : f32
    %786 = vector.broadcast %cst_307 : f32 to vector<16x1xf32>
    %787 = arith.divf %785, %786 : vector<16x1xf32>
    %788 = vector.broadcast %780 : vector<16x1xf32> to vector<16x32xf32>
    %789 = arith.subf %772, %788 : vector<16x32xf32>
    %cst_308 = arith.constant 9.99999974E-6 : f32
    %790 = vector.broadcast %cst_308 : f32 to vector<16x1xf32>
    %791 = arith.addf %787, %790 : vector<16x1xf32>
    %792 = math.rsqrt %791 : vector<16x1xf32>
    %793 = vector.broadcast %792 : vector<16x1xf32> to vector<16x32xf32>
    %794 = arith.mulf %789, %793 : vector<16x32xf32>
    %795 = vector.broadcast %774 : vector<1x32xf32> to vector<16x32xf32>
    %796 = arith.mulf %794, %795 : vector<16x32xf32>
    %797 = vector.broadcast %776 : vector<1x32xf32> to vector<16x32xf32>
    %798 = arith.addf %796, %797 : vector<16x32xf32>
    %c2_309 = arith.constant 2 : index
    %c0_310 = arith.constant 0 : index
    %c0_311 = arith.constant 0 : index
    %799 = vector.load %arg14[%c2_309, %c0_310, %c0_311] : memref<3x32x64xf32, #tpu.memory_space<vmem>>, vector<1x32x64xf32>
    %800 = vector.shape_cast %799 : vector<1x32x64xf32> to vector<32x64xf32>
    %cst_312 = arith.constant dense<0.000000e+00> : vector<16x64xf32>
    %801 = tpu.matmul %798, %800, %cst_312 {dimension_numbers = #tpu.dot_dimension_numbers<[1], [0], [0], [1], [0, 0, 1, 1], [], []>} : vector<16x32xf32>, vector<32x64xf32>, vector<16x64xf32> -> vector<16x64xf32>
    %c2_313 = arith.constant 2 : index
    %c0_314 = arith.constant 0 : index
    %c0_315 = arith.constant 0 : index
    %802 = vector.load %arg15[%c2_313, %c0_314, %c0_315] : memref<3x1x64xf32, #tpu.memory_space<vmem>>, vector<1x1x64xf32>
    %803 = vector.shape_cast %802 : vector<1x1x64xf32> to vector<1x64xf32>
    %804 = vector.broadcast %803 : vector<1x64xf32> to vector<16x64xf32>
    %805 = arith.addf %801, %804 : vector<16x64xf32>
    %cst_316 = arith.constant 0.000000e+00 : f32
    %806 = vector.broadcast %cst_316 : f32 to vector<16x64xf32>
    %807 = arith.maximumf %805, %806 : vector<16x64xf32>
    %c2_317 = arith.constant 2 : index
    %c0_318 = arith.constant 0 : index
    %c0_319 = arith.constant 0 : index
    %808 = vector.load %arg16[%c2_317, %c0_318, %c0_319] : memref<3x64x32xf32, #tpu.memory_space<vmem>>, vector<1x64x32xf32>
    %809 = vector.shape_cast %808 : vector<1x64x32xf32> to vector<64x32xf32>
    %cst_320 = arith.constant dense<0.000000e+00> : vector<16x32xf32>
    %810 = tpu.matmul %807, %809, %cst_320 {dimension_numbers = #tpu.dot_dimension_numbers<[1], [0], [0], [1], [0, 0, 1, 1], [], []>} : vector<16x64xf32>, vector<64x32xf32>, vector<16x32xf32> -> vector<16x32xf32>
    %c2_321 = arith.constant 2 : index
    %c0_322 = arith.constant 0 : index
    %c0_323 = arith.constant 0 : index
    %811 = vector.load %arg17[%c2_321, %c0_322, %c0_323] : memref<3x1x32xf32, #tpu.memory_space<vmem>>, vector<1x1x32xf32>
    %812 = vector.shape_cast %811 : vector<1x1x32xf32> to vector<1x32xf32>
    %813 = vector.broadcast %812 : vector<1x32xf32> to vector<16x32xf32>
    %814 = arith.addf %810, %813 : vector<16x32xf32>
    %815 = arith.addf %814, %798 : vector<16x32xf32>
    %c2_324 = arith.constant 2 : index
    %c0_325 = arith.constant 0 : index
    %c0_326 = arith.constant 0 : index
    %816 = vector.load %arg18[%c2_324, %c0_325, %c0_326] : memref<3x1x32xf32, #tpu.memory_space<vmem>>, vector<1x1x32xf32>
    %817 = vector.shape_cast %816 : vector<1x1x32xf32> to vector<1x32xf32>
    %c2_327 = arith.constant 2 : index
    %c0_328 = arith.constant 0 : index
    %c0_329 = arith.constant 0 : index
    %818 = vector.load %arg19[%c2_327, %c0_328, %c0_329] : memref<3x1x32xf32, #tpu.memory_space<vmem>>, vector<1x1x32xf32>
    %819 = vector.shape_cast %818 : vector<1x1x32xf32> to vector<1x32xf32>
    %cst_330 = arith.constant dense<0.000000e+00> : vector<16xf32>
    %820 = vector.multi_reduction <add>, %815, %cst_330 [1] : vector<16x32xf32> to vector<16xf32>
    %821 = vector.shape_cast %820 : vector<16xf32> to vector<16x1xf32>
    %cst_331 = arith.constant 3.200000e+01 : f32
    %822 = vector.broadcast %cst_331 : f32 to vector<16x1xf32>
    %823 = arith.divf %821, %822 : vector<16x1xf32>
    %824 = vector.broadcast %823 : vector<16x1xf32> to vector<16x32xf32>
    %825 = arith.subf %815, %824 : vector<16x32xf32>
    %826 = arith.mulf %825, %825 : vector<16x32xf32>
    %cst_332 = arith.constant dense<0.000000e+00> : vector<16xf32>
    %827 = vector.multi_reduction <add>, %826, %cst_332 [1] : vector<16x32xf32> to vector<16xf32>
    %828 = vector.shape_cast %827 : vector<16xf32> to vector<16x1xf32>
    %cst_333 = arith.constant 3.200000e+01 : f32
    %829 = vector.broadcast %cst_333 : f32 to vector<16x1xf32>
    %830 = arith.divf %828, %829 : vector<16x1xf32>
    %831 = vector.broadcast %823 : vector<16x1xf32> to vector<16x32xf32>
    %832 = arith.subf %815, %831 : vector<16x32xf32>
    %cst_334 = arith.constant 9.99999974E-6 : f32
    %833 = vector.broadcast %cst_334 : f32 to vector<16x1xf32>
    %834 = arith.addf %830, %833 : vector<16x1xf32>
    %835 = math.rsqrt %834 : vector<16x1xf32>
    %836 = vector.broadcast %835 : vector<16x1xf32> to vector<16x32xf32>
    %837 = arith.mulf %832, %836 : vector<16x32xf32>
    %838 = vector.broadcast %817 : vector<1x32xf32> to vector<16x32xf32>
    %839 = arith.mulf %837, %838 : vector<16x32xf32>
    %840 = vector.broadcast %819 : vector<1x32xf32> to vector<16x32xf32>
    %841 = arith.addf %839, %840 : vector<16x32xf32>
    %842 = tpu.concatenate %841, %17 in 1 : vector<16x32xf32>, vector<16x32xf32> -> vector<16x64xf32>
    %c0_335 = arith.constant 0 : index
    %c0_336 = arith.constant 0 : index
    %843 = vector.load %arg20[%c0_335, %c0_336] : memref<64x32xf32, #tpu.memory_space<vmem>>, vector<64x32xf32>
    %cst_337 = arith.constant dense<0.000000e+00> : vector<16x32xf32>
    %844 = tpu.matmul %842, %843, %cst_337 {dimension_numbers = #tpu.dot_dimension_numbers<[1], [0], [0], [1], [0, 0, 1, 1], [], []>} : vector<16x64xf32>, vector<64x32xf32>, vector<16x32xf32> -> vector<16x32xf32>
    %c0_338 = arith.constant 0 : index
    %c0_339 = arith.constant 0 : index
    %845 = vector.load %arg21[%c0_338, %c0_339] : memref<1x32xf32, #tpu.memory_space<vmem>>, vector<1x32xf32>
    %846 = vector.broadcast %845 : vector<1x32xf32> to vector<16x32xf32>
    %847 = arith.addf %844, %846 : vector<16x32xf32>
    %cst_340 = arith.constant 0.000000e+00 : f32
    %848 = vector.broadcast %cst_340 : f32 to vector<16x32xf32>
    %849 = arith.maximumf %847, %848 : vector<16x32xf32>
    %c0_341 = arith.constant 0 : index
    %c0_342 = arith.constant 0 : index
    %850 = vector.load %arg22[%c0_341, %c0_342] : memref<32x256xf32, #tpu.memory_space<vmem>>, vector<32x256xf32>
    %cst_343 = arith.constant dense<0.000000e+00> : vector<16x256xf32>
    %851 = tpu.matmul %849, %850, %cst_343 {dimension_numbers = #tpu.dot_dimension_numbers<[1], [0], [0], [1], [0, 0, 1, 1], [], []>} : vector<16x32xf32>, vector<32x256xf32>, vector<16x256xf32> -> vector<16x256xf32>
    %c0_344 = arith.constant 0 : index
    %c0_345 = arith.constant 0 : index
    %852 = vector.load %arg23[%c0_344, %c0_345] : memref<1x256xf32, #tpu.memory_space<vmem>>, vector<1x256xf32>
    %853 = vector.broadcast %852 : vector<1x256xf32> to vector<16x256xf32>
    %854 = arith.addf %851, %853 : vector<16x256xf32>
    %cst_346 = arith.constant 0.000000e+00 : f32
    %855 = vector.broadcast %cst_346 : f32 to vector<16x256xf32>
    %856 = arith.maximumf %854, %855 : vector<16x256xf32>
    %c0_347 = arith.constant 0 : index
    %c0_348 = arith.constant 0 : index
    %857 = vector.load %arg24[%c0_347, %c0_348] : memref<256x1xf32, #tpu.memory_space<vmem>>, vector<256x1xf32>
    %cst_349 = arith.constant dense<0.000000e+00> : vector<16x1xf32>
    %858 = tpu.matmul %856, %857, %cst_349 {dimension_numbers = #tpu.dot_dimension_numbers<[1], [0], [0], [1], [0, 0, 1, 1], [], []>} : vector<16x256xf32>, vector<256x1xf32>, vector<16x1xf32> -> vector<16x1xf32>
    %c0_350 = arith.constant 0 : index
    %c0_351 = arith.constant 0 : index
    %859 = vector.load %arg25[%c0_350, %c0_351] : memref<1x1xf32, #tpu.memory_space<vmem>>, vector<1x1xf32>
    %860 = vector.broadcast %859 : vector<1x1xf32> to vector<16x1xf32>
    %861 = arith.addf %858, %860 : vector<16x1xf32>
    %862 = arith.negf %861 : vector<16x1xf32>
    %863 = math.exp %862 : vector<16x1xf32>
    %cst_352 = arith.constant 1.000000e+00 : f32
    %864 = vector.broadcast %cst_352 : f32 to vector<16x1xf32>
    %865 = arith.addf %864, %863 : vector<16x1xf32>
    %866 = arith.divf %864, %865 : vector<16x1xf32>
    %c0_353 = arith.constant 0 : index
    %c0_354 = arith.constant 0 : index
    %867 = vector.load %arg26[%c0_353, %c0_354] : memref<16x1xf32, #tpu.memory_space<vmem>>, vector<16x1xf32>
    tpu.vector_store %arg26[%c0_353, %c0_354], %866 {strides = array<i32>} : memref<16x1xf32, #tpu.memory_space<vmem>>, vector<16x1xf32>,
    return
  }
}

</mosaic_0001>

<bundles_post_ra>
// kernel: _lambda_.1
= control target key start
LH: loop header
LB: loop body
LE: loop exit
PB: predicated region body
PF: predicated region fallthrough
CT: control target
= control target key end

     0   :  { %s4597_s0 = inlined_call_operand.vmem [shape: f32[6], index: 0, kind: input, shape index: {}]   ;;  %s4598_s1 = inlined_call_operand.vmem [shape: f32[16,32], index: 1, kind: input, shape index: {}]   ;;  %s4599_s2 = inlined_call_operand.vmem [shape: f32[16,32], index: 2, kind: input, shape index: {}]   ;;  %s4600_s3 = inlined_call_operand.vmem [shape: f32[16,32], index: 3, kind: input, shape index: {}]   ;;  %s4601_s4 = inlined_call_operand.vmem [shape: f32[16,32], index: 4, kind: input, shape index: {}]   ;;  %s4602_s5 = inlined_call_operand.vmem [shape: f32[16,1], index: 5, kind: input, shape index: {}]   ;;  %s4603_s6 = inlined_call_operand.vmem [shape: f32[3,32,32], index: 6, kind: input, shape index: {}]   ;;  %s4604_s7 = inlined_call_operand.vmem [shape: f32[3,1,32], index: 7, kind: input, shape index: {}]   ;;  %s4605_s8 = inlined_call_operand.vmem [shape: f32[3,32,32], index: 8, kind: input, shape index: {}]   ;;  %s4606_s9 = inlined_call_operand.vmem [shape: f32[3,1,32], index: 9, kind: input, shape index: {}]   ;;  %s4607_s10 = inlined_call_operand.vmem [shape: f32[3,32,32], index: 10, kind: input, shape index: {}]   ;;  %s4608_s11 = inlined_call_operand.vmem [shape: f32[3,1,32], index: 11, kind: input, shape index: {}]   ;;  %s4609_s12 = inlined_call_operand.vmem [shape: f32[3,1,32], index: 12, kind: input, shape index: {}]   ;;  %s4610_s13 = inlined_call_operand.vmem [shape: f32[3,1,32], index: 13, kind: input, shape index: {}]   ;;  %s4611_s14 = inlined_call_operand.vmem [shape: f32[3,32,64], index: 14, kind: input, shape index: {}]   ;;  %s4612_s15 = inlined_call_operand.vmem [shape: f32[3,1,64], index: 15, kind: input, shape index: {}]   ;;  %s4613_s16 = inlined_call_operand.vmem [shape: f32[3,64,32], index: 16, kind: input, shape index: {}]   ;;  %s4614_s17 = inlined_call_operand.vmem [shape: f32[3,1,32], index: 17, kind: input, shape index: {}]   ;;  %s4615_s18 = inlined_call_operand.vmem [shape: f32[3,1,32], index: 18, kind: input, shape index: {}]   ;;  %s4616_s19 = inlined_call_operand.vmem [shape: f32[3,1,32], index: 19, kind: input, shape index: {}]   ;;  %s4617_s20 = inlined_call_operand.vmem [shape: f32[64,32], index: 20, kind: input, shape index: {}]   ;;  %s4618_s21 = inlined_call_operand.vmem [shape: f32[1,32], index: 21, kind: input, shape index: {}]   ;;  %s4619_s22 = inlined_call_operand.vmem [shape: f32[32,256], index: 22, kind: input, shape index: {}]   ;;  %s4620_s23 = inlined_call_operand.vmem [shape: f32[1,256], index: 23, kind: input, shape index: {}]   ;;  %s4621_s24 = inlined_call_operand.vmem [shape: f32[256,1], index: 24, kind: input, shape index: {}]   ;;  %s4622_s25 = inlined_call_operand.<no memory space> [shape: f32[1,1], index: 25, kind: input, shape index: {}]   ;;  %s4623_s26 = inlined_call_operand.vmem [shape: f32[16,1], index: 26, kind: output, shape index: {}]  }
   0x1   :  { %4637 = sst [smem:[#allocation6_spill]] %s4597_s0  ;;  %v31_v0 = vstv %s4622_s25 }
   0x2   :  { %4638 = sst [smem:[#allocation7_spill]] %s4598_s1  ;;  %32 = vst [vmem:[#allocation2] sm:$0x1] %v31_v0 }
   0x3   :  { %4639 = sst [smem:[#allocation8_spill]] %s4599_s2 }
   0x4   :  { %4640 = sst [smem:[#allocation9_spill]] %s4600_s3 }
   0x5   :  { %4641 = sst [smem:[#allocation10_spill]] %s4601_s4 }
   0x6   :  { %4642 = sst [smem:[#allocation11_spill]] %s4602_s5 }
   0x7   :  { %4643 = sst [smem:[#allocation12_spill]] %s4603_s6 }
   0x8   :  { %4644 = sst [smem:[#allocation13_spill]] %s4604_s7 }
   0x9   :  { %4645 = sst [smem:[#allocation14_spill]] %s4605_s8 }
   0xa   :  { %4646 = sst [smem:[#allocation15_spill]] %s4606_s9 }
   0xb   :  { %4647 = sst [smem:[#allocation16_spill]] %s4607_s10 }
   0xc   :  { %4648 = sst [smem:[#allocation17_spill]] %s4620_s23 }
   0xd   :  { %4649 = sst [smem:[#allocation18_spill]] %s4623_s26 }
   0xe   :  { %33 = vsyncpa [#allocation4], 0  ;;  %s4650_s8 = sld [smem:[#allocation6_spill]]  ;;  %s3393_s29 = smov [#allocation3]  }
  0x14   :  { %s39_s4 = sshll.u32 %s4650_s8, 4  ;;  %s40_s4 = int_to_ptr.vmem [resolvable:$true] %s39_s4 }
  0x15   :  { %42 = dma.vmem_to_smem %s40_s4, 16, %s3393_s29, [#allocation4]  }
  0x16   :  { %3391 = dma.done.wait [#allocation4], 16  }
  0x17   :  { %3392 = vsyncadd [#allocation4], 4294967280 }
  0x18   :  { %97 = sfence }
  0x19   :  { %s4651_s30 = sld [smem:[#allocation11_spill]]  ;;  %v3394_v4 = vmov 0   ;;  %vm153_vm0 = vcmask 261120   ;;  %vm216_vm1 = vcmask 130048   ;;  %v98_v21 = vlaneseq  ;;  %s4634_s8 = smov 112  }
  0x1a   :  { %s4652_s10 = sld [smem:[#allocation12_spill]]  ;;  %3178 = vset.pattern.permute.xlu0 %v3394_v4  ;;  %3179 = vset.pattern.permute.xlu2 %v3394_v4  ;;  %vm242_vm3 = vcmask 64512   ;;  %v3396_v35 = vmov 1.0   ;;  %v3397_v46 = vmov 0.0   ;;  %s3398_s7 = smov 16  }
  0x1b   :  { %s4653_s4 = sld [smem:[#allocation10_spill]]  ;;  %v3583_v22 = vshrl.u32 %v98_v21, 7  ;;  %v3585_v23 = vand.u32 127, %v98_v21 }
  0x1c   :  { %s4654_s9 = sld [smem:[#allocation8_spill]] }
  0x1d   :  { %s4655_s25 = sld [smem:[#allocation9_spill]]  ;;  %vm3589_vm2 = vcmp.le.s32.totalorder %v3585_v23, %v3583_v22  ;;  %vm3603_vm4 = vcmp.le.s32.totalorder %v3583_v22, %v3585_v23  ;;  %v107_v61 = vsub.s32 %v3585_v23, %v3583_v22 }
  0x1e   :  { %s4656_s27 = sld [smem:[#allocation7_spill]]  ;;  %3026 = vmatpush.msk.msra.mxu3 %vm3603_vm4, %v3396_v35  ;;  %3037 = vmatpush.msk.msra.mxu1 %vm3603_vm4, %v3396_v35  ;;  %v3619_v47 = vsel %vm3589_vm2, 1.0, %v3397_v46 }
  0x1f   :  { %v117_v1 = vld [vmem:[%s4651_s30] sm:$0xff]  ;;  %s4657_s28 = sld [smem:[#allocation13_spill]]  ;;  %v118_v53 = vld [vmem:[%s4651_s30 + $0x8] sm:$0xff]  ;;  %vm108_vm9 = vcmp.lt.s32.totalorder %v107_v61, 0 }
  0x20   :  { %v148_v2 = vld [vmem:[%s4652_s10 + $0x18] sm:$0xff]  ;;  %v147_v3 = vld [vmem:[%s4652_s10 + $0x10] sm:$0xff]  ;;  %121 = vperm.xlu0 %3178, %v117_v1   ;;  %v146_v5 = vld [vmem:[%s4652_s10 + $0x8] sm:$0xff]  ;;  %3042 = vmatpush.msk.msrb.mxu1 %vm3603_vm4, %v3396_v35  ;;  %s4662_s6 = sld [smem:[#allocation14_spill]] }
  0x21   :  { %172 = vmatpush.msra.mxu0 %v148_v2  ;;  %v145_v6 = vld [vmem:[%s4652_s10] sm:$0xff]  ;;  %v138_v60 = vld [vmem:[%s4653_s4 + $0x8] sm:$0xff]  ;;  %v109_v2 = vsub.s32 0, %v107_v61  ;;  %s3674_s26 = sld [smem:[#allocation3]] }
  0x22   :  { %v137_v7 = vld [vmem:[%s4653_s4] sm:$0xff]  ;;  %v116_v59 = vld [vmem:[%s4654_s9 + $0x8] sm:$0xff]  ;;  %s3709_s3 = sld [smem:[#allocation3 + $0x1]] }
  0x23   :  { %173 = vmatpush.msra.mxu0 %v147_v3  ;;  %v115_v8 = vld [vmem:[%s4654_s9] sm:$0xff]  ;;  %v134_v63 = vld [vmem:[%s4655_s25 + $0x8] sm:$0xff]  ;;  %v140_v0 = vadd.f32 %v138_v60, %v116_v59  ;;  %s4665_s0 = sld [smem:[#allocation16_spill]] }
  0x24   :  { %v133_v9 = vld [vmem:[%s4655_s25] sm:$0xff]  ;;  %v139_v11 = vadd.f32 %v137_v7, %v115_v8  ;;  %v114_v62 = vld [vmem:[%s4656_s27 + $0x8] sm:$0xff]  ;;  %s4663_s25 = sld [smem:[#allocation15_spill]] }
  0x25   :  { %174 = vmatpush.msra.mxu0 %v146_v5  ;;  %v113_v10 = vld [vmem:[%s4656_s27] sm:$0xff]  ;;  %v136_v1 = vadd.f32 %v134_v63, %v114_v62  ;;  %s4664_s27 = smov 112   ;;  %s3965_s1 = sld [smem:[#allocation3 + $0x2]] }
  0x26   :  { %v135_v12 = vadd.f32 %v133_v9, %v113_v10  ;;  %v3578_v18 = vld [vmem:[%s4657_s28] ss:$0 sm:$0xff]  ;;  %v186_v54 = vld [vmem:[%s4662_s6 + $0x18] sm:$0xff]  ;;  %v185_v55 = vld [vmem:[%s4662_s6 + $0x10] sm:$0xff]  ;;  %s3975_s23 = sld [smem:[#allocation3 + $0x3]] }
  0x27   :  { %175 = vmatpush.msra.mxu0 %v145_v6  ;;  %v184_v56 = vld [vmem:[%s4662_s6 + $0x8] sm:$0xff]  ;;  %v183_v57 = vld [vmem:[%s4662_s6] sm:$0xff] }
  0x29   :  { %203 = vmatpush.msrb.mxu0 %v186_v54  ;;  %v3088_v25 = vld [vmem:[%s4665_s0 + $0x28] sm:$0xff] }
  0x2b   :  { %204 = vmatpush.msrb.mxu0 %v185_v55 }
  0x2d   :  { %205 = vmatpush.msrb.mxu0 %v184_v56 }
  0x2f   :  { %206 = vmatpush.msrb.mxu0 %v183_v57 }
  0x92   :  { %v122_v13 = vpop.permute.xlu0 %121 }
  0x93   :  { %v129_v14 = vmul.f32 %v122_v13, %v115_v8  ;;  %v141_v15 = vmul.f32 %v139_v11, %v122_v13  ;;  %v110_v8 = vsel %vm108_vm9, %v109_v2, %v107_v61 }
  0x94   :  { %v3661_v9 = vcvt.s32.f32 %v110_v8 }
  0x95   :  { %v3569_v16 = vadd.f32 %v129_v14, %v113_v10  ;;  %v3571_v17 = vadd.f32 %v141_v15, %v135_v12 }
  0x97   :  { %3019 = vmatmul.msk.f32.vlgmr.msra.gmra.mxu0 %vm153_vm0, %v3571_v17 }
 0x114   :  { %v177_v19 = vpop.f32.mrf.mxu0 }
 0x115   :  { %v178_v20 = vadd.f32 %v3578_v18, %v177_v19 }
 0x117   :  { %3024 = vmatpush.xpose.msk.msra.mxu2 %vm216_vm1, %v178_v20 }
 0x11a   :  { %3025 = vmatmul.msk.f32.vlgmr.msra.gmra.mxu2 %vm216_vm1, %v178_v20 }
 0x19d   :  { %v237_v24 = vpop.f32.mrf.mxu2 }
 0x19e   :  { %v3593_v26 = vmul.f32 0.25, %v237_v24 }
 0x1a0   :  { %v241_v27 = vsel %vm3589_vm2, %v3593_v26, -1e+32 }
 0x1a1   :  { %v243_v28 = vsel %vm242_vm3, %v241_v27, -inf }
 0x1a2   :  { %244 = vmax.xlane.f32.xlu0 %v243_v28 }
 0x215   :  { %v245_v29 = vpop.xlane.xlu0 %244 }
 0x216   :  { %v246_v30 = vsub.f32 %v241_v27, %v245_v29 }
 0x218   :  { %v247_v31 = vmul.f32 1.442695, %v246_v30 }
 0x21a   :  { %3205 = vpow2.f32 %v247_v31 }
 0x220   :  { %v3206_v32 = vpop.eup %3205 }
 0x221   :  { %v249_v33 = vsel %vm242_vm3, %v3206_v32, 0.0 }
 0x222   :  { %250 = vadd.xlane.f32.xlu1 %v249_v33  ;;  %v310_v33 = vstv %s3674_s26 }
 0x23b   :  { %365 = vrot.lane.b32.xlu1 %v178_v20, %s4634_s8 }
 0x295   :  { %v251_v36 = vpop.xlane.xlu1 %250 }
 0x296   :  { %3207 = vrcp.f32 %v251_v36  ;;  %v263_v40 = vand.u32 2147483648, %v251_v36  ;;  %v261_v42 = vand.u32 2147483647, %v251_v36  ;;  %vm257_vm6 = vweird.f32 %v251_v36 }
 0x298   :  { %v264_v44 = vor.u32 1.1754944e-38, %v263_v40  ;;  %vm262_vm8 = vcmp.eq.f32.partialorder %v261_v42, 8.507059e+37 }
 0x29c   :  { %v3208_v37 = vpop.eup %3207 }
 0x29d   :  { %v253_v38 = vmul.f32 %v3208_v37, %v251_v36  ;;  %vm258_vm5 = vweird.f32 %v3208_v37 }
 0x29e   :  { %vm259_vm7 = vmor %vm257_vm6, %vm258_vm5 }
 0x29f   :  { %v254_v39 = vsub.f32 1.0, %v253_v38 }
 0x2a1   :  { %v255_v41 = vmul.f32 %v3208_v37, %v254_v39 }
 0x2a3   :  { %v256_v43 = vadd.f32 %v3208_v37, %v255_v41 }
 0x2a5   :  { %v260_v45 = vsel %vm259_vm7, %v3208_v37, %v256_v43 }
 0x2a6   :  { %v265_v48 = vsel %vm262_vm8, %v264_v44, %v260_v45 }
 0x2a7   :  { %v266_v49 = vmul.f32 %v3206_v32, %v265_v48 }
 0x2a9   :  { %v267_v50 = vmul.f32 %v3619_v47, %v266_v49 }
 0x2ab   :  { %3027 = vmatmul.msk.f32.vlgmr.msra.gmra.mxu3 %vm242_vm3, %v267_v50  ;;  %v291_v51 = vsel %vm242_vm3, %v267_v50, 0.0  ;;  %v3181_v50 = vld [vmem:[%s4663_s25] ss:$0 sm:$0xff] }
 0x2ac   :  { %292 = vadd.xlane.f32.xlu2 %v291_v51 }
 0x2ad   :  { %v366_v52 = vpop.permute.xlu1 %365 }
 0x2ae   :  { %3029 = vmatpush.xpose.msk.msrb.mxu2 %vm216_vm1, %v366_v52 }
 0x2b1   :  { %3030 = vmatmul.msk.f32.vlgmr.msrb.gmra.mxu2 %vm216_vm1, %v366_v52 }
 0x2c4   :  { %126 = vperm.xlu2 %3179, %v118_v53  }
 0x31f   :  { %v293_v58 = vpop.xlane.xlu2 %292 }
 0x327   :  { %v127_v3 = vpop.permute.xlu2 %126 }
 0x328   :  { %v130_v4 = vmul.f32 %v127_v3, %v116_v59  ;;  %v142_v5 = vmul.f32 %v140_v0, %v127_v3 }
 0x32a   :  { %v3655_v6 = vadd.f32 %v130_v4, %v114_v62  ;;  %v3657_v7 = vadd.f32 %v142_v5, %v136_v1 }
 0x32c   :  { %3020 = vmatmul.msk.f32.gmra.mxu0 %vm153_vm0, %v3657_v7 }
 0x32e   :  { %v288_v10 = vpop.f32.mrf.mxu3 }
 0x32f   :  { %v294_v11 = vsub.f32 %v293_v58, %v288_v10 }
 0x331   :  { %v295_v12 = vmul.f32 %v294_v11, %v3661_v9 }
 0x333   :  { %v296_v13 = vmax.f32 %v295_v12, 0.0 }
 0x334   :  { %3021 = vmatmul.msk.f32.vlgmr.msrb.gmra.mxu0 %vm153_vm0, %v3571_v17  ;;  %v386_v14 = vpop.f32.mrf.mxu2 }
 0x335   :  { %3209 = vrsqrt.f32 %v296_v13  ;;  %v3666_v15 = vmul.f32 0.25, %v386_v14  ;;  %vm304_vm10 = vcmp.eq.f32.partialorder %v296_v13, inf  ;;  %v307_v32 = vand.u32 2147483648, %v296_v13 }
 0x336   :  { %vm306_vm11 = vcmp.eq.f32.partialorder %v296_v13, 0.0 }
 0x337   :  { %v390_v19 = vsel %vm3589_vm2, %v3666_v15, -1e+32 }
 0x338   :  { %v391_v20 = vsel %vm242_vm3, %v390_v19, -inf }
 0x339   :  { %392 = vmax.xlane.f32.xlu1 %v391_v20 }
 0x33b   :  { %v3210_v21 = vpop.eup %3209 }
 0x33c   :  { %v298_v24 = vmul.f32 %v3210_v21, %v296_v13  ;;  %3022 = vmatmul.msk.f32.gmra.mxu0 %vm153_vm0, %v3657_v7 }
 0x33e   :  { %v299_v27 = vmul.f32 %v3210_v21, %v298_v24 }
 0x340   :  { %v300_v28 = vmul.f32 0.5, %v299_v27 }
 0x342   :  { %v301_v29 = vsub.f32 1.5, %v300_v28 }
 0x344   :  { %v302_v30 = vmul.f32 %v3210_v21, %v301_v29 }
 0x346   :  { %v303_v31 = vmul.f32 %v302_v30, %v296_v13 }
 0x348   :  { %v305_v36 = vsel %vm304_vm10, %v296_v13, %v303_v31 }
 0x349   :  { %v308_v37 = vsel %vm306_vm11, %v307_v32, %v305_v36 }
 0x34a   :  { %v311_v38 = vmul.f32 %v310_v33, %v308_v37 }
 0x34c   :  { %v312_v39 = vmul.f32 1.442695, %v311_v38 }
 0x34e   :  { %3211 = vpow2.f32 %v312_v39 }
 0x354   :  { %v3212_v40 = vpop.eup %3211 }
 0x355   :  { %v314_v41 = vmax.f32 %v3212_v40, 1e-05 }
 0x357   :  { %v315_v42 = vmin.f32 %v314_v41, 100000.0 }
 0x359   :  { %v316_v43 = vmul.f32 %v315_v42, %v3593_v26 }
 0x35b   :  { %v317_v44 = vsel %vm3589_vm2, %v316_v43, -1e+32 }
 0x35c   :  { %v318_v45 = vsel %vm242_vm3, %v317_v44, -inf }
 0x35d   :  { %319 = vmax.xlane.f32.xlu2 %v318_v45 }
 0x3a9   :  { %v180_v48 = vpop.f32.mrf.mxu0 }
 0x3aa   :  { %v3684_v49 = vadd.f32 %v3578_v18, %v180_v48 }
 0x3ac   :  { %3035 = vmatpush.xpose.msk.msra.mxu0 %vm216_vm1, %v3684_v49  ;;  %v393_v18 = vpop.xlane.xlu1 %392 }
 0x3ad   :  { %v394_v54 = vsub.f32 %v390_v19, %v393_v18 }
 0x3af   :  { %3036 = vmatmul.msk.f32.vlgmr.msra.gmra.mxu0 %vm216_vm1, %v3684_v49  ;;  %v395_v56 = vmul.f32 1.442695, %v394_v54 }
 0x3b1   :  { %v208_v26 = vpop.f32.mrf.mxu0 }
 0x3b2   :  { %v209_v51 = vadd.f32 %v3181_v50, %v208_v26 }
 0x3b4   :  { %491 = vrot.lane.b32.xlu1 %v209_v51, %s4664_s27  ;;  %360 = vmatpush.msrb.mxu3 %v209_v51 }
 0x3b6   :  { %3031 = vmatpush.msk.msra.mxu3 %vm3603_vm4, %v3396_v35 }
 0x3b9   :  { %v211_v12 = vpop.f32.mrf.mxu0 }
 0x3ba   :  { %v3699_v24 = vadd.f32 %v3181_v50, %v211_v12 }
 0x3d0   :  { %v320_v52 = vpop.xlane.xlu2 %319 }
 0x3d1   :  { %v321_v53 = vsub.f32 %v317_v44, %v320_v52 }
 0x3d3   :  { %v322_v55 = vmul.f32 1.442695, %v321_v53 }
 0x3d5   :  { %3213 = vpow2.f32 %v322_v55  ;;  %v458_v55 = vstv %s3709_s3  ;;  %s4242_s3 = sld [smem:[#allocation3 + $0x5]] }
 0x3d6   :  { %3215 = vpow2.f32 %v395_v56 }
 0x3db   :  { %v3214_v57 = vpop.eup %3213 }
 0x3dc   :  { %v324_v58 = vsel %vm242_vm3, %v3214_v57, 0.0  ;;  %v3216_v59 = vpop.eup %3215 }
 0x3dd   :  { %325 = vadd.xlane.f32.xlu0 %v324_v58  ;;  %v397_v60 = vsel %vm242_vm3, %v3216_v59, 0.0 }
 0x3e5   :  { %398 = vadd.xlane.f32.xlu0 %v397_v60 }
 0x426   :  { %v492_v61 = vpop.permute.xlu1 %491 }
 0x427   :  { %512 = vmatpush.msra.mxu2 %v492_v61 }
 0x450   :  { %v326_v62 = vpop.xlane.xlu0 %325 }
 0x451   :  { %3217 = vrcp.f32 %v326_v62  ;;  %v338_v3 = vand.u32 2147483648, %v326_v62  ;;  %v336_v5 = vand.u32 2147483647, %v326_v62  ;;  %vm332_vm13 = vweird.f32 %v326_v62 }
 0x453   :  { %v339_v11 = vor.u32 1.1754944e-38, %v338_v3  ;;  %vm337_vm15 = vcmp.eq.f32.partialorder %v336_v5, 8.507059e+37 }
 0x457   :  { %v3218_v63 = vpop.eup %3217 }
 0x458   :  { %v328_v0 = vmul.f32 %v3218_v63, %v326_v62  ;;  %v399_v1 = vpop.xlane.xlu0 %398  ;;  %vm333_vm12 = vweird.f32 %v3218_v63 }
 0x459   :  { %3219 = vrcp.f32 %v399_v1  ;;  %vm334_vm14 = vmor %vm332_vm13, %vm333_vm12  ;;  %v411_v27 = vand.u32 2147483648, %v399_v1  ;;  %v409_v29 = vand.u32 2147483647, %v399_v1  ;;  %vm405_vm6 = vweird.f32 %v399_v1 }
 0x45a   :  { %v329_v2 = vsub.f32 1.0, %v328_v0 }
 0x45b   :  { %v412_v31 = vor.u32 1.1754944e-38, %v411_v27  ;;  %vm410_vm8 = vcmp.eq.f32.partialorder %v409_v29, 8.507059e+37 }
 0x45c   :  { %v330_v4 = vmul.f32 %v3218_v63, %v329_v2 }
 0x45e   :  { %v331_v8 = vadd.f32 %v3218_v63, %v330_v4 }
 0x45f   :  { %v3220_v10 = vpop.eup %3219 }
 0x460   :  { %v401_v13 = vmul.f32 %v3220_v10, %v399_v1  ;;  %v335_v14 = vsel %vm334_vm14, %v3218_v63, %v331_v8  ;;  %vm406_vm5 = vweird.f32 %v3220_v10  ;;  %v542_v8 = vpop.f32.mrf.mxu0 }
 0x461   :  { %v340_v19 = vsel %vm337_vm15, %v339_v11, %v335_v14  ;;  %vm407_vm7 = vmor %vm405_vm6, %vm406_vm5  ;;  %v3722_v11 = vmul.f32 0.25, %v542_v8 }
 0x462   :  { %v402_v20 = vsub.f32 1.0, %v401_v13  ;;  %v341_v21 = vmul.f32 %v3214_v57, %v340_v19 }
 0x463   :  { %v546_v12 = vsel %vm3589_vm2, %v3722_v11, -1e+32 }
 0x464   :  { %v403_v28 = vmul.f32 %v3220_v10, %v402_v20  ;;  %3028 = vmatmul.msk.f32.vlgmr.msrb.gmra.mxu3 %vm242_vm3, %v341_v21 }
 0x465   :  { %662 = vmatpush.msrb.mxu3 %v3699_v24 }
 0x466   :  { %v404_v30 = vadd.f32 %v3220_v10, %v403_v28 }
 0x468   :  { %v408_v32 = vsel %vm407_vm7, %v3220_v10, %v404_v30 }
 0x469   :  { %v413_v36 = vsel %vm410_vm8, %v412_v31, %v408_v32 }
 0x46a   :  { %v414_v37 = vmul.f32 %v3216_v59, %v413_v36 }
 0x46c   :  { %v415_v38 = vmul.f32 %v3619_v47, %v414_v37 }
 0x46e   :  { %3032 = vmatmul.msk.f32.vlgmr.msra.gmra.mxu3 %vm242_vm3, %v415_v38  ;;  %v439_v39 = vsel %vm242_vm3, %v415_v38, 0.0 }
 0x46f   :  { %440 = vadd.xlane.f32.xlu0 %v439_v39 }
 0x4e2   :  { %v441_v41 = vpop.xlane.xlu0 %440 }
 0x4e7   :  { %v3706_v40 = vpop.f32.mrf.mxu3 }
 0x4f1   :  { %v436_v42 = vpop.f32.mrf.mxu3 }
 0x4f2   :  { %v442_v43 = vsub.f32 %v441_v41, %v436_v42 }
 0x4f4   :  { %v443_v44 = vmul.f32 %v442_v43, %v3661_v9 }
 0x4f6   :  { %v444_v45 = vmax.f32 %v443_v44, 0.0 }
 0x4f8   :  { %3221 = vrsqrt.f32 %v444_v45  ;;  %vm452_vm9 = vcmp.eq.f32.partialorder %v444_v45, inf  ;;  %v455_v54 = vand.u32 2147483648, %v444_v45  ;;  %vm454_vm10 = vcmp.eq.f32.partialorder %v444_v45, 0.0 }
 0x4fe   :  { %v3222_v48 = vpop.eup %3221 }
 0x4ff   :  { %v446_v50 = vmul.f32 %v3222_v48, %v444_v45 }
 0x501   :  { %v447_v26 = vmul.f32 %v3222_v48, %v446_v50 }
 0x503   :  { %v448_v51 = vmul.f32 0.5, %v447_v26 }
 0x505   :  { %v449_v18 = vsub.f32 1.5, %v448_v51 }
 0x507   :  { %v450_v52 = vmul.f32 %v3222_v48, %v449_v18 }
 0x509   :  { %v451_v53 = vmul.f32 %v450_v52, %v444_v45 }
 0x50b   :  { %v453_v56 = vsel %vm452_vm9, %v444_v45, %v451_v53 }
 0x50c   :  { %v456_v57 = vsel %vm454_vm10, %v455_v54, %v453_v56 }
 0x50d   :  { %v459_v58 = vmul.f32 %v458_v55, %v456_v57 }
 0x50f   :  { %v460_v59 = vmul.f32 1.442695, %v459_v58 }
 0x511   :  { %3223 = vpow2.f32 %v460_v59 }
 0x517   :  { %v3224_v60 = vpop.eup %3223 }
 0x518   :  { %v462_v61 = vmax.f32 %v3224_v60, 1e-05 }
 0x51a   :  { %v463_v62 = vmin.f32 %v462_v61, 100000.0 }
 0x51c   :  { %v464_v63 = vmul.f32 %v463_v62, %v3666_v15 }
 0x51e   :  { %v465_v0 = vsel %vm3589_vm2, %v464_v63, -1e+32 }
 0x51f   :  { %v466_v1 = vsel %vm242_vm3, %v465_v0, -inf }
 0x520   :  { %467 = vmax.xlane.f32.xlu2 %v466_v1 }
 0x538   :  { %667 = vrot.lane.b32.xlu2 %v3684_v49, %s4664_s27  ;;  %v547_v49 = vsel %vm242_vm3, %v546_v12, -inf }
 0x593   :  { %v468_v2 = vpop.xlane.xlu2 %467 }
 0x594   :  { %v469_v3 = vsub.f32 %v465_v0, %v468_v2 }
 0x596   :  { %v470_v4 = vmul.f32 1.442695, %v469_v3 }
 0x598   :  { %3225 = vpow2.f32 %v470_v4 }
 0x59b   :  { %v668_v5 = vpop.permute.xlu2 %667 }
 0x59c   :  { %3040 = vmatpush.xpose.msk.msrb.mxu2 %vm216_vm1, %v668_v5 }
 0x59e   :  { %v3226_v10 = vpop.eup %3225 }
 0x59f   :  { %v472_v15 = vsel %vm242_vm3, %v3226_v10, 0.0 }
 0x5a0   :  { %473 = vadd.xlane.f32.xlu0 %v472_v15 }
 0x5a8   :  { %548 = vmax.xlane.f32.xlu0 %v547_v49 }
 0x613   :  { %v474_v13 = vpop.xlane.xlu0 %473 }
 0x614   :  { %3227 = vrcp.f32 %v474_v13  ;;  %v486_v21 = vand.u32 2147483648, %v474_v13  ;;  %v484_v28 = vand.u32 2147483647, %v474_v13  ;;  %vm480_vm12 = vweird.f32 %v474_v13 }
 0x616   :  { %v487_v30 = vor.u32 1.1754944e-38, %v486_v21  ;;  %vm485_vm14 = vcmp.eq.f32.partialorder %v484_v28, 8.507059e+37 }
 0x61a   :  { %v3228_v14 = vpop.eup %3227 }
 0x61b   :  { %v476_v19 = vmul.f32 %v3228_v14, %v474_v13  ;;  %vm481_vm11 = vweird.f32 %v3228_v14  ;;  %v549_v37 = vpop.xlane.xlu0 %548 }
 0x61c   :  { %vm482_vm13 = vmor %vm480_vm12, %vm481_vm11  ;;  %v550_v39 = vsub.f32 %v546_v12, %v549_v37  ;;  %v822_v37 = vld [vmem:[%s4665_s0] sm:$0xff] }
 0x61d   :  { %v477_v20 = vsub.f32 1.0, %v476_v19 }
 0x61e   :  { %v551_v41 = vmul.f32 1.442695, %v550_v39 }
 0x61f   :  { %v478_v27 = vmul.f32 %v3228_v14, %v477_v20 }
 0x620   :  { %3229 = vpow2.f32 %v551_v41 }
 0x621   :  { %v479_v29 = vadd.f32 %v3228_v14, %v478_v27 }
 0x623   :  { %v483_v31 = vsel %vm482_vm13, %v3228_v14, %v479_v29 }
 0x624   :  { %v488_v32 = vsel %vm485_vm14, %v487_v30, %v483_v31  ;;  %v825_v30 = vld [vmem:[%s4665_s0 + $0x18] sm:$0xff]  ;;  %v824_v31 = vld [vmem:[%s4665_s0 + $0x10] sm:$0xff] }
 0x625   :  { %v489_v36 = vmul.f32 %v3226_v10, %v488_v32  ;;  %v823_v32 = vld [vmem:[%s4665_s0 + $0x8] sm:$0xff] }
 0x626   :  { %v3230_v48 = vpop.eup %3229 }
 0x627   :  { %3034 = vmatmul.msk.f32.vlgmr.msra.gmra.mxu2 %vm242_vm3, %v489_v36  ;;  %v553_v50 = vsel %vm242_vm3, %v3230_v48, 0.0 }
 0x628   :  { %848 = vmatpush.msra.mxu2 %v825_v30 }
 0x62a   :  { %849 = vmatpush.msra.mxu2 %v824_v31 }
 0x62c   :  { %850 = vmatpush.msra.mxu2 %v823_v32 }
 0x62e   :  { %851 = vmatpush.msra.mxu2 %v822_v37 }
 0x62f   :  { %3041 = vmatmul.msk.f32.vlgmr.msrb.gmra.mxu2 %vm216_vm1, %v668_v5 }
 0x6aa   :  { %v514_v38 = vpop.f32.mrf.mxu2 }
 0x6b2   :  { %v688_v42 = vpop.f32.mrf.mxu2 }
 0x6b3   :  { %v3730_v43 = vmul.f32 0.25, %v688_v42 }
 0x6b5   :  { %v692_v44 = vsel %vm3589_vm2, %v3730_v43, -1e+32 }
 0x6b6   :  { %v693_v45 = vsel %vm242_vm3, %v692_v44, -inf }
 0x6b7   :  { %694 = vmax.xlane.f32.xlu0 %v693_v45 }
 0x6bf   :  { %554 = vadd.xlane.f32.xlu0 %v553_v50 }
 0x72a   :  { %v695_v26 = vpop.xlane.xlu0 %694 }
 0x72b   :  { %v696_v51 = vsub.f32 %v692_v44, %v695_v26 }
 0x72d   :  { %v697_v18 = vmul.f32 1.442695, %v696_v51 }
 0x72f   :  { %3231 = vpow2.f32 %v697_v18 }
 0x732   :  { %v555_v52 = vpop.xlane.xlu0 %554 }
 0x733   :  { %3233 = vrcp.f32 %v555_v52  ;;  %v567_v59 = vand.u32 2147483648, %v555_v52  ;;  %v565_v61 = vand.u32 2147483647, %v555_v52  ;;  %vm561_vm5 = vweird.f32 %v555_v52 }
 0x735   :  { %v3232_v53 = vpop.eup %3231  ;;  %v568_v63 = vor.u32 1.1754944e-38, %v567_v59  ;;  %vm566_vm7 = vcmp.eq.f32.partialorder %v565_v61, 8.507059e+37 }
 0x736   :  { %v699_v54 = vsel %vm242_vm3, %v3232_v53, 0.0 }
 0x737   :  { %700 = vadd.xlane.f32.xlu1 %v699_v54 }
 0x739   :  { %v3234_v56 = vpop.eup %3233 }
 0x73a   :  { %v557_v57 = vmul.f32 %v3234_v56, %v555_v52  ;;  %vm562_vm15 = vweird.f32 %v3234_v56 }
 0x73b   :  { %vm563_vm6 = vmor %vm561_vm5, %vm562_vm15 }
 0x73c   :  { %v558_v58 = vsub.f32 1.0, %v557_v57 }
 0x73e   :  { %v559_v60 = vmul.f32 %v3234_v56, %v558_v58 }
 0x740   :  { %v560_v62 = vadd.f32 %v3234_v56, %v559_v60 }
 0x742   :  { %v564_v0 = vsel %vm563_vm6, %v3234_v56, %v560_v62 }
 0x743   :  { %v569_v1 = vsel %vm566_vm7, %v568_v63, %v564_v0 }
 0x744   :  { %v570_v2 = vmul.f32 %v3230_v48, %v569_v1 }
 0x746   :  { %v571_v3 = vmul.f32 %v3619_v47, %v570_v2 }
 0x748   :  { %3038 = vmatmul.msk.f32.vlgmr.msra.gmra.mxu1 %vm242_vm3, %v571_v3  ;;  %v595_v4 = vsel %vm242_vm3, %v571_v3, 0.0 }
 0x749   :  { %596 = vadd.xlane.f32.xlu0 %v595_v4 }
 0x7aa   :  { %v701_v5 = vpop.xlane.xlu1 %700 }
 0x7ab   :  { %3235 = vrcp.f32 %v701_v5  ;;  %v713_v12 = vand.u32 2147483648, %v701_v5  ;;  %v711_v13 = vand.u32 2147483647, %v701_v5  ;;  %vm707_vm9 = vweird.f32 %v701_v5 }
 0x7ad   :  { %v714_v19 = vor.u32 1.1754944e-38, %v713_v12  ;;  %vm712_vm11 = vcmp.eq.f32.partialorder %v711_v13, 8.507059e+37 }
 0x7b1   :  { %v3236_v8 = vpop.eup %3235 }
 0x7b2   :  { %v703_v10 = vmul.f32 %v3236_v8, %v701_v5  ;;  %vm708_vm8 = vweird.f32 %v3236_v8 }
 0x7b3   :  { %vm709_vm10 = vmor %vm707_vm9, %vm708_vm8 }
 0x7b4   :  { %v704_v15 = vsub.f32 1.0, %v703_v10 }
 0x7b6   :  { %v705_v49 = vmul.f32 %v3236_v8, %v704_v15 }
 0x7b8   :  { %v706_v14 = vadd.f32 %v3236_v8, %v705_v49 }
 0x7ba   :  { %v710_v20 = vsel %vm709_vm10, %v3236_v8, %v706_v14 }
 0x7bb   :  { %v715_v21 = vsel %vm712_vm11, %v714_v19, %v710_v20 }
 0x7bc   :  { %v716_v27 = vmul.f32 %v3232_v53, %v715_v21 }
 0x7be   :  { %v717_v28 = vmul.f32 %v3619_v47, %v716_v27 }
 0x7c0   :  { %3043 = vmatmul.msk.f32.vlgmr.msrb.gmra.mxu1 %vm242_vm3, %v717_v28  ;;  %v741_v29 = vsel %vm242_vm3, %v717_v28, 0.0 }
 0x7c1   :  { %742 = vadd.xlane.f32.xlu2 %v741_v29 }
 0x7c5   :  { %v592_v36 = vpop.f32.mrf.mxu1 }
 0x7d9   :  { %518 = vrot.lane.b32.xlu2 %v514_v38, %s3398_s7  ;;  %v597_v38 = vpop.xlane.xlu0 %596 }
 0x7da   :  { %v598_v39 = vsub.f32 %v597_v38, %v592_v36 }
 0x7dc   :  { %v599_v41 = vmul.f32 %v598_v39, %v3661_v9 }
 0x7de   :  { %v600_v42 = vmax.f32 %v599_v41, 0.0 }
 0x7e0   :  { %3237 = vrsqrt.f32 %v600_v42  ;;  %vm608_vm12 = vcmp.eq.f32.partialorder %v600_v42, inf  ;;  %vm610_vm13 = vcmp.eq.f32.partialorder %v600_v42, 0.0 }
 0x7e6   :  { %v3238_v44 = vpop.eup %3237 }
 0x7e7   :  { %v602_v48 = vmul.f32 %v3238_v44, %v600_v42 }
 0x7e9   :  { %v603_v50 = vmul.f32 %v3238_v44, %v602_v48  ;;  %v3781_v48 = vld [vmem:[%s4608_s11] ss:$0 sm:$0xff] }
 0x7eb   :  { %v604_v52 = vmul.f32 0.5, %v603_v50 }
 0x7ed   :  { %v605_v56 = vsub.f32 1.5, %v604_v52  ;;  %v3061_v52 = vld [vmem:[%s4662_s6 + $0x38] sm:$0xff] }
 0x7ee   :  { %1124 = vmatpush.msra.mxu3 %v3061_v52 }
 0x7ef   :  { %v606_v58 = vmul.f32 %v3238_v44, %v605_v56 }
 0x7f1   :  { %v607_v59 = vmul.f32 %v606_v58, %v600_v42 }
 0x7f3   :  { %v609_v63 = vsel %vm608_vm12, %v600_v42, %v607_v59 }
 0x834   :  { %v743_v45 = vpop.xlane.xlu2 %742 }
 0x83c   :  { %v519_v26 = vpop.permute.xlu2 %518 }
 0x83d   :  { %v521_v51 = vsel %vm216_vm1, %v3706_v40, %v519_v26  ;;  %v738_v18 = vpop.f32.mrf.mxu1  ;;  %v611_v40 = vand.u32 2147483648, %v600_v42 }
 0x83e   :  { %v744_v53 = vsub.f32 %v743_v45, %v738_v18  ;;  %3045 = vmatmul.msk.f32.vlgmr.msra.gmra.mxu2 %vm153_vm0, %v521_v51 }
 0x83f   :  { %v612_v1 = vsel %vm610_vm13, %v611_v40, %v609_v63 }
 0x840   :  { %v745_v54 = vmul.f32 %v744_v53, %v3661_v9  ;;  %v613_v4 = vmul.f32 %v612_v1, %v310_v33  ;;  %v3059_v53 = vld [vmem:[%s4662_s6 + $0x28] sm:$0xff] }
 0x842   :  { %v746_v57 = vmax.f32 %v745_v54, 0.0  ;;  %v614_v15 = vmul.f32 1.442695, %v613_v4 }
 0x844   :  { %3239 = vrsqrt.f32 %v746_v57  ;;  %vm754_vm14 = vcmp.eq.f32.partialorder %v746_v57, inf  ;;  %v757_v8 = vand.u32 2147483648, %v746_v57  ;;  %vm756_vm15 = vcmp.eq.f32.partialorder %v746_v57, 0.0 }
 0x845   :  { %3241 = vpow2.f32 %v614_v15  ;;  %v3054_v15 = vld [vmem:[%s4652_s10 + $0x38] sm:$0xff] }
 0x84a   :  { %v3240_v60 = vpop.eup %3239 }
 0x84b   :  { %v748_v61 = vmul.f32 %v3240_v60, %v746_v57  ;;  %v3242_v14 = vpop.eup %3241 }
 0x84c   :  { %v616_v21 = vmax.f32 %v3242_v14, 1e-05 }
 0x84d   :  { %v749_v62 = vmul.f32 %v3240_v60, %v748_v61 }
 0x84e   :  { %v617_v33 = vmin.f32 %v616_v21, 100000.0 }
 0x84f   :  { %v750_v0 = vmul.f32 0.5, %v749_v62 }
 0x850   :  { %v618_v31 = vmul.f32 %v617_v33, %v3722_v11 }
 0x851   :  { %v751_v2 = vsub.f32 1.5, %v750_v0 }
 0x853   :  { %v752_v3 = vmul.f32 %v3240_v60, %v751_v2 }
 0x855   :  { %v753_v5 = vmul.f32 %v752_v3, %v746_v57 }
 0x857   :  { %v755_v10 = vsel %vm754_vm14, %v746_v57, %v753_v5 }
 0x858   :  { %v758_v12 = vsel %vm756_vm15, %v757_v8, %v755_v10 }
 0x859   :  { %v759_v49 = vmul.f32 %v758_v12, %v458_v55  ;;  %v619_v55 = vsel %vm3589_vm2, %v618_v31, -1e+32  ;;  %v925_v31 = vld [vmem:[%s4611_s14 + $0x8] sm:$0xff] }
 0x85a   :  { %v620_v32 = vsel %vm242_vm3, %v619_v55, -inf }
 0x85b   :  { %v760_v13 = vmul.f32 1.442695, %v759_v49 }
 0x85d   :  { %3243 = vpow2.f32 %v760_v13  ;;  %v3053_v13 = vld [vmem:[%s4652_s10 + $0x30] sm:$0xff] }
 0x863   :  { %v3244_v19 = vpop.eup %3243 }
 0x864   :  { %v762_v20 = vmax.f32 %v3244_v19, 1e-05 }
 0x866   :  { %v763_v27 = vmin.f32 %v762_v20, 100000.0  ;;  %v3052_v20 = vld [vmem:[%s4652_s10 + $0x28] sm:$0xff] }
 0x868   :  { %v764_v28 = vmul.f32 %v763_v27, %v3730_v43 }
 0x86a   :  { %v765_v29 = vsel %vm3589_vm2, %v764_v28, -1e+32  ;;  %v3051_v28 = vld [vmem:[%s4652_s10 + $0x20] sm:$0xff] }
 0x86b   :  { %v766_v30 = vsel %vm242_vm3, %v765_v29, -inf }
 0x86c   :  { %767 = vmax.xlane.f32.xlu0 %v766_v30  ;;  %v926_v30 = vld [vmem:[%s4611_s14 + $0x10] sm:$0xff] }
 0x874   :  { %621 = vmax.xlane.f32.xlu0 %v620_v32 }
 0x8c1   :  { %v853_v50 = vpop.f32.mrf.mxu2 }
 0x8c2   :  { %v854_v26 = vadd.f32 %v3781_v48, %v853_v50 }
 0x8c4   :  { %v3785_v51 = vadd.f32 %v854_v26, %v3571_v17  ;;  %v3058_v17 = vld [vmem:[%s4662_s6 + $0x20] sm:$0xff] }
 0x8c6   :  { %v863_v18 = vsel %vm153_vm0, %v3785_v51, 0.0 }
 0x8df   :  { %v768_v36 = vpop.xlane.xlu0 %767 }
 0x8e0   :  { %v769_v37 = vsub.f32 %v765_v29, %v768_v36  ;;  %v927_v29 = vld [vmem:[%s4611_s14 + $0x18] sm:$0xff]  ;;  %v3399_v36 = vmov 32.0  }
 0x8e1   :  { %950 = vmatpush.msrb.mxu2 %v927_v29  ;;  %v963_v29 = vld [vmem:[%s4613_s16] sm:$0xff] }
 0x8e2   :  { %v770_v38 = vmul.f32 1.442695, %v769_v37  ;;  %v3845_v37 = vld [vmem:[%s4657_s28 + $0x1] ss:$0 sm:$0xff] }
 0x8e3   :  { %951 = vmatpush.msrb.mxu2 %v926_v30 }
 0x8e4   :  { %3245 = vpow2.f32 %v770_v38 }
 0x8e5   :  { %952 = vmatpush.msrb.mxu2 %v925_v31 }
 0x8e7   :  { %v622_v43 = vpop.xlane.xlu0 %621 }
 0x8e8   :  { %v623_v39 = vsub.f32 %v619_v55, %v622_v43  ;;  %v924_v55 = vld [vmem:[%s4611_s14] sm:$0xff] }
 0x8e9   :  { %953 = vmatpush.msrb.mxu2 %v924_v55 }
 0x8ea   :  { %v3246_v41 = vpop.eup %3245  ;;  %v624_v42 = vmul.f32 1.442695, %v623_v39 }
 0x8eb   :  { %v772_v44 = vsel %vm242_vm3, %v3246_v41, 0.0 }
 0x8ec   :  { %3247 = vpow2.f32 %v624_v42  ;;  %773 = vadd.xlane.f32.xlu0 %v772_v44 }
 0x8f2   :  { %v3248_v45 = vpop.eup %3247 }
 0x8f3   :  { %v626_v11 = vsel %vm242_vm3, %v3248_v45, 0.0 }
 0x8f4   :  { %627 = vadd.xlane.f32.xlu1 %v626_v11 }
 0x900   :  { %791 = vrot.lane.b32.xlu0 %v3699_v24, %s4664_s27  ;;  %v3060_v24 = vld [vmem:[%s4662_s6 + $0x30] sm:$0xff] }
 0x901   :  { %1125 = vmatpush.msra.mxu3 %v3060_v24 }
 0x903   :  { %1126 = vmatpush.msra.mxu3 %v3059_v53 }
 0x905   :  { %1127 = vmatpush.msra.mxu3 %v3058_v17 }
 0x92a   :  { %864 = vadd.xlane.f32.xlu0 %v863_v18 }
 0x95f   :  { %v774_v54 = vpop.xlane.xlu0 %773 }
 0x960   :  { %3249 = vrcp.f32 %v774_v54  ;;  %v786_v60 = vand.u32 2147483648, %v774_v54  ;;  %v784_v62 = vand.u32 2147483647, %v774_v54  ;;  %vm780_vm6 = vweird.f32 %v774_v54 }
 0x962   :  { %v787_v0 = vor.u32 1.1754944e-38, %v786_v60  ;;  %vm785_vm8 = vcmp.eq.f32.partialorder %v784_v62, 8.507059e+37 }
 0x966   :  { %v3250_v56 = vpop.eup %3249 }
 0x967   :  { %v776_v57 = vmul.f32 %v3250_v56, %v774_v54  ;;  %v628_v58 = vpop.xlane.xlu1 %627  ;;  %vm781_vm5 = vweird.f32 %v3250_v56 }
 0x968   :  { %3251 = vrcp.f32 %v628_v58  ;;  %vm782_vm7 = vmor %vm780_vm6, %vm781_vm5  ;;  %v640_v8 = vand.u32 2147483648, %v628_v58  ;;  %v638_v49 = vand.u32 2147483647, %v628_v58  ;;  %vm634_vm10 = vweird.f32 %v628_v58 }
 0x969   :  { %v777_v59 = vsub.f32 1.0, %v776_v57  ;;  %3253 = vrcp.f32 %v3399_v36  ;;  %vm975_vm6 = vcmask 523264  }
 0x96a   :  { %v641_v19 = vor.u32 1.1754944e-38, %v640_v8  ;;  %vm639_vm12 = vcmp.eq.f32.partialorder %v638_v49, 8.507059e+37  ;;  %v968_v49 = vld [vmem:[%s4613_s16 + $0x28] sm:$0xff] }
 0x96b   :  { %v778_v61 = vmul.f32 %v3250_v56, %v777_v59 }
 0x96d   :  { %v779_v63 = vadd.f32 %v3250_v56, %v778_v61 }
 0x96e   :  { %v3252_v40 = vpop.eup %3251 }
 0x96f   :  { %v783_v1 = vsel %vm782_vm7, %v3250_v56, %v779_v63  ;;  %v630_v2 = vmul.f32 %v3252_v40, %v628_v58  ;;  %vm635_vm9 = vweird.f32 %v3252_v40  ;;  %v3254_v38 = vpop.eup %3253 }
 0x970   :  { %v788_v3 = vsel %vm785_vm8, %v787_v0, %v783_v1  ;;  %vm636_vm11 = vmor %vm634_vm10, %vm635_vm9  ;;  %vm874_vm13 = vweird.f32 %v3254_v38 }
 0x971   :  { %v631_v4 = vsub.f32 1.0, %v630_v2  ;;  %v789_v5 = vmul.f32 %v3246_v41, %v788_v3  ;;  %v870_v41 = vmul.f32 32.0, %v3254_v38  ;;  %v3186_v2 = vld [vmem:[%s4610_s13] ss:$0 sm:$0xff]  ;;  %v3871_v3 = vld [vmem:[%s4663_s25 + $0x1] ss:$0 sm:$0xff] }
 0x972   :  { %v792_v10 = vpop.permute.xlu0 %791 }
 0x973   :  { %v632_v12 = vmul.f32 %v3252_v40, %v631_v4  ;;  %812 = vmatpush.msra.mxu1 %v792_v10  ;;  %v871_v42 = vsub.f32 1.0, %v870_v41 }
 0x974   :  { %3044 = vmatmul.msk.f32.vlgmr.msra.gmra.mxu1 %vm242_vm3, %v789_v5 }
 0x975   :  { %v633_v14 = vadd.f32 %v3252_v40, %v632_v12  ;;  %1091 = vmatpush.msrb.mxu1 %v3054_v15  ;;  %v872_v44 = vmul.f32 %v3254_v38, %v871_v42  ;;  %v970_v15 = vld [vmem:[%s4613_s16 + $0x38] sm:$0xff]  ;;  %v969_v12 = vld [vmem:[%s4613_s16 + $0x30] sm:$0xff] }
 0x976   :  { %990 = vmatpush.msrb.mxu0 %v970_v15 }
 0x977   :  { %v637_v21 = vsel %vm636_vm11, %v3252_v40, %v633_v14  ;;  %1092 = vmatpush.msrb.mxu1 %v3053_v13  ;;  %v3863_v40 = vld [vmem:[%s4609_s12] ss:$0 sm:$0xff]  ;;  %v966_v14 = vld [vmem:[%s4613_s16 + $0x18] sm:$0xff] }
 0x978   :  { %v642_v27 = vsel %vm639_vm12, %v641_v19, %v637_v21  ;;  %991 = vmatpush.msrb.mxu0 %v969_v12  ;;  %v967_v13 = vld [vmem:[%s4613_s16 + $0x20] sm:$0xff] }
 0x979   :  { %1093 = vmatpush.msrb.mxu1 %v3052_v20  ;;  %v643_v33 = vmul.f32 %v3248_v45, %v642_v27  ;;  %v873_v45 = vadd.f32 %v3254_v38, %v872_v44 }
 0x97a   :  { %992 = vmatpush.msrb.mxu0 %v968_v49 }
 0x97b   :  { %3039 = vmatmul.msk.f32.vlgmr.msrb.gmra.mxu3 %vm242_vm3, %v643_v33  ;;  %1094 = vmatpush.msrb.mxu1 %v3051_v28  ;;  %v3852_v11 = vsel %vm874_vm13, %v3254_v38, %v873_v45  ;;  %v965_v28 = vld [vmem:[%s4613_s16 + $0x10] sm:$0xff]  ;;  %v964_v33 = vld [vmem:[%s4613_s16 + $0x8] sm:$0xff] }
 0x97c   :  { %3056 = vmatmul.msk.f32.vlgmr.msrb.gmra.mxu1 %vm153_vm0, %v3569_v16  ;;  %993 = vmatpush.msrb.mxu0 %v967_v13 }
 0x97d   :  { %3067 = vmatpush.msk.msra.mxu1 %vm3603_vm4, %v3396_v35 }
 0x97e   :  { %994 = vmatpush.msrb.mxu0 %v966_v14 }
 0x97f   :  { %3073 = vmatpush.msk.msrb.mxu1 %vm3603_vm4, %v3396_v35 }
 0x980   :  { %995 = vmatpush.msrb.mxu0 %v965_v28 }
 0x982   :  { %996 = vmatpush.msrb.mxu0 %v964_v33 }
 0x983   :  { %3063 = vmatmul.msk.f32.vlgmr.msra.gmra.mxu3 %vm153_vm0, %v3569_v16 }
 0x984   :  { %3057 = vmatmul.msk.f32.gmra.mxu1 %vm153_vm0, %v3655_v6  ;;  %997 = vmatpush.msrb.mxu0 %v963_v29 }
 0x98b   :  { %3064 = vmatmul.msk.f32.gmra.mxu3 %vm153_vm0, %v3655_v6 }
 0x99d   :  { %v865_v50 = vpop.xlane.xlu0 %864 }
 0x99e   :  { %v876_v26 = vmul.f32 %v3852_v11, %v865_v50 }
 0x9a0   :  { %v878_v18 = vsub.f32 %v3785_v51, %v876_v26 }
 0x9a2   :  { %v880_v52 = vmul.f32 %v878_v18, %v878_v18 }
 0x9a4   :  { %v882_v24 = vsel %vm153_vm0, %v880_v52, 0.0 }
 0x9f1   :  { %v814_v32 = vpop.f32.mrf.mxu1 }
 0x9f2   :  { %818 = vrot.lane.b32.xlu1 %v814_v32, %s3398_s7 }
 0x9f9   :  { %v1096_v43 = vpop.f32.mrf.mxu1 }
 0x9fa   :  { %v3848_v39 = vadd.f32 %v3845_v37, %v1096_v43 }
 0x9fc   :  { %3065 = vmatpush.xpose.msk.msra.mxu2 %vm216_vm1, %v3848_v39 }
 0x9fe   :  { %v664_v53 = vpop.f32.mrf.mxu3 }
 0xa06   :  { %v1129_v4 = vpop.f32.mrf.mxu3 }
 0xa07   :  { %v3877_v10 = vadd.f32 %v3871_v3, %v1129_v4 }
 0xa1c   :  { %883 = vadd.xlane.f32.xlu1 %v882_v24 }
 0xa64   :  { %v819_v54 = vpop.permute.xlu1 %818 }
 0xa65   :  { %v821_v17 = vsel %vm216_vm1, %v664_v53, %v819_v54 }
 0xa66   :  { %3046 = vmatmul.msk.f32.gmra.mxu2 %vm153_vm0, %v821_v17 }
 0xa8f   :  { %v884_v56 = vpop.xlane.xlu1 %883 }
 0xa90   :  { %v888_v57 = vmul.f32 %v884_v56, %v3852_v11 }
 0xa92   :  { %v890_v58 = vadd.f32 1e-05, %v888_v57 }
 0xa94   :  { %3255 = vrsqrt.f32 %v890_v58  ;;  %vm898_vm15 = vweird.f32 %v890_v58 }
 0xa9a   :  { %v3256_v59 = vpop.eup %3255 }
 0xa9b   :  { %v893_v60 = vmul.f32 %v3256_v59, %v890_v58  ;;  %vm899_vm14 = vweird.f32 %v3256_v59  ;;  %v1099_v58 = vpop.f32.mrf.mxu1 }
 0xa9c   :  { %vm900_vm5 = vmor %vm898_vm15, %vm899_vm14 }
 0xa9d   :  { %v894_v61 = vmul.f32 %v3256_v59, %v893_v60 }
 0xa9f   :  { %v895_v62 = vmul.f32 0.5, %v894_v61 }
 0xaa1   :  { %v896_v51 = vsub.f32 1.5, %v895_v62 }
 0xaa3   :  { %v897_v63 = vmul.f32 %v3256_v59, %v896_v51 }
 0xaa5   :  { %v901_v0 = vsel %vm900_vm5, %v3256_v59, %v897_v63  ;;  %v3928_v59 = vadd.f32 %v3845_v37, %v1099_v58 }
 0xaa6   :  { %v912_v1 = vmul.f32 %v901_v0, %v878_v18 }
 0xaa8   :  { %v917_v5 = vmul.f32 %v3863_v40, %v912_v1 }
 0xaaa   :  { %v3874_v8 = vadd.f32 %v3186_v2, %v917_v5 }
 0xaac   :  { %3047 = vmatmul.msk.f32.vlgmr.msrb.gmra.mxu2 %vm153_vm0, %v3874_v8 }
 0xaad   :  { %1277 = vmatpush.msrb.mxu2 %v3877_v10 }
 0xae9   :  { %v856_v19 = vpop.f32.mrf.mxu2 }
 0xaea   :  { %v857_v20 = vadd.f32 %v3781_v48, %v856_v19 }
 0xaec   :  { %v860_v21 = vadd.f32 %v857_v20, %v3657_v7  ;;  %v3187_v7 = vld [vmem:[%s4612_s15] ss:$0 sm:$0xff] }
 0xaee   :  { %v866_v27 = vsel %vm153_vm0, %v860_v21, 0.0 }
 0xaef   :  { %867 = vadd.xlane.f32.xlu2 %v866_v27 }
 0xb2f   :  { %v955_v48 = vpop.f32.mrf.mxu2 }
 0xb30   :  { %v956_v30 = vadd.f32 %v3187_v7, %v955_v48 }
 0xb32   :  { %v961_v31 = vmax.f32 %v956_v30, 0.0 }
 0xb34   :  { %3049 = vmatmul.msk.f32.vlgmr.msrb.gmra.mxu0 %vm975_vm6, %v961_v31 }
 0xb62   :  { %v868_v55 = vpop.xlane.xlu2 %867 }
 0xb63   :  { %v877_v32 = vmul.f32 %v3852_v11, %v868_v55 }
 0xb65   :  { %v879_v36 = vsub.f32 %v860_v21, %v877_v32 }
 0xb67   :  { %v881_v38 = vmul.f32 %v879_v36, %v879_v36 }
 0xb69   :  { %v885_v43 = vsel %vm153_vm0, %v881_v38, 0.0 }
 0xb6a   :  { %886 = vadd.xlane.f32.xlu0 %v885_v43 }
 0xb7e   :  { %1282 = vrot.lane.b32.xlu0 %v3848_v39, %s4664_s27 }
 0xbdd   :  { %v887_v41 = vpop.xlane.xlu0 %886 }
 0xbde   :  { %v889_v42 = vmul.f32 %v887_v41, %v3852_v11  ;;  %v1132_v41 = vpop.f32.mrf.mxu3 }
 0xbe0   :  { %v891_v44 = vadd.f32 1e-05, %v889_v42 }
 0xbe2   :  { %3257 = vrsqrt.f32 %v891_v44  ;;  %vm908_vm8 = vweird.f32 %v891_v44 }
 0xbe8   :  { %v3258_v45 = vpop.eup %3257 }
 0xbe9   :  { %v903_v50 = vmul.f32 %v3258_v45, %v891_v44  ;;  %vm909_vm7 = vweird.f32 %v3258_v45 }
 0xbea   :  { %vm910_vm9 = vmor %vm908_vm8, %vm909_vm7 }
 0xbeb   :  { %v904_v26 = vmul.f32 %v3258_v45, %v903_v50 }
 0xbed   :  { %v905_v18 = vmul.f32 0.5, %v904_v26 }
 0xbef   :  { %v906_v52 = vsub.f32 1.5, %v905_v18 }
 0xbf0   :  { %v1283_v24 = vpop.permute.xlu0 %1282 }
 0xbf1   :  { %v907_v53 = vmul.f32 %v3258_v45, %v906_v52  ;;  %3071 = vmatpush.xpose.msk.msra.mxu0 %vm216_vm1, %v1283_v24 }
 0xbf3   :  { %v911_v54 = vsel %vm910_vm9, %v3258_v45, %v907_v53  ;;  %v3956_v45 = vadd.f32 %v3871_v3, %v1132_v41 }
 0xbf4   :  { %v913_v17 = vmul.f32 %v911_v54, %v879_v36 }
 0xbf5   :  { %3079 = vmatpush.msk.msrb.mxu0 %vm3603_vm4, %v3396_v35 }
 0xbf6   :  { %v918_v56 = vmul.f32 %v3863_v40, %v913_v17 }
 0xbf8   :  { %v3923_v57 = vadd.f32 %v3186_v2, %v918_v56 }
 0xbfa   :  { %3048 = vmatmul.msk.f32.gmra.mxu2 %vm153_vm0, %v3923_v57 }
 0xc02   :  { %3066 = vmatmul.msk.f32.vlgmr.msra.gmra.mxu2 %vm216_vm1, %v3848_v39  ;;  %v3942_v39 = vpop.f32.mrf.mxu0 }
 0xc03   :  { %3077 = vmatpush.xpose.msk.msra.mxu2 %vm216_vm1, %v3928_v59 }
 0xc7d   :  { %v958_v60 = vpop.f32.mrf.mxu2 }
 0xc7e   :  { %v959_v61 = vadd.f32 %v3187_v7, %v958_v60 }
 0xc80   :  { %v962_v62 = vmax.f32 %v959_v61, 0.0 }
 0xc82   :  { %3050 = vmatmul.msk.f32.gmra.mxu0 %vm975_vm6, %v962_v62 }
 0xc85   :  { %v1155_v51 = vpop.f32.mrf.mxu2 }
 0xc86   :  { %v3935_v63 = vmul.f32 0.25, %v1155_v51 }
 0xc88   :  { %v1159_v40 = vsel %vm3589_vm2, %v3935_v63, -1e+32 }
 0xc89   :  { %v1160_v37 = vsel %vm242_vm3, %v1159_v40, -inf }
 0xc8a   :  { %1161 = vmax.xlane.f32.xlu2 %v1160_v37  ;;  %3072 = vmatmul.msk.f32.vlgmr.msra.gmra.mxu0 %vm216_vm1, %v1283_v24 }
 0xcfd   :  { %v1162_v0 = vpop.xlane.xlu2 %1161 }
 0xcfe   :  { %v1163_v1 = vsub.f32 %v1159_v40, %v1162_v0 }
 0xcff   :  { %v3944_v2 = vpop.f32.mrf.mxu0 }
 0xd00   :  { %v1164_v4 = vmul.f32 1.442695, %v1163_v1 }
 0xd02   :  { %3259 = vpow2.f32 %v1164_v4 }
 0xd07   :  { %v1303_v5 = vpop.f32.mrf.mxu0 }
 0xd08   :  { %v3260_v15 = vpop.eup %3259  ;;  %v3946_v12 = vmul.f32 0.25, %v1303_v5 }
 0xd09   :  { %v1166_v49 = vsel %vm242_vm3, %v3260_v15, 0.0 }
 0xd0a   :  { %1167 = vadd.xlane.f32.xlu2 %v1166_v49  ;;  %v1307_v13 = vsel %vm3589_vm2, %v3946_v12, -1e+32 }
 0xd0b   :  { %v1308_v14 = vsel %vm242_vm3, %v1307_v13, -inf }
 0xd0c   :  { %1309 = vmax.xlane.f32.xlu1 %v1308_v14 }
 0xd7d   :  { %v1168_v19 = vpop.xlane.xlu2 %1167 }
 0xd7e   :  { %3261 = vrcp.f32 %v1168_v19  ;;  %v1180_v7 = vand.u32 2147483648, %v1168_v19  ;;  %v1178_v30 = vand.u32 2147483647, %v1168_v19  ;;  %vm1174_vm11 = vweird.f32 %v1168_v19 }
 0xd7f   :  { %v1310_v20 = vpop.xlane.xlu1 %1309 }
 0xd80   :  { %v1311_v21 = vsub.f32 %v1307_v13, %v1310_v20  ;;  %v1181_v36 = vor.u32 1.1754944e-38, %v1180_v7  ;;  %vm1179_vm13 = vcmp.eq.f32.partialorder %v1178_v30, 8.507059e+37 }
 0xd82   :  { %v1312_v27 = vmul.f32 1.442695, %v1311_v21 }
 0xd84   :  { %v3262_v28 = vpop.eup %3261  ;;  %3263 = vpow2.f32 %v1312_v27  ;;  %v1227_v27 = vstv %s3965_s1 }
 0xd85   :  { %v1170_v33 = vmul.f32 %v3262_v28, %v1168_v19  ;;  %vm1175_vm10 = vweird.f32 %v3262_v28 }
 0xd86   :  { %vm1176_vm12 = vmor %vm1174_vm11, %vm1175_vm10 }
 0xd87   :  { %v1171_v29 = vsub.f32 1.0, %v1170_v33 }
 0xd89   :  { %v1172_v48 = vmul.f32 %v3262_v28, %v1171_v29 }
 0xd8a   :  { %v3264_v31 = vpop.eup %3263 }
 0xd8b   :  { %v1173_v55 = vadd.f32 %v3262_v28, %v1172_v48  ;;  %v1314_v32 = vsel %vm242_vm3, %v3264_v31, 0.0 }
 0xd8c   :  { %1315 = vadd.xlane.f32.xlu1 %v1314_v32 }
 0xd8d   :  { %v1177_v38 = vsel %vm1176_vm12, %v3262_v28, %v1173_v55 }
 0xd8e   :  { %v1182_v43 = vsel %vm1179_vm13, %v1181_v36, %v1177_v38 }
 0xd8f   :  { %v1183_v42 = vmul.f32 %v3260_v15, %v1182_v43 }
 0xd91   :  { %v1184_v44 = vmul.f32 %v3619_v47, %v1183_v42 }
 0xd93   :  { %3068 = vmatmul.msk.f32.vlgmr.msra.gmra.mxu1 %vm242_vm3, %v1184_v44  ;;  %v1208_v50 = vsel %vm242_vm3, %v1184_v44, 0.0 }
 0xd94   :  { %1579 = vmatpush.msra.mxu1 %v3956_v45  ;;  %1209 = vadd.xlane.f32.xlu2 %v1208_v50 }
 0xdff   :  { %v1316_v26 = vpop.xlane.xlu1 %1315 }
 0xe00   :  { %3265 = vrcp.f32 %v1316_v26  ;;  %v1328_v53 = vand.u32 2147483648, %v1316_v26  ;;  %v1326_v17 = vand.u32 2147483647, %v1316_v26  ;;  %vm1322_vm15 = vweird.f32 %v1316_v26 }
 0xe02   :  { %v1329_v3 = vor.u32 1.1754944e-38, %v1328_v53  ;;  %vm1327_vm7 = vcmp.eq.f32.partialorder %v1326_v17, 8.507059e+37  ;;  %v1375_v17 = vstv %s3975_s23 }
 0xe06   :  { %v3266_v18 = vpop.eup %3265 }
 0xe07   :  { %v1318_v52 = vmul.f32 %v3266_v18, %v1316_v26  ;;  %vm1323_vm14 = vweird.f32 %v3266_v18  ;;  %v1210_v61 = vpop.xlane.xlu2 %1209 }
 0xe08   :  { %vm1324_vm5 = vmor %vm1322_vm15, %vm1323_vm14 }
 0xe09   :  { %v1319_v24 = vsub.f32 1.0, %v1318_v52 }
 0xe0b   :  { %v1320_v54 = vmul.f32 %v3266_v18, %v1319_v24 }
 0xe0d   :  { %v1321_v56 = vadd.f32 %v3266_v18, %v1320_v54 }
 0xe0f   :  { %v1325_v58 = vsel %vm1324_vm5, %v3266_v18, %v1321_v56 }
 0xe10   :  { %v1330_v60 = vsel %vm1327_vm7, %v1329_v3, %v1325_v58  ;;  %v1205_v62 = vpop.f32.mrf.mxu1 }
 0xe11   :  { %v1331_v51 = vmul.f32 %v3264_v31, %v1330_v60  ;;  %v1211_v40 = vsub.f32 %v1210_v61, %v1205_v62 }
 0xe13   :  { %v1212_v37 = vmul.f32 %v1211_v40, %v3661_v9  ;;  %v1332_v0 = vmul.f32 %v3619_v47, %v1331_v51 }
 0xe15   :  { %v1213_v1 = vmax.f32 %v1212_v37, 0.0  ;;  %3074 = vmatmul.msk.f32.vlgmr.msrb.gmra.mxu1 %vm242_vm3, %v1332_v0  ;;  %v1356_v4 = vsel %vm242_vm3, %v1332_v0, 0.0 }
 0xe16   :  { %1357 = vadd.xlane.f32.xlu0 %v1356_v4 }
 0xe17   :  { %3267 = vrsqrt.f32 %v1213_v1  ;;  %vm1221_vm8 = vcmp.eq.f32.partialorder %v1213_v1, inf  ;;  %v1224_v21 = vand.u32 2147483648, %v1213_v1  ;;  %vm1223_vm9 = vcmp.eq.f32.partialorder %v1213_v1, 0.0 }
 0xe1d   :  { %v3268_v5 = vpop.eup %3267 }
 0xe1e   :  { %v1215_v15 = vmul.f32 %v3268_v5, %v1213_v1 }
 0xe20   :  { %v1216_v49 = vmul.f32 %v3268_v5, %v1215_v15 }
 0xe22   :  { %v1217_v13 = vmul.f32 0.5, %v1216_v49 }
 0xe24   :  { %v1218_v14 = vsub.f32 1.5, %v1217_v13 }
 0xe26   :  { %v1219_v19 = vmul.f32 %v3268_v5, %v1218_v14 }
 0xe28   :  { %v1220_v20 = vmul.f32 %v1219_v19, %v1213_v1 }
 0xe2a   :  { %v1222_v28 = vsel %vm1221_vm8, %v1213_v1, %v1220_v20 }
 0xe2b   :  { %v1225_v33 = vsel %vm1223_vm9, %v1224_v21, %v1222_v28 }
 0xe2c   :  { %v1228_v29 = vmul.f32 %v1227_v27, %v1225_v33 }
 0xe2e   :  { %v1229_v7 = vmul.f32 1.442695, %v1228_v29 }
 0xe30   :  { %3269 = vpow2.f32 %v1229_v7 }
 0xe36   :  { %v3270_v48 = vpop.eup %3269 }
 0xe37   :  { %v1231_v30 = vmax.f32 %v3270_v48, 1e-05 }
 0xe39   :  { %v1232_v31 = vmin.f32 %v1231_v30, 100000.0 }
 0xe3b   :  { %v1233_v55 = vmul.f32 %v1232_v31, %v3935_v63 }
 0xe3d   :  { %v1234_v32 = vsel %vm3589_vm2, %v1233_v55, -1e+32 }
 0xe3e   :  { %v1235_v36 = vsel %vm242_vm3, %v1234_v32, -inf }
 0xe3f   :  { %1236 = vmax.xlane.f32.xlu1 %v1235_v36 }
 0xe89   :  { %v1358_v38 = vpop.xlane.xlu0 %1357 }
 0xe92   :  { %v1353_v43 = vpop.f32.mrf.mxu1 }
 0xe93   :  { %v1359_v41 = vsub.f32 %v1358_v38, %v1353_v43 }
 0xe95   :  { %v1360_v42 = vmul.f32 %v1359_v41, %v3661_v9 }
 0xe97   :  { %v1361_v44 = vmax.f32 %v1360_v42, 0.0 }
 0xe99   :  { %3271 = vrsqrt.f32 %v1361_v44  ;;  %vm1369_vm10 = vcmp.eq.f32.partialorder %v1361_v44, inf  ;;  %v1372_v54 = vand.u32 2147483648, %v1361_v44  ;;  %vm1371_vm11 = vcmp.eq.f32.partialorder %v1361_v44, 0.0 }
 0xe9f   :  { %v3272_v50 = vpop.eup %3271 }
 0xea0   :  { %v1363_v26 = vmul.f32 %v3272_v50, %v1361_v44 }
 0xea2   :  { %v1364_v18 = vmul.f32 %v3272_v50, %v1363_v26 }
 0xea4   :  { %v1365_v63 = vmul.f32 0.5, %v1364_v18 }
 0xea6   :  { %v1366_v52 = vsub.f32 1.5, %v1365_v63 }
 0xea8   :  { %v1367_v24 = vmul.f32 %v3272_v50, %v1366_v52 }
 0xeaa   :  { %v1368_v53 = vmul.f32 %v1367_v24, %v1361_v44 }
 0xeac   :  { %v1370_v56 = vsel %vm1369_vm10, %v1361_v44, %v1368_v53 }
 0xead   :  { %v1373_v3 = vsel %vm1371_vm11, %v1372_v54, %v1370_v56 }
 0xeae   :  { %v1376_v58 = vmul.f32 %v1375_v17, %v1373_v3 }
 0xeb0   :  { %v1377_v60 = vmul.f32 1.442695, %v1376_v58 }
 0xeb2   :  { %v1237_v61 = vpop.xlane.xlu1 %1236  ;;  %3273 = vpow2.f32 %v1377_v60 }
 0xeb3   :  { %v1238_v62 = vsub.f32 %v1234_v32, %v1237_v61 }
 0xeb5   :  { %v1239_v51 = vmul.f32 1.442695, %v1238_v62 }
 0xeb7   :  { %3275 = vpow2.f32 %v1239_v51 }
 0xeb8   :  { %v3274_v40 = vpop.eup %3273 }
 0xeb9   :  { %v1379_v37 = vmax.f32 %v3274_v40, 1e-05 }
 0xebb   :  { %v1380_v0 = vmin.f32 %v1379_v37, 100000.0 }
 0xebd   :  { %v3276_v1 = vpop.eup %3275  ;;  %v1381_v4 = vmul.f32 %v1380_v0, %v3946_v12 }
 0xebe   :  { %v1241_v5 = vsel %vm242_vm3, %v3276_v1, 0.0 }
 0xebf   :  { %1242 = vadd.xlane.f32.xlu1 %v1241_v5  ;;  %v1382_v15 = vsel %vm3589_vm2, %v1381_v4, -1e+32 }
 0xec0   :  { %v1383_v49 = vsel %vm242_vm3, %v1382_v15, -inf }
 0xec1   :  { %1384 = vmax.xlane.f32.xlu2 %v1383_v49 }
 0xed8   :  { %1408 = vrot.lane.b32.xlu1 %v3877_v10, %s4664_s27 }
 0xf32   :  { %v1243_v13 = vpop.xlane.xlu1 %1242 }
 0xf33   :  { %3277 = vrcp.f32 %v1243_v13  ;;  %v1255_v33 = vand.u32 2147483648, %v1243_v13  ;;  %v1253_v7 = vand.u32 2147483647, %v1243_v13  ;;  %vm1249_vm13 = vweird.f32 %v1243_v13 }
 0xf34   :  { %v1385_v14 = vpop.xlane.xlu2 %1384 }
 0xf35   :  { %v1386_v19 = vsub.f32 %v1382_v15, %v1385_v14  ;;  %v1256_v10 = vor.u32 1.1754944e-38, %v1255_v33  ;;  %vm1254_vm15 = vcmp.eq.f32.partialorder %v1253_v7, 8.507059e+37 }
 0xf37   :  { %v1387_v20 = vmul.f32 1.442695, %v1386_v19 }
 0xf39   :  { %v3278_v21 = vpop.eup %3277  ;;  %3279 = vpow2.f32 %v1387_v20 }
 0xf3a   :  { %v1245_v12 = vmul.f32 %v3278_v21, %v1243_v13  ;;  %vm1250_vm12 = vweird.f32 %v3278_v21 }
 0xf3b   :  { %vm1251_vm14 = vmor %vm1249_vm13, %vm1250_vm12 }
 0xf3c   :  { %v1246_v28 = vsub.f32 1.0, %v1245_v12 }
 0xf3e   :  { %v1247_v29 = vmul.f32 %v3278_v21, %v1246_v28 }
 0xf3f   :  { %v3280_v48 = vpop.eup %3279 }
 0xf40   :  { %v1248_v30 = vadd.f32 %v3278_v21, %v1247_v29  ;;  %v1389_v31 = vsel %vm242_vm3, %v3280_v48, 0.0 }
 0xf41   :  { %1390 = vadd.xlane.f32.xlu2 %v1389_v31 }
 0xf42   :  { %v1252_v55 = vsel %vm1251_vm14, %v3278_v21, %v1248_v30 }
 0xf43   :  { %v1257_v32 = vsel %vm1254_vm15, %v1256_v10, %v1252_v55 }
 0xf44   :  { %v1258_v36 = vmul.f32 %v3276_v1, %v1257_v32 }
 0xf46   :  { %3070 = vmatmul.msk.f32.vlgmr.msrb.gmra.mxu2 %vm242_vm3, %v1258_v36 }
 0xf47   :  { %3084 = vmatpush.msk.msrb.mxu2 %vm3603_vm4, %v3396_v35 }
 0xf4a   :  { %v1409_v38 = vpop.permute.xlu1 %1408 }
 0xf4b   :  { %1429 = vmatpush.msrb.mxu3 %v1409_v38 }
 0xf4e   :  { %3078 = vmatmul.msk.f32.vlgmr.msra.gmra.mxu2 %vm216_vm1, %v3928_v59 }
 0xf59   :  { %1584 = vrot.lane.b32.xlu2 %v3928_v59, %s4664_s27 }
 0xfb4   :  { %v1391_v43 = vpop.xlane.xlu2 %1390 }
 0xfb5   :  { %3281 = vrcp.f32 %v1391_v43  ;;  %v1403_v26 = vand.u32 2147483648, %v1391_v43  ;;  %v1401_v63 = vand.u32 2147483647, %v1391_v43  ;;  %vm1397_vm7 = vweird.f32 %v1391_v43 }
 0xfb7   :  { %v1404_v24 = vor.u32 1.1754944e-38, %v1403_v26  ;;  %vm1402_vm9 = vcmp.eq.f32.partialorder %v1401_v63, 8.507059e+37 }
 0xfbb   :  { %v3282_v41 = vpop.eup %3281 }
 0xfbc   :  { %v1393_v42 = vmul.f32 %v3282_v41, %v1391_v43  ;;  %v1585_v44 = vpop.permute.xlu2 %1584  ;;  %vm1398_vm5 = vweird.f32 %v3282_v41 }
 0xfbd   :  { %3082 = vmatpush.xpose.msk.msra.mxu3 %vm216_vm1, %v1585_v44  ;;  %vm1399_vm8 = vmor %vm1397_vm7, %vm1398_vm5 }
 0xfbe   :  { %v1394_v50 = vsub.f32 1.0, %v1393_v42 }
 0xfc0   :  { %v1395_v18 = vmul.f32 %v3282_v41, %v1394_v50 }
 0xfc2   :  { %v1396_v52 = vadd.f32 %v3282_v41, %v1395_v18 }
 0xfc4   :  { %v1400_v53 = vsel %vm1399_vm8, %v3282_v41, %v1396_v52 }
 0xfc5   :  { %v1405_v54 = vsel %vm1402_vm9, %v1404_v24, %v1400_v53 }
 0xfc6   :  { %v1406_v59 = vmul.f32 %v3280_v48, %v1405_v54 }
 0xfc8   :  { %3076 = vmatmul.msk.f32.vlgmr.msrb.gmra.mxu3 %vm242_vm3, %v1406_v59 }
 0xfc9   :  { %v3998_v56 = vpop.f32.mrf.mxu2 }
 0xfd0   :  { %3083 = vmatmul.msk.f32.vlgmr.msra.gmra.mxu3 %vm216_vm1, %v1585_v44 }
 0xfd1   :  { %v1459_v3 = vpop.f32.mrf.mxu2 }
 0xfd2   :  { %v4001_v58 = vmul.f32 0.25, %v1459_v3 }
 0xfd4   :  { %v1463_v60 = vsel %vm3589_vm2, %v4001_v58, -1e+32 }
 0xfd5   :  { %v1464_v61 = vsel %vm242_vm3, %v1463_v60, -inf }
 0xfd6   :  { %1465 = vmax.xlane.f32.xlu0 %v1464_v61 }
0x1049   :  { %v1466_v62 = vpop.xlane.xlu0 %1465 }
0x104a   :  { %v1467_v51 = vsub.f32 %v1463_v60, %v1466_v62 }
0x104b   :  { %v4007_v40 = vpop.f32.mrf.mxu3 }
0x104c   :  { %v1468_v37 = vmul.f32 1.442695, %v1467_v51 }
0x104e   :  { %3283 = vpow2.f32 %v1468_v37 }
0x1053   :  { %v1605_v0 = vpop.f32.mrf.mxu3 }
0x1054   :  { %v3284_v1 = vpop.eup %3283  ;;  %v4009_v4 = vmul.f32 0.25, %v1605_v0 }
0x1055   :  { %v1470_v5 = vsel %vm242_vm3, %v3284_v1, 0.0 }
0x1056   :  { %1471 = vadd.xlane.f32.xlu2 %v1470_v5  ;;  %v1609_v15 = vsel %vm3589_vm2, %v4009_v4, -1e+32 }
0x1057   :  { %v1610_v49 = vsel %vm242_vm3, %v1609_v15, -inf }
0x1058   :  { %1611 = vmax.xlane.f32.xlu1 %v1610_v49 }
0x10c9   :  { %v1472_v13 = vpop.xlane.xlu2 %1471 }
0x10ca   :  { %3285 = vrcp.f32 %v1472_v13  ;;  %v1484_v33 = vand.u32 2147483648, %v1472_v13  ;;  %v1482_v7 = vand.u32 2147483647, %v1472_v13  ;;  %vm1478_vm11 = vweird.f32 %v1472_v13 }
0x10cb   :  { %v1612_v14 = vpop.xlane.xlu1 %1611 }
0x10cc   :  { %v1613_v19 = vsub.f32 %v1609_v15, %v1612_v14  ;;  %v1485_v10 = vor.u32 1.1754944e-38, %v1484_v33  ;;  %vm1483_vm13 = vcmp.eq.f32.partialorder %v1482_v7, 8.507059e+37 }
0x10ce   :  { %v1614_v20 = vmul.f32 1.442695, %v1613_v19 }
0x10d0   :  { %v3286_v21 = vpop.eup %3285  ;;  %3287 = vpow2.f32 %v1614_v20 }
0x10d1   :  { %v1474_v12 = vmul.f32 %v3286_v21, %v1472_v13  ;;  %vm1479_vm10 = vweird.f32 %v3286_v21 }
0x10d2   :  { %vm1480_vm12 = vmor %vm1478_vm11, %vm1479_vm10 }
0x10d3   :  { %v1475_v28 = vsub.f32 1.0, %v1474_v12 }
0x10d5   :  { %v1476_v29 = vmul.f32 %v3286_v21, %v1475_v28 }
0x10d6   :  { %v3288_v48 = vpop.eup %3287 }
0x10d7   :  { %v1477_v30 = vadd.f32 %v3286_v21, %v1476_v29  ;;  %v1616_v31 = vsel %vm242_vm3, %v3288_v48, 0.0 }
0x10d8   :  { %1617 = vadd.xlane.f32.xlu0 %v1616_v31 }
0x10d9   :  { %v1481_v55 = vsel %vm1480_vm12, %v3286_v21, %v1477_v30 }
0x10da   :  { %v1486_v32 = vsel %vm1483_vm13, %v1485_v10, %v1481_v55 }
0x10db   :  { %v1487_v36 = vmul.f32 %v3284_v1, %v1486_v32 }
0x10dd   :  { %v1488_v38 = vmul.f32 %v3619_v47, %v1487_v36 }
0x10df   :  { %3080 = vmatmul.msk.f32.vlgmr.msrb.gmra.mxu0 %vm242_vm3, %v1488_v38  ;;  %v1512_v43 = vsel %vm242_vm3, %v1488_v38, 0.0 }
0x10e0   :  { %1513 = vadd.xlane.f32.xlu0 %v1512_v43 }
0x114b   :  { %v1618_v41 = vpop.xlane.xlu0 %1617 }
0x114c   :  { %3289 = vrcp.f32 %v1618_v41  ;;  %v1630_v26 = vand.u32 2147483648, %v1618_v41  ;;  %v1628_v63 = vand.u32 2147483647, %v1618_v41  ;;  %vm1624_vm15 = vweird.f32 %v1618_v41 }
0x114e   :  { %v1631_v24 = vor.u32 1.1754944e-38, %v1630_v26  ;;  %vm1629_vm7 = vcmp.eq.f32.partialorder %v1628_v63, 8.507059e+37 }
0x1152   :  { %v3290_v42 = vpop.eup %3289 }
0x1153   :  { %v1620_v44 = vmul.f32 %v3290_v42, %v1618_v41  ;;  %vm1625_vm14 = vweird.f32 %v3290_v42  ;;  %v1514_v59 = vpop.xlane.xlu0 %1513 }
0x1154   :  { %vm1626_vm5 = vmor %vm1624_vm15, %vm1625_vm14 }
0x1155   :  { %v1621_v50 = vsub.f32 1.0, %v1620_v44 }
0x1157   :  { %v1622_v18 = vmul.f32 %v3290_v42, %v1621_v50 }
0x1159   :  { %v1623_v52 = vadd.f32 %v3290_v42, %v1622_v18 }
0x115b   :  { %v1627_v53 = vsel %vm1626_vm5, %v3290_v42, %v1623_v52 }
0x115c   :  { %v1632_v54 = vsel %vm1629_vm7, %v1631_v24, %v1627_v53  ;;  %v1509_v3 = vpop.f32.mrf.mxu0 }
0x115d   :  { %v1633_v60 = vmul.f32 %v3288_v48, %v1632_v54  ;;  %v1515_v61 = vsub.f32 %v1514_v59, %v1509_v3 }
0x115f   :  { %v1516_v62 = vmul.f32 %v1515_v61, %v3661_v9  ;;  %v1634_v51 = vmul.f32 %v3619_v47, %v1633_v60 }
0x1161   :  { %v1517_v37 = vmax.f32 %v1516_v62, 0.0  ;;  %3085 = vmatmul.msk.f32.vlgmr.msrb.gmra.mxu2 %vm242_vm3, %v1634_v51  ;;  %v1658_v0 = vsel %vm242_vm3, %v1634_v51, 0.0 }
0x1162   :  { %1659 = vadd.xlane.f32.xlu0 %v1658_v0 }
0x1163   :  { %3291 = vrsqrt.f32 %v1517_v37  ;;  %vm1525_vm8 = vcmp.eq.f32.partialorder %v1517_v37, inf  ;;  %v1528_v20 = vand.u32 2147483648, %v1517_v37  ;;  %vm1527_vm9 = vcmp.eq.f32.partialorder %v1517_v37, 0.0 }
0x1169   :  { %v3292_v1 = vpop.eup %3291 }
0x116a   :  { %v1519_v5 = vmul.f32 %v3292_v1, %v1517_v37 }
0x116c   :  { %v1520_v15 = vmul.f32 %v3292_v1, %v1519_v5 }
0x116e   :  { %v1521_v49 = vmul.f32 0.5, %v1520_v15 }
0x1170   :  { %v1522_v13 = vsub.f32 1.5, %v1521_v49 }
0x1172   :  { %v1523_v14 = vmul.f32 %v3292_v1, %v1522_v13 }
0x1174   :  { %v1524_v19 = vmul.f32 %v1523_v14, %v1517_v37 }
0x1176   :  { %v1526_v21 = vsel %vm1525_vm8, %v1517_v37, %v1524_v19 }
0x1177   :  { %v1529_v47 = vsel %vm1527_vm9, %v1528_v20, %v1526_v21 }
0x1178   :  { %v1530_v12 = vmul.f32 %v1529_v47, %v1227_v27 }
0x117a   :  { %v1531_v28 = vmul.f32 1.442695, %v1530_v12 }
0x117c   :  { %3293 = vpow2.f32 %v1531_v28 }
0x1182   :  { %v3294_v33 = vpop.eup %3293 }
0x1183   :  { %v1533_v29 = vmax.f32 %v3294_v33, 1e-05 }
0x1185   :  { %v1534_v7 = vmin.f32 %v1533_v29, 100000.0 }
0x1187   :  { %v1535_v48 = vmul.f32 %v1534_v7, %v4001_v58 }
0x1189   :  { %v1536_v30 = vsel %vm3589_vm2, %v1535_v48, -1e+32 }
0x118a   :  { %v1537_v31 = vsel %vm242_vm3, %v1536_v30, -inf }
0x118b   :  { %1538 = vmax.xlane.f32.xlu0 %v1537_v31 }
0x11d5   :  { %v1660_v10 = vpop.xlane.xlu0 %1659 }
0x11e4   :  { %v1655_v55 = vpop.f32.mrf.mxu2 }
0x11e5   :  { %v1661_v32 = vsub.f32 %v1660_v10, %v1655_v55 }
0x11e7   :  { %v1662_v36 = vmul.f32 %v1661_v32, %v3661_v9 }
0x11e9   :  { %v1663_v38 = vmax.f32 %v1662_v36, 0.0 }
0x11eb   :  { %3295 = vrsqrt.f32 %v1663_v38  ;;  %vm1671_vm10 = vcmp.eq.f32.partialorder %v1663_v38, inf  ;;  %v1674_v26 = vand.u32 2147483648, %v1663_v38  ;;  %vm1673_vm11 = vcmp.eq.f32.partialorder %v1663_v38, 0.0 }
0x11f1   :  { %v3296_v27 = vpop.eup %3295 }
0x11f2   :  { %v1665_v43 = vmul.f32 %v3296_v27, %v1663_v38 }
0x11f4   :  { %v1666_v41 = vmul.f32 %v3296_v27, %v1665_v43 }
0x11f6   :  { %v1667_v42 = vmul.f32 0.5, %v1666_v41 }
0x11f8   :  { %v1668_v44 = vsub.f32 1.5, %v1667_v42 }
0x11fa   :  { %v1669_v58 = vmul.f32 %v3296_v27, %v1668_v44 }
0x11fc   :  { %v1670_v50 = vmul.f32 %v1669_v58, %v1663_v38 }
0x11fe   :  { %v1539_v18 = vpop.xlane.xlu0 %1538  ;;  %v1672_v63 = vsel %vm1671_vm10, %v1663_v38, %v1670_v50 }
0x11ff   :  { %v1540_v52 = vsub.f32 %v1536_v30, %v1539_v18  ;;  %v1675_v24 = vsel %vm1673_vm11, %v1674_v26, %v1672_v63 }
0x1200   :  { %v1676_v53 = vmul.f32 %v1675_v24, %v1375_v17  ;;  %v3090_v17 = vld [vmem:[%s4665_s0 + $0x38] sm:$0xff] }
0x1201   :  { %v1541_v54 = vmul.f32 1.442695, %v1540_v52  ;;  %1767 = vmatpush.msrb.mxu1 %v3090_v17 }
0x1202   :  { %v1677_v59 = vmul.f32 1.442695, %v1676_v53 }
0x1203   :  { %3297 = vpow2.f32 %v1541_v54 }
0x1204   :  { %3299 = vpow2.f32 %v1677_v59 }
0x1209   :  { %v3298_v3 = vpop.eup %3297 }
0x120a   :  { %v3300_v60 = vpop.eup %3299  ;;  %v1543_v61 = vsel %vm242_vm3, %v3298_v3, 0.0 }
0x120b   :  { %1544 = vadd.xlane.f32.xlu1 %v1543_v61  ;;  %v1679_v62 = vmax.f32 %v3300_v60, 1e-05 }
0x120d   :  { %v1680_v51 = vmin.f32 %v1679_v62, 100000.0  ;;  %v3188_v62 = vld [vmem:[%s4614_s17] ss:$0 sm:$0xff] }
0x120f   :  { %v1681_v37 = vmul.f32 %v1680_v51, %v4009_v4  ;;  %v3089_v4 = vld [vmem:[%s4665_s0 + $0x30] sm:$0xff] }
0x1210   :  { %1768 = vmatpush.msrb.mxu1 %v3089_v4 }
0x1211   :  { %v1682_v0 = vsel %vm3589_vm2, %v1681_v37, -1e+32  ;;  %v1000_v37 = vadd.f32 %v3188_v62, %v3942_v39  ;;  %v3098_v39 = vld [vmem:[%s4652_s10 + $0x50] sm:$0xff] }
0x1212   :  { %v1683_v1 = vsel %vm242_vm3, %v1682_v0, -inf  ;;  %1769 = vmatpush.msrb.mxu1 %v3088_v25 }
0x1213   :  { %1684 = vmax.xlane.f32.xlu0 %v1683_v1  ;;  %v1005_v1 = vadd.f32 %v1000_v37, %v3874_v8  ;;  %v3097_v8 = vld [vmem:[%s4652_s10 + $0x48] sm:$0xff] }
0x1215   :  { %v1009_v17 = vsel %vm153_vm0, %v1005_v1, 0.0 }
0x1224   :  { %1708 = vrot.lane.b32.xlu1 %v3956_v45, %s4664_s27  ;;  %v3087_v45 = vld [vmem:[%s4665_s0 + $0x20] sm:$0xff] }
0x1225   :  { %1770 = vmatpush.msrb.mxu1 %v3087_v45  ;;  %v3099_v45 = vld [vmem:[%s4652_s10 + $0x58] sm:$0xff] }
0x1226   :  { %1866 = vmatpush.msrb.mxu3 %v3099_v45 }
0x1227   :  { %1435 = vrot.lane.b32.xlu0 %v4007_v40, %s3398_s7 }
0x1228   :  { %1867 = vmatpush.msrb.mxu3 %v3098_v39  ;;  %v4155_v39 = vld [vmem:[%s4616_s19] ss:$0 sm:$0xff] }
0x122a   :  { %1868 = vmatpush.msrb.mxu3 %v3097_v8 }
0x127e   :  { %v1545_v40 = vpop.xlane.xlu1 %1544 }
0x127f   :  { %3301 = vrcp.f32 %v1545_v40  ;;  %v1557_v19 = vand.u32 2147483648, %v1545_v40  ;;  %v1555_v47 = vand.u32 2147483647, %v1545_v40  ;;  %vm1551_vm12 = vweird.f32 %v1545_v40 }
0x1281   :  { %v1558_v28 = vor.u32 1.1754944e-38, %v1557_v19  ;;  %vm1556_vm14 = vcmp.eq.f32.partialorder %v1555_v47, 8.507059e+37 }
0x1285   :  { %v3302_v5 = vpop.eup %3301 }
0x1286   :  { %v1547_v15 = vmul.f32 %v3302_v5, %v1545_v40  ;;  %v1685_v49 = vpop.xlane.xlu0 %1684  ;;  %vm1552_vm2 = vweird.f32 %v3302_v5  ;;  %v3096_v40 = vld [vmem:[%s4652_s10 + $0x40] sm:$0xff]  ;;  %s4669_s10 = sld [smem:[#allocation18_spill]] }
0x1287   :  { %v1686_v13 = vsub.f32 %v1682_v0, %v1685_v49  ;;  %vm1553_vm13 = vmor %vm1551_vm12, %vm1552_vm2  ;;  %1869 = vmatpush.msrb.mxu3 %v3096_v40 }
0x1288   :  { %v1548_v14 = vsub.f32 1.0, %v1547_v15 }
0x1289   :  { %v1687_v20 = vmul.f32 1.442695, %v1686_v13 }
0x128a   :  { %v1549_v21 = vmul.f32 %v3302_v5, %v1548_v14 }
0x128b   :  { %3303 = vpow2.f32 %v1687_v20 }
0x128c   :  { %v1550_v12 = vadd.f32 %v3302_v5, %v1549_v21 }
0x128e   :  { %v1554_v33 = vsel %vm1553_vm13, %v3302_v5, %v1550_v12  ;;  %v4092_v12 = vld [vmem:[%s4609_s12 + $0x1] ss:$0 sm:$0xff] }
0x128f   :  { %v1559_v29 = vsel %vm1556_vm14, %v1558_v28, %v1554_v33  ;;  %vm4162_vm14 = vcmp.lt.s32.totalorder %v3585_v23, %v3583_v22 }
0x1290   :  { %v1560_v7 = vmul.f32 %v3298_v3, %v1559_v29  ;;  %v4097_v29 = vld [vmem:[%s4610_s13 + $0x1] ss:$0 sm:$0xff] }
0x1291   :  { %v3304_v48 = vpop.eup %3303 }
0x1292   :  { %3081 = vmatmul.msk.f32.vlgmr.msra.gmra.mxu1 %vm242_vm3, %v1560_v7  ;;  %v1689_v30 = vsel %vm242_vm3, %v3304_v48, 0.0 }
0x1293   :  { %1690 = vadd.xlane.f32.xlu2 %v1689_v30 }
0x1296   :  { %v1709_v31 = vpop.permute.xlu1 %1708 }
0x1297   :  { %1729 = vmatpush.msra.mxu0 %v1709_v31 }
0x1299   :  { %v1436_v10 = vpop.permute.xlu0 %1435 }
0x129a   :  { %v1438_v55 = vsel %vm216_vm1, %v3998_v56, %v1436_v10  ;;  %v3189_v56 = vld [vmem:[%s4608_s11 + $0x1] ss:$0 sm:$0xff] }
0x129b   :  { %3092 = vmatmul.msk.f32.vlgmr.msrb.gmra.mxu1 %vm153_vm0, %v1438_v55  ;;  %v1003_v55 = vadd.f32 %v3188_v62, %v3944_v2  ;;  %v4118_v2 = vld [vmem:[%s4657_s28 + $0x2] ss:$0 sm:$0xff] }
0x1306   :  { %v1691_v32 = vpop.xlane.xlu2 %1690 }
0x1307   :  { %3305 = vrcp.f32 %v1691_v32  ;;  %v1703_v41 = vand.u32 2147483648, %v1691_v32  ;;  %v1701_v44 = vand.u32 2147483647, %v1691_v32  ;;  %vm1697_vm5 = vweird.f32 %v1691_v32 }
0x1309   :  { %v1704_v50 = vor.u32 1.1754944e-38, %v1703_v41  ;;  %vm1702_vm8 = vcmp.eq.f32.partialorder %v1701_v44, 8.507059e+37 }
0x130d   :  { %v3306_v36 = vpop.eup %3305 }
0x130e   :  { %v1693_v38 = vmul.f32 %v3306_v36, %v1691_v32  ;;  %vm1698_vm15 = vweird.f32 %v3306_v36 }
0x130f   :  { %v1581_v27 = vpop.f32.mrf.mxu1  ;;  %vm1699_vm7 = vmor %vm1697_vm5, %vm1698_vm15 }
0x1310   :  { %v1694_v43 = vsub.f32 1.0, %v1693_v38 }
0x1312   :  { %v1695_v42 = vmul.f32 %v3306_v36, %v1694_v43 }
0x1314   :  { %v1696_v58 = vadd.f32 %v3306_v36, %v1695_v42 }
0x1316   :  { %v1700_v26 = vsel %vm1699_vm7, %v3306_v36, %v1696_v58 }
0x1317   :  { %v1705_v18 = vsel %vm1702_vm8, %v1704_v50, %v1700_v26 }
0x1318   :  { %v1772_v63 = vpop.f32.mrf.mxu1  ;;  %v1706_v52 = vmul.f32 %v3304_v48, %v1705_v18 }
0x1319   :  { %v1773_v24 = vadd.f32 %v3189_v56, %v1772_v63  ;;  %v3106_v63 = vld [vmem:[%s4662_s6 + $0x58] sm:$0xff] }
0x131a   :  { %3086 = vmatmul.msk.f32.vlgmr.msra.gmra.mxu0 %vm242_vm3, %v1706_v52  ;;  %1905 = vmatpush.msra.mxu2 %v3106_v63 }
0x131b   :  { %v1778_v53 = vadd.f32 %v1773_v24, %v3569_v16 }
0x131d   :  { %v1784_v54 = vsel %vm153_vm0, %v1778_v53, 0.0 }
0x131e   :  { %1785 = vadd.xlane.f32.xlu0 %v1784_v54  ;;  %v3104_v54 = vld [vmem:[%s4662_s6 + $0x48] sm:$0xff] }
0x1391   :  { %v1786_v3 = vpop.xlane.xlu0 %1785 }
0x1392   :  { %v1790_v60 = vmul.f32 %v1786_v3, %v3852_v11 }
0x1394   :  { %v1792_v61 = vsub.f32 %v1778_v53, %v1790_v60  ;;  %v3105_v53 = vld [vmem:[%s4662_s6 + $0x50] sm:$0xff] }
0x1395   :  { %1906 = vmatpush.msra.mxu2 %v3105_v53 }
0x1396   :  { %v1794_v51 = vmul.f32 %v1792_v61, %v1792_v61 }
0x1397   :  { %v1731_v59 = vpop.f32.mrf.mxu0  ;;  %1907 = vmatpush.msra.mxu2 %v3104_v54 }
0x1398   :  { %1735 = vrot.lane.b32.xlu2 %v1731_v59, %s3398_s7  ;;  %v1796_v0 = vsel %vm153_vm0, %v1794_v51, 0.0  ;;  %v3103_v59 = vld [vmem:[%s4662_s6 + $0x40] sm:$0xff] }
0x1399   :  { %1908 = vmatpush.msra.mxu2 %v3103_v59 }
0x139b   :  { %3119 = vmatpush.msk.msrb.mxu2 %vm3603_vm4, %v3396_v35 }
0x13c1   :  { %1797 = vadd.xlane.f32.xlu2 %v1796_v0 }
0x13c9   :  { %1010 = vadd.xlane.f32.xlu2 %v1009_v17 }
0x13f2   :  { %v1736_v4 = vpop.permute.xlu2 %1735 }
0x13f3   :  { %v1738_v25 = vsel %vm216_vm1, %v1581_v27, %v1736_v4  ;;  %v4110_v27 = vadd.f32 %v1003_v55, %v3923_v57  ;;  %v4150_v4 = vld [vmem:[%s4615_s18] ss:$0 sm:$0xff] }
0x13f4   :  { %3093 = vmatmul.msk.f32.gmra.mxu1 %vm153_vm0, %v1738_v25 }
0x13f5   :  { %v1012_v41 = vsel %vm153_vm0, %v4110_v27, 0.0 }
0x1434   :  { %v1798_v5 = vpop.xlane.xlu2 %1797 }
0x1435   :  { %v1802_v15 = vmul.f32 %v1798_v5, %v3852_v11 }
0x1437   :  { %v1804_v49 = vadd.f32 1e-05, %v1802_v15 }
0x1439   :  { %3307 = vrsqrt.f32 %v1804_v49  ;;  %vm1812_vm10 = vweird.f32 %v1804_v49 }
0x143c   :  { %v1011_v36 = vpop.xlane.xlu2 %1010 }
0x143d   :  { %v1015_v38 = vmul.f32 %v1011_v36, %v3852_v11 }
0x143f   :  { %v3308_v13 = vpop.eup %3307  ;;  %v1017_v43 = vsub.f32 %v1005_v1, %v1015_v38  ;;  %v4187_v38 = vld [vmem:[%s4663_s25 + $0x2] ss:$0 sm:$0xff]  ;;  %s4230_s25 = sld [smem:[#allocation3 + $0x4]] }
0x1440   :  { %v1807_v14 = vmul.f32 %v3308_v13, %v1804_v49  ;;  %vm1813_vm9 = vweird.f32 %v3308_v13 }
0x1441   :  { %vm1814_vm11 = vmor %vm1812_vm10, %vm1813_vm9  ;;  %v1019_v42 = vmul.f32 %v1017_v43, %v1017_v43 }
0x1442   :  { %v1808_v19 = vmul.f32 %v3308_v13, %v1807_v14 }
0x1443   :  { %v1021_v44 = vsel %vm153_vm0, %v1019_v42, 0.0 }
0x1444   :  { %v1809_v20 = vmul.f32 0.5, %v1808_v19 }
0x1446   :  { %v1810_v21 = vsub.f32 1.5, %v1809_v20 }
0x1448   :  { %v1811_v47 = vmul.f32 %v3308_v13, %v1810_v21 }
0x144a   :  { %v1815_v28 = vsel %vm1814_vm11, %v3308_v13, %v1811_v47 }
0x144b   :  { %v1826_v33 = vmul.f32 %v1815_v28, %v1792_v61 }
0x144d   :  { %v1831_v7 = vmul.f32 %v4092_v12, %v1826_v33 }
0x144f   :  { %v4101_v48 = vadd.f32 %v4097_v29, %v1831_v7 }
0x1451   :  { %3101 = vmatmul.msk.f32.vlgmr.msrb.gmra.mxu3 %vm153_vm0, %v4101_v48 }
0x1471   :  { %v1775_v30 = vpop.f32.mrf.mxu1 }
0x1472   :  { %v1776_v31 = vadd.f32 %v3189_v56, %v1775_v30 }
0x1474   :  { %v1779_v10 = vadd.f32 %v1776_v31, %v3655_v6 }
0x1476   :  { %v1787_v32 = vsel %vm153_vm0, %v1779_v10, 0.0 }
0x1477   :  { %1788 = vadd.xlane.f32.xlu1 %v1787_v32 }
0x147f   :  { %1013 = vadd.xlane.f32.xlu1 %v1012_v41 }
0x1487   :  { %1022 = vadd.xlane.f32.xlu1 %v1021_v44 }
0x14d4   :  { %v1871_v58 = vpop.f32.mrf.mxu3 }
0x14d5   :  { %v1872_v50 = vadd.f32 %v4118_v2, %v1871_v58 }
0x14d7   :  { %3111 = vmatpush.xpose.msk.msrb.mxu0 %vm216_vm1, %v1872_v50 }
0x14da   :  { %3112 = vmatmul.msk.f32.vlgmr.msrb.gmra.mxu0 %vm216_vm1, %v1872_v50 }
0x14db   :  { %3113 = vmatpush.msk.msra.mxu0 %vm3603_vm4, %v3396_v35 }
0x14ea   :  { %v1789_v57 = vpop.xlane.xlu1 %1788 }
0x14eb   :  { %v1791_v56 = vmul.f32 %v1789_v57, %v3852_v11 }
0x14ed   :  { %v1793_v26 = vsub.f32 %v1779_v10, %v1791_v56 }
0x14ef   :  { %v1795_v18 = vmul.f32 %v1793_v26, %v1793_v26 }
0x14f1   :  { %v1799_v52 = vsel %vm153_vm0, %v1795_v18, 0.0 }
0x14f2   :  { %v4131_v24 = vpop.xlane.xlu1 %1013  ;;  %1800 = vadd.xlane.f32.xlu0 %v1799_v52 }
0x14f3   :  { %v1016_v42 = vmul.f32 %v4131_v24, %v3852_v11 }
0x14fa   :  { %v1023_v3 = vpop.xlane.xlu1 %1022 }
0x14fb   :  { %v1027_v60 = vmul.f32 %v1023_v3, %v3852_v11 }
0x14fd   :  { %v1029_v61 = vadd.f32 1e-05, %v1027_v60 }
0x14ff   :  { %3309 = vrsqrt.f32 %v1029_v61  ;;  %vm1037_vm12 = vweird.f32 %v1029_v61 }
0x1505   :  { %v3310_v62 = vpop.eup %3309 }
0x1506   :  { %v1032_v51 = vmul.f32 %v3310_v62, %v1029_v61  ;;  %2066 = vrot.lane.b32.xlu0 %v1872_v50, %s4664_s27  ;;  %vm1038_vm2 = vweird.f32 %v3310_v62 }
0x1507   :  { %vm1039_vm13 = vmor %vm1037_vm12, %vm1038_vm2 }
0x1508   :  { %v1033_v37 = vmul.f32 %v3310_v62, %v1032_v51 }
0x150a   :  { %v1034_v0 = vmul.f32 0.5, %v1033_v37 }
0x150c   :  { %v1035_v1 = vsub.f32 1.5, %v1034_v0 }
0x150e   :  { %v1036_v17 = vmul.f32 %v3310_v62, %v1035_v1 }
0x1510   :  { %v1040_v25 = vsel %vm1039_vm13, %v3310_v62, %v1036_v17 }
0x1511   :  { %v1051_v45 = vmul.f32 %v1040_v25, %v1017_v43 }
0x1513   :  { %v1056_v8 = vmul.f32 %v4150_v4, %v1051_v45 }
0x1515   :  { %v1061_v40 = vadd.f32 %v4155_v39, %v1056_v8 }
0x1517   :  { %3108 = vmatmul.msk.f32.vlgmr.msra.gmra.mxu2 %vm153_vm0, %v1061_v40 }
0x1557   :  { %v1938_v5 = vpop.f32.mrf.mxu0 }
0x1558   :  { %v4166_v49 = vmul.f32 0.25, %v1938_v5 }
0x155a   :  { %v1942_v13 = vsel %vm4162_vm14, %v4166_v49, -1e+32 }
0x155b   :  { %v1943_v14 = vsel %vm242_vm3, %v1942_v13, -inf }
0x155c   :  { %1944 = vmax.xlane.f32.xlu1 %v1943_v14 }
0x1565   :  { %v1801_v19 = vpop.xlane.xlu0 %1800 }
0x1566   :  { %v1803_v20 = vmul.f32 %v1801_v19, %v3852_v11 }
0x1568   :  { %v1805_v21 = vadd.f32 1e-05, %v1803_v20 }
0x156a   :  { %3311 = vrsqrt.f32 %v1805_v21  ;;  %vm1822_vm5 = vweird.f32 %v1805_v21 }
0x1570   :  { %v3312_v47 = vpop.eup %3311 }
0x1571   :  { %v1817_v28 = vmul.f32 %v3312_v47, %v1805_v21  ;;  %vm1823_vm15 = vweird.f32 %v3312_v47 }
0x1572   :  { %vm1824_vm7 = vmor %vm1822_vm5, %vm1823_vm15 }
0x1573   :  { %v1818_v23 = vmul.f32 %v3312_v47, %v1817_v28 }
0x1575   :  { %v1819_v33 = vmul.f32 0.5, %v1818_v23 }
0x1577   :  { %v1820_v7 = vsub.f32 1.5, %v1819_v33 }
0x1578   :  { %v2067_v30 = vpop.permute.xlu0 %2066 }
0x1579   :  { %v1821_v31 = vmul.f32 %v3312_v47, %v1820_v7  ;;  %3117 = vmatpush.xpose.msk.msra.mxu3 %vm216_vm1, %v2067_v30 }
0x157b   :  { %v1825_v10 = vsel %vm1824_vm7, %v3312_v47, %v1821_v31  ;;  %v4215_v31 = vsel %vm4162_vm14, 1.0, %v3397_v46 }
0x157c   :  { %v1827_v55 = vmul.f32 %v1825_v10, %v1793_v26  ;;  %v1018_v26 = vsub.f32 %v4110_v27, %v1016_v42 }
0x157d   :  { %3125 = vmatpush.msk.msrb.mxu3 %vm3603_vm4, %v3396_v35 }
0x157e   :  { %v1832_v32 = vmul.f32 %v4092_v12, %v1827_v55  ;;  %v1020_v63 = vmul.f32 %v1018_v26, %v1018_v26 }
0x1580   :  { %v4179_v36 = vadd.f32 %v4097_v29, %v1832_v32  ;;  %v1024_v52 = vsel %vm153_vm0, %v1020_v63, 0.0 }
0x1582   :  { %3102 = vmatmul.msk.f32.gmra.mxu3 %vm153_vm0, %v4179_v36 }
0x158a   :  { %3118 = vmatmul.msk.f32.vlgmr.msra.gmra.mxu3 %vm216_vm1, %v2067_v30 }
0x159a   :  { %v1910_v43 = vpop.f32.mrf.mxu2 }
0x159b   :  { %v4190_v41 = vadd.f32 %v4187_v38, %v1910_v43 }
0x159d   :  { %2061 = vmatpush.msra.mxu1 %v4190_v41 }
0x15cf   :  { %v1945_v44 = vpop.xlane.xlu1 %1944 }
0x15d0   :  { %v1946_v57 = vsub.f32 %v1942_v13, %v1945_v44 }
0x15d2   :  { %v1947_v18 = vmul.f32 1.442695, %v1946_v57 }
0x15d4   :  { %3313 = vpow2.f32 %v1947_v18 }
0x15da   :  { %v3314_v24 = vpop.eup %3313 }
0x15db   :  { %v1949_v53 = vsel %vm242_vm3, %v3314_v24, 0.0 }
0x1605   :  { %v1874_v12 = vpop.f32.mrf.mxu3 }
0x1606   :  { %v4194_v29 = vadd.f32 %v4118_v2, %v1874_v12 }
0x1608   :  { %3123 = vmatpush.xpose.msk.msrb.mxu1 %vm216_vm1, %v4194_v29 }
0x160d   :  { %v2087_v58 = vpop.f32.mrf.mxu3 }
0x160e   :  { %v4200_v50 = vmul.f32 0.25, %v2087_v58 }
0x1610   :  { %v2091_v56 = vsel %vm4162_vm14, %v4200_v50, -1e+32 }
0x1611   :  { %v2092_v2 = vsel %vm242_vm3, %v2091_v56, -inf }
0x1612   :  { %2093 = vmax.xlane.f32.xlu2 %v2092_v2 }
0x161a   :  { %1025 = vadd.xlane.f32.xlu2 %v1024_v52 }
0x1622   :  { %1950 = vadd.xlane.f32.xlu2 %v1949_v53 }
0x1685   :  { %v2094_v54 = vpop.xlane.xlu2 %2093 }
0x1686   :  { %v2095_v59 = vsub.f32 %v2091_v56, %v2094_v54 }
0x1688   :  { %v2096_v3 = vmul.f32 1.442695, %v2095_v59 }
0x168a   :  { %3315 = vpow2.f32 %v2096_v3 }
0x168d   :  { %v1026_v60 = vpop.xlane.xlu2 %1025 }
0x168e   :  { %v1028_v27 = vmul.f32 %v1026_v60, %v3852_v11 }
0x1690   :  { %v3316_v61 = vpop.eup %3315  ;;  %v1030_v62 = vadd.f32 1e-05, %v1028_v27 }
0x1691   :  { %v2098_v51 = vsel %vm242_vm3, %v3316_v61, 0.0 }
0x1692   :  { %3317 = vrsqrt.f32 %v1030_v62  ;;  %2099 = vadd.xlane.f32.xlu0 %v2098_v51  ;;  %vm1047_vm9 = vweird.f32 %v1030_v62 }
0x1695   :  { %v1951_v37 = vpop.xlane.xlu2 %1950 }
0x1696   :  { %3319 = vrcp.f32 %v1951_v37  ;;  %v1963_v13 = vand.u32 2147483648, %v1951_v37  ;;  %v1961_v20 = vand.u32 2147483647, %v1951_v37  ;;  %vm1957_vm2 = vweird.f32 %v1951_v37 }
0x1698   :  { %v3318_v0 = vpop.eup %3317  ;;  %v1964_v28 = vor.u32 1.1754944e-38, %v1963_v13  ;;  %vm1962_vm13 = vcmp.eq.f32.partialorder %v1961_v20, 8.507059e+37 }
0x1699   :  { %v1042_v1 = vmul.f32 %v3318_v0, %v1030_v62  ;;  %vm1048_vm8 = vweird.f32 %v3318_v0 }
0x169a   :  { %vm1049_vm11 = vmor %vm1047_vm9, %vm1048_vm8 }
0x169b   :  { %v1043_v17 = vmul.f32 %v3318_v0, %v1042_v1 }
0x169c   :  { %v3320_v25 = vpop.eup %3319 }
0x169d   :  { %v1044_v45 = vmul.f32 0.5, %v1043_v17  ;;  %v1953_v8 = vmul.f32 %v3320_v25, %v1951_v37  ;;  %vm1958_vm10 = vweird.f32 %v3320_v25 }
0x169e   :  { %vm1959_vm12 = vmor %vm1957_vm2, %vm1958_vm10 }
0x169f   :  { %v1045_v40 = vsub.f32 1.5, %v1044_v45  ;;  %v1954_v5 = vsub.f32 1.0, %v1953_v8  ;;  %v2010_v45 = vstv %s4230_s25 }
0x16a1   :  { %v1046_v14 = vmul.f32 %v3318_v0, %v1045_v40  ;;  %v1955_v19 = vmul.f32 %v3320_v25, %v1954_v5 }
0x16a3   :  { %v1050_v21 = vsel %vm1049_vm11, %v3318_v0, %v1046_v14  ;;  %v1956_v47 = vadd.f32 %v3320_v25, %v1955_v19 }
0x16a4   :  { %v1052_v23 = vmul.f32 %v1050_v21, %v1018_v26 }
0x16a5   :  { %v1960_v33 = vsel %vm1959_vm12, %v3320_v25, %v1956_v47 }
0x16a6   :  { %v1965_v7 = vsel %vm1962_vm13, %v1964_v28, %v1960_v33  ;;  %v1057_v30 = vmul.f32 %v4150_v4, %v1052_v23 }
0x16a7   :  { %v1966_v10 = vmul.f32 %v3314_v24, %v1965_v7 }
0x16a8   :  { %v1062_v55 = vadd.f32 %v4155_v39, %v1057_v30 }
0x16a9   :  { %v1967_v32 = vmul.f32 %v4215_v31, %v1966_v10 }
0x16aa   :  { %3109 = vmatmul.msk.f32.gmra.mxu2 %vm153_vm0, %v1062_v55 }
0x16ab   :  { %3114 = vmatmul.msk.f32.vlgmr.msra.gmra.mxu0 %vm242_vm3, %v1967_v32  ;;  %v1991_v43 = vsel %vm242_vm3, %v1967_v32, 0.0 }
0x16ac   :  { %1992 = vadd.xlane.f32.xlu2 %v1991_v43 }
0x1705   :  { %v2100_v12 = vpop.xlane.xlu0 %2099 }
0x1706   :  { %3321 = vrcp.f32 %v2100_v12  ;;  %v2112_v58 = vand.u32 2147483648, %v2100_v12  ;;  %v2110_v57 = vand.u32 2147483647, %v2100_v12  ;;  %vm2106_vm5 = vweird.f32 %v2100_v12 }
0x1708   :  { %v2113_v39 = vor.u32 1.1754944e-38, %v2112_v58  ;;  %vm2111_vm8 = vcmp.eq.f32.partialorder %v2110_v57, 8.507059e+37 }
0x170c   :  { %v3322_v4 = vpop.eup %3321 }
0x170d   :  { %v2102_v42 = vmul.f32 %v3322_v4, %v2100_v12  ;;  %vm2107_vm15 = vweird.f32 %v3322_v4 }
0x170e   :  { %vm2108_vm7 = vmor %vm2106_vm5, %vm2107_vm15 }
0x170f   :  { %v2103_v44 = vsub.f32 1.0, %v2102_v42  ;;  %v2159_v42 = vstv %s4242_s3 }
0x1711   :  { %v2104_v46 = vmul.f32 %v3322_v4, %v2103_v44 }
0x1713   :  { %v2105_v56 = vadd.f32 %v3322_v4, %v2104_v46 }
0x1715   :  { %v2109_v26 = vsel %vm2108_vm7, %v3322_v4, %v2105_v56  ;;  %vm112_vm7 = vcmp.eq.s32.totalorder %v3583_v22, 0 }
0x1716   :  { %v2114_v2 = vsel %vm2111_vm8, %v2113_v39, %v2109_v26 }
0x1717   :  { %v2115_v18 = vmul.f32 %v3316_v61, %v2114_v2 }
0x1719   :  { %v2116_v63 = vmul.f32 %v4215_v31, %v2115_v18 }
0x171b   :  { %3120 = vmatmul.msk.f32.vlgmr.msrb.gmra.mxu2 %vm242_vm3, %v2116_v63  ;;  %v2140_v52 = vsel %vm242_vm3, %v2116_v63, 0.0 }
0x171c   :  { %2141 = vadd.xlane.f32.xlu1 %v2140_v52 }
0x171f   :  { %v1993_v24 = vpop.xlane.xlu2 %1992 }
0x1728   :  { %v1988_v53 = vpop.f32.mrf.mxu0 }
0x1729   :  { %v1994_v54 = vsub.f32 %v1993_v24, %v1988_v53 }
0x172b   :  { %v1995_v59 = vmul.f32 %v1994_v54, %v3661_v9 }
0x172d   :  { %v1996_v3 = vmax.f32 %v1995_v59, 0.0  ;;  %v1913_v60 = vpop.f32.mrf.mxu2 }
0x172e   :  { %v4227_v27 = vadd.f32 %v4187_v38, %v1913_v60 }
0x172f   :  { %3323 = vrsqrt.f32 %v1996_v3  ;;  %vm2004_vm9 = vcmp.eq.f32.partialorder %v1996_v3, inf  ;;  %v2007_v25 = vand.u32 2147483648, %v1996_v3  ;;  %vm2006_vm10 = vcmp.eq.f32.partialorder %v1996_v3, 0.0 }
0x1730   :  { %2365 = vmatpush.msra.mxu2 %v4227_v27 }
0x1735   :  { %v3324_v61 = vpop.eup %3323 }
0x1736   :  { %v1998_v62 = vmul.f32 %v3324_v61, %v1996_v3 }
0x1738   :  { %v1999_v51 = vmul.f32 %v3324_v61, %v1998_v62 }
0x173a   :  { %v2000_v37 = vmul.f32 0.5, %v1999_v51 }
0x173c   :  { %v2001_v0 = vsub.f32 1.5, %v2000_v37 }
0x173e   :  { %v2002_v1 = vmul.f32 %v3324_v61, %v2001_v0 }
0x1740   :  { %v2003_v17 = vmul.f32 %v2002_v1, %v1996_v3 }
0x1742   :  { %v2005_v8 = vsel %vm2004_vm9, %v1996_v3, %v2003_v17 }
0x1743   :  { %v2008_v38 = vsel %vm2006_vm10, %v2007_v25, %v2005_v8 }
0x1744   :  { %v2011_v40 = vmul.f32 %v2010_v45, %v2008_v38 }
0x1746   :  { %v2012_v5 = vmul.f32 1.442695, %v2011_v40 }
0x1748   :  { %3325 = vpow2.f32 %v2012_v5 }
0x174e   :  { %v3326_v13 = vpop.eup %3325 }
0x174f   :  { %v2014_v14 = vmax.f32 %v3326_v13, 1e-05 }
0x1751   :  { %v2015_v19 = vmin.f32 %v2014_v14, 100000.0 }
0x1753   :  { %v2016_v20 = vmul.f32 %v2015_v19, %v4166_v49 }
0x1755   :  { %v2017_v21 = vsel %vm4162_vm14, %v2016_v20, -1e+32 }
0x1756   :  { %v2018_v47 = vsel %vm242_vm3, %v2017_v21, -inf }
0x1757   :  { %2019 = vmax.xlane.f32.xlu2 %v2018_v47 }
0x176f   :  { %2193 = vrot.lane.b32.xlu2 %v4190_v41, %s4664_s27 }
0x178f   :  { %v2142_v28 = vpop.xlane.xlu1 %2141 }
0x179e   :  { %v2137_v23 = vpop.f32.mrf.mxu2 }
0x179f   :  { %v2143_v33 = vsub.f32 %v2142_v28, %v2137_v23 }
0x17a1   :  { %v2144_v7 = vmul.f32 %v2143_v33, %v3661_v9 }
0x17a3   :  { %v2145_v30 = vmax.f32 %v2144_v7, 0.0 }
0x17a5   :  { %3327 = vrsqrt.f32 %v2145_v30  ;;  %vm2153_vm11 = vcmp.eq.f32.partialorder %v2145_v30, inf  ;;  %v2156_v41 = vand.u32 2147483648, %v2145_v30  ;;  %vm2155_vm2 = vcmp.eq.f32.partialorder %v2145_v30, 0.0 }
0x17ab   :  { %v3328_v10 = vpop.eup %3327 }
0x17ac   :  { %v2147_v55 = vmul.f32 %v3328_v10, %v2145_v30 }
0x17ae   :  { %v2148_v32 = vmul.f32 %v3328_v10, %v2147_v55 }
0x17b0   :  { %v2149_v49 = vmul.f32 0.5, %v2148_v32 }
0x17b2   :  { %v2150_v43 = vsub.f32 1.5, %v2149_v49 }
0x17b4   :  { %v2151_v12 = vmul.f32 %v3328_v10, %v2150_v43 }
0x17b6   :  { %v2152_v4 = vmul.f32 %v2151_v12, %v2145_v30 }
0x17b8   :  { %v2154_v44 = vsel %vm2153_vm11, %v2145_v30, %v2152_v4 }
0x17b9   :  { %v2157_v58 = vsel %vm2155_vm2, %v2156_v41, %v2154_v44 }
0x17ba   :  { %v2160_v46 = vmul.f32 %v2159_v42, %v2157_v58 }
0x17bc   :  { %v2161_v57 = vmul.f32 1.442695, %v2160_v46 }
0x17be   :  { %3329 = vpow2.f32 %v2161_v57 }
0x17c4   :  { %v3330_v56 = vpop.eup %3329 }
0x17c5   :  { %v2163_v39 = vmax.f32 %v3330_v56, 1e-05 }
0x17c7   :  { %v2164_v26 = vmin.f32 %v2163_v39, 100000.0 }
0x17c9   :  { %v2165_v2 = vmul.f32 %v2164_v26, %v4200_v50 }
0x17ca   :  { %v2020_v18 = vpop.xlane.xlu2 %2019 }
0x17cb   :  { %v2021_v63 = vsub.f32 %v2017_v21, %v2020_v18  ;;  %v2166_v52 = vsel %vm4162_vm14, %v2165_v2, -1e+32 }
0x17cc   :  { %v2167_v24 = vsel %vm242_vm3, %v2166_v52, -inf }
0x17cd   :  { %v2022_v53 = vmul.f32 1.442695, %v2021_v63  ;;  %2168 = vmax.xlane.f32.xlu1 %v2167_v24 }
0x17cf   :  { %3331 = vpow2.f32 %v2022_v53 }
0x17d2   :  { %v2194_v54 = vpop.permute.xlu2 %2193 }
0x17d3   :  { %2214 = vmatpush.msrb.mxu0 %v2194_v54 }
0x17d5   :  { %v3332_v59 = vpop.eup %3331 }
0x17d6   :  { %v2024_v3 = vsel %vm242_vm3, %v3332_v59, 0.0 }
0x17d7   :  { %2025 = vadd.xlane.f32.xlu0 %v2024_v3 }
0x1840   :  { %v2169_v60 = vpop.xlane.xlu1 %2168 }
0x1841   :  { %v2170_v61 = vsub.f32 %v2166_v52, %v2169_v60 }
0x1843   :  { %v2171_v62 = vmul.f32 1.442695, %v2170_v61 }
0x1845   :  { %3333 = vpow2.f32 %v2171_v62 }
0x184a   :  { %v2026_v50 = vpop.xlane.xlu0 %2025 }
0x184b   :  { %v3334_v51 = vpop.eup %3333  ;;  %3335 = vrcp.f32 %v2026_v50  ;;  %v2038_v25 = vand.u32 2147483648, %v2026_v50  ;;  %v2036_v38 = vand.u32 2147483647, %v2026_v50  ;;  %vm2032_vm13 = vweird.f32 %v2026_v50 }
0x184c   :  { %v2173_v37 = vsel %vm242_vm3, %v3334_v51, 0.0 }
0x184d   :  { %2174 = vadd.xlane.f32.xlu1 %v2173_v37  ;;  %v2039_v5 = vor.u32 1.1754944e-38, %v2038_v25  ;;  %vm2037_vm5 = vcmp.eq.f32.partialorder %v2036_v38, 8.507059e+37 }
0x1851   :  { %v3336_v0 = vpop.eup %3335 }
0x1852   :  { %v2028_v1 = vmul.f32 %v3336_v0, %v2026_v50  ;;  %vm2033_vm12 = vweird.f32 %v3336_v0 }
0x1853   :  { %vm2034_vm15 = vmor %vm2032_vm13, %vm2033_vm12 }
0x1854   :  { %v2029_v17 = vsub.f32 1.0, %v2028_v1 }
0x1856   :  { %v2030_v8 = vmul.f32 %v3336_v0, %v2029_v17 }
0x1858   :  { %v2031_v40 = vadd.f32 %v3336_v0, %v2030_v8 }
0x185a   :  { %v2035_v13 = vsel %vm2034_vm15, %v3336_v0, %v2031_v40 }
0x185b   :  { %v2040_v14 = vsel %vm2037_vm5, %v2039_v5, %v2035_v13 }
0x185c   :  { %v2041_v19 = vmul.f32 %v3332_v59, %v2040_v14 }
0x185e   :  { %v2042_v20 = vsel %vm112_vm7, 0.0, %v2041_v19 }
0x185f   :  { %3116 = vmatmul.msk.f32.vlgmr.msra.gmra.mxu1 %vm242_vm3, %v2042_v20 }
0x1860   :  { %3130 = vmatpush.msk.msra.mxu1 %vm3603_vm4, %v3396_v35 }
0x1866   :  { %2370 = vrot.lane.b32.xlu1 %v4194_v29, %s4664_s27 }
0x1867   :  { %3124 = vmatmul.msk.f32.vlgmr.msrb.gmra.mxu1 %vm216_vm1, %v4194_v29 }
0x18c0   :  { %v2175_v21 = vpop.xlane.xlu1 %2174 }
0x18c1   :  { %3337 = vrcp.f32 %v2175_v21  ;;  %v2187_v33 = vand.u32 2147483648, %v2175_v21  ;;  %v2185_v30 = vand.u32 2147483647, %v2175_v21  ;;  %vm2181_vm9 = vweird.f32 %v2175_v21 }
0x18c3   :  { %v2188_v34 = vor.u32 1.1754944e-38, %v2187_v33  ;;  %vm2186_vm4 = vcmp.eq.f32.partialorder %v2185_v30, 8.507059e+37 }
0x18c7   :  { %v3338_v47 = vpop.eup %3337 }
0x18c8   :  { %v2177_v28 = vmul.f32 %v3338_v47, %v2175_v21  ;;  %vm2182_vm8 = vweird.f32 %v3338_v47 }
0x18c9   :  { %vm2183_vm10 = vmor %vm2181_vm9, %vm2182_vm8 }
0x18ca   :  { %v2178_v23 = vsub.f32 1.0, %v2177_v28 }
0x18cc   :  { %v2179_v7 = vmul.f32 %v3338_v47, %v2178_v23 }
0x18ce   :  { %v2180_v10 = vadd.f32 %v3338_v47, %v2179_v7 }
0x18d0   :  { %v2184_v35 = vsel %vm2183_vm10, %v3338_v47, %v2180_v10 }
0x18d1   :  { %v2189_v55 = vsel %vm2186_vm4, %v2188_v34, %v2184_v35 }
0x18d2   :  { %v2190_v32 = vmul.f32 %v3334_v51, %v2189_v55 }
0x18d4   :  { %v2191_v29 = vsel %vm112_vm7, 0.0, %v2190_v32 }
0x18d5   :  { %3122 = vmatmul.msk.f32.vlgmr.msrb.gmra.mxu0 %vm242_vm3, %v2191_v29 }
0x18d8   :  { %v2371_v49 = vpop.permute.xlu1 %2370 }
0x18d9   :  { %3128 = vmatpush.xpose.msk.msra.mxu0 %vm216_vm1, %v2371_v49 }
0x18dc   :  { %v4268_v43 = vpop.f32.mrf.mxu1 }
0x18dd   :  { %3129 = vmatmul.msk.f32.vlgmr.msra.gmra.mxu0 %vm216_vm1, %v2371_v49 }
0x18e4   :  { %v2244_v12 = vpop.f32.mrf.mxu1 }
0x18e5   :  { %v4271_v4 = vmul.f32 0.25, %v2244_v12 }
0x18e7   :  { %v2248_v41 = vsel %vm4162_vm14, %v4271_v4, -1e+32 }
0x18e8   :  { %v2249_v44 = vsel %vm242_vm3, %v2248_v41, -inf }
0x18e9   :  { %2250 = vmax.xlane.f32.xlu2 %v2249_v44 }
0x1952   :  { %v4277_v58 = vpop.f32.mrf.mxu0 }
0x195a   :  { %v2391_v46 = vpop.f32.mrf.mxu0 }
0x195b   :  { %v4279_v57 = vmul.f32 0.25, %v2391_v46 }
0x195c   :  { %v2251_v56 = vpop.xlane.xlu2 %2250 }
0x195d   :  { %v2252_v39 = vsub.f32 %v2248_v41, %v2251_v56  ;;  %v2395_v26 = vsel %vm4162_vm14, %v4279_v57, -1e+32 }
0x195e   :  { %v2396_v2 = vsel %vm242_vm3, %v2395_v26, -inf }
0x195f   :  { %v2253_v18 = vmul.f32 1.442695, %v2252_v39  ;;  %2397 = vmax.xlane.f32.xlu0 %v2396_v2 }
0x1961   :  { %3339 = vpow2.f32 %v2253_v18 }
0x1967   :  { %v3340_v63 = vpop.eup %3339 }
0x1968   :  { %v2255_v52 = vsel %vm242_vm3, %v3340_v63, 0.0 }
0x1969   :  { %2256 = vadd.xlane.f32.xlu0 %v2255_v52 }
0x19d2   :  { %v2398_v24 = vpop.xlane.xlu0 %2397 }
0x19d3   :  { %v2399_v53 = vsub.f32 %v2395_v26, %v2398_v24 }
0x19d5   :  { %v2400_v54 = vmul.f32 1.442695, %v2399_v53 }
0x19d7   :  { %3341 = vpow2.f32 %v2400_v54 }
0x19dc   :  { %v2257_v59 = vpop.xlane.xlu0 %2256 }
0x19dd   :  { %v3342_v3 = vpop.eup %3341  ;;  %3343 = vrcp.f32 %v2257_v59  ;;  %v2269_v51 = vand.u32 2147483648, %v2257_v59  ;;  %v2267_v0 = vand.u32 2147483647, %v2257_v59  ;;  %vm2263_vm2 = vweird.f32 %v2257_v59 }
0x19de   :  { %v2402_v60 = vsel %vm242_vm3, %v3342_v3, 0.0 }
0x19df   :  { %2403 = vadd.xlane.f32.xlu1 %v2402_v60  ;;  %v2270_v17 = vor.u32 1.1754944e-38, %v2269_v51  ;;  %vm2268_vm13 = vcmp.eq.f32.partialorder %v2267_v0, 8.507059e+37 }
0x19e3   :  { %v3344_v61 = vpop.eup %3343 }
0x19e4   :  { %v2259_v62 = vmul.f32 %v3344_v61, %v2257_v59  ;;  %vm2264_vm11 = vweird.f32 %v3344_v61 }
0x19e5   :  { %vm2265_vm12 = vmor %vm2263_vm2, %vm2264_vm11 }
0x19e6   :  { %v2260_v50 = vsub.f32 1.0, %v2259_v62 }
0x19e8   :  { %v2261_v37 = vmul.f32 %v3344_v61, %v2260_v50 }
0x19ea   :  { %v2262_v1 = vadd.f32 %v3344_v61, %v2261_v37 }
0x19ec   :  { %v2266_v25 = vsel %vm2265_vm12, %v3344_v61, %v2262_v1 }
0x19ed   :  { %v2271_v8 = vsel %vm2268_vm13, %v2270_v17, %v2266_v25 }
0x19ee   :  { %v2272_v38 = vmul.f32 %v3340_v63, %v2271_v8 }
0x19f0   :  { %v2273_v40 = vmul.f32 %v4215_v31, %v2272_v38 }
0x19f2   :  { %3126 = vmatmul.msk.f32.vlgmr.msrb.gmra.mxu3 %vm242_vm3, %v2273_v40  ;;  %v2297_v35 = vsel %vm242_vm3, %v2273_v40, 0.0 }
0x1a52   :  { %v2404_v5 = vpop.xlane.xlu1 %2403 }
0x1a53   :  { %3345 = vrcp.f32 %v2404_v5  ;;  %v2416_v20 = vand.u32 2147483648, %v2404_v5  ;;  %v2414_v47 = vand.u32 2147483647, %v2404_v5  ;;  %vm2410_vm5 = vweird.f32 %v2404_v5 }
0x1a55   :  { %v2417_v23 = vor.u32 1.1754944e-38, %v2416_v20  ;;  %vm2415_vm9 = vcmp.eq.f32.partialorder %v2414_v47, 8.507059e+37 }
0x1a59   :  { %v3346_v13 = vpop.eup %3345 }
0x1a5a   :  { %v2406_v14 = vmul.f32 %v3346_v13, %v2404_v5  ;;  %vm2411_vm15 = vweird.f32 %v3346_v13 }
0x1a5b   :  { %vm2412_vm8 = vmor %vm2410_vm5, %vm2411_vm15 }
0x1a5c   :  { %v2407_v19 = vsub.f32 1.0, %v2406_v14 }
0x1a5e   :  { %v2408_v21 = vmul.f32 %v3346_v13, %v2407_v19 }
0x1a60   :  { %v2409_v28 = vadd.f32 %v3346_v13, %v2408_v21 }
0x1a62   :  { %v2413_v33 = vsel %vm2412_vm8, %v3346_v13, %v2409_v28 }
0x1a63   :  { %v2418_v7 = vsel %vm2415_vm9, %v2417_v23, %v2413_v33 }
0x1a64   :  { %v2419_v30 = vmul.f32 %v3342_v3, %v2418_v7 }
0x1a66   :  { %v2420_v10 = vmul.f32 %v4215_v31, %v2419_v30 }
0x1a68   :  { %3131 = vmatmul.msk.f32.vlgmr.msra.gmra.mxu1 %vm242_vm3, %v2420_v10  ;;  %v2444_v34 = vsel %vm242_vm3, %v2420_v10, 0.0 }
0x1a69   :  { %2445 = vadd.xlane.f32.xlu0 %v2444_v34 }
0x1a71   :  { %2298 = vadd.xlane.f32.xlu0 %v2297_v35 }
0x1a75   :  { %v2294_v32 = vpop.f32.mrf.mxu3 }
0x1adc   :  { %v2446_v55 = vpop.xlane.xlu0 %2445 }
0x1ae4   :  { %v2299_v29 = vpop.xlane.xlu0 %2298 }
0x1ae5   :  { %v2300_v49 = vsub.f32 %v2299_v29, %v2294_v32  ;;  %v2441_v12 = vpop.f32.mrf.mxu1  ;;  %v3135_v29 = vld [vmem:[%s4665_s0 + $0x50] sm:$0xff] }
0x1ae6   :  { %v2447_v41 = vsub.f32 %v2446_v55, %v2441_v12 }
0x1ae7   :  { %v2301_v44 = vmul.f32 %v2300_v49, %v3661_v9  ;;  %v3134_v49 = vld [vmem:[%s4665_s0 + $0x48] sm:$0xff] }
0x1ae8   :  { %v2448_v46 = vmul.f32 %v2447_v41, %v3661_v9 }
0x1ae9   :  { %v2302_v56 = vmax.f32 %v2301_v44, 0.0 }
0x1aea   :  { %v2449_v31 = vmax.f32 %v2448_v46, 0.0 }
0x1aeb   :  { %3347 = vrsqrt.f32 %v2302_v56  ;;  %vm2310_vm10 = vcmp.eq.f32.partialorder %v2302_v56, inf  ;;  %v2313_v62 = vand.u32 2147483648, %v2302_v56  ;;  %vm2312_vm11 = vcmp.eq.f32.partialorder %v2302_v56, 0.0 }
0x1aec   :  { %3349 = vrsqrt.f32 %v2449_v31  ;;  %vm2457_vm4 = vcmp.eq.f32.partialorder %v2449_v31, inf  ;;  %v2460_v50 = vand.u32 2147483648, %v2449_v31  ;;  %vm2459_vm2 = vcmp.eq.f32.partialorder %v2449_v31, 0.0 }
0x1af1   :  { %v3348_v39 = vpop.eup %3347 }
0x1af2   :  { %v3350_v26 = vpop.eup %3349  ;;  %v2304_v2 = vmul.f32 %v3348_v39, %v2302_v56 }
0x1af3   :  { %v2451_v18 = vmul.f32 %v3350_v26, %v2449_v31 }
0x1af4   :  { %v2305_v63 = vmul.f32 %v3348_v39, %v2304_v2 }
0x1af5   :  { %v2452_v52 = vmul.f32 %v3350_v26, %v2451_v18 }
0x1af6   :  { %v2306_v24 = vmul.f32 0.5, %v2305_v63 }
0x1af7   :  { %v2453_v53 = vmul.f32 0.5, %v2452_v52 }
0x1af8   :  { %v2307_v54 = vsub.f32 1.5, %v2306_v24 }
0x1af9   :  { %v2454_v59 = vsub.f32 1.5, %v2453_v53 }
0x1afa   :  { %v2308_v3 = vmul.f32 %v3348_v39, %v2307_v54 }
0x1afb   :  { %v2455_v60 = vmul.f32 %v3350_v26, %v2454_v59 }
0x1afc   :  { %v2309_v61 = vmul.f32 %v2308_v3, %v2302_v56 }
0x1afd   :  { %v2456_v9 = vmul.f32 %v2455_v60, %v2449_v31 }
0x1afe   :  { %v2311_v51 = vsel %vm2310_vm10, %v2302_v56, %v2309_v61 }
0x1aff   :  { %v2458_v37 = vsel %vm2457_vm4, %v2449_v31, %v2456_v9  ;;  %v2314_v0 = vsel %vm2312_vm11, %v2313_v62, %v2311_v51 }
0x1b00   :  { %v2461_v1 = vsel %vm2459_vm2, %v2460_v50, %v2458_v37  ;;  %v2315_v17 = vmul.f32 %v2314_v0, %v2010_v45 }
0x1b01   :  { %v2462_v25 = vmul.f32 %v2461_v1, %v2159_v42 }
0x1b02   :  { %v2316_v8 = vmul.f32 1.442695, %v2315_v17 }
0x1b03   :  { %v2463_v38 = vmul.f32 1.442695, %v2462_v25 }
0x1b04   :  { %3351 = vpow2.f32 %v2316_v8 }
0x1b05   :  { %3353 = vpow2.f32 %v2463_v38 }
0x1b0a   :  { %v3352_v40 = vpop.eup %3351 }
0x1b0b   :  { %v3354_v5 = vpop.eup %3353  ;;  %v2318_v14 = vmax.f32 %v3352_v40, 1e-05  ;;  %v3196_v40 = vld [vmem:[%s4608_s11 + $0x2] ss:$0 sm:$0xff] }
0x1b0c   :  { %v2465_v13 = vmax.f32 %v3354_v5, 1e-05 }
0x1b0d   :  { %v2319_v21 = vmin.f32 %v2318_v14, 100000.0 }
0x1b0e   :  { %v2466_v19 = vmin.f32 %v2465_v13, 100000.0 }
0x1b0f   :  { %v2320_v45 = vmul.f32 %v2319_v21, %v4271_v4 }
0x1b10   :  { %v2467_v20 = vmul.f32 %v2466_v19, %v4279_v57 }
0x1b11   :  { %v2321_v42 = vsel %vm4162_vm14, %v2320_v45, -1e+32 }
0x1b12   :  { %v2468_v47 = vsel %vm4162_vm14, %v2467_v20, -1e+32  ;;  %v2322_v23 = vsel %vm242_vm3, %v2321_v42, -inf }
0x1b13   :  { %v2469_v28 = vsel %vm242_vm3, %v2468_v47, -inf }
0x1b14   :  { %2470 = vmax.xlane.f32.xlu0 %v2469_v28 }
0x1b1c   :  { %2323 = vmax.xlane.f32.xlu0 %v2322_v23 }
0x1b30   :  { %2495 = vrot.lane.b32.xlu0 %v4227_v27, %s4664_s27  ;;  %v3136_v27 = vld [vmem:[%s4665_s0 + $0x58] sm:$0xff] }
0x1b31   :  { %2554 = vmatpush.msrb.mxu2 %v3136_v27 }
0x1b33   :  { %2555 = vmatpush.msrb.mxu2 %v3135_v29 }
0x1b35   :  { %2556 = vmatpush.msrb.mxu2 %v3134_v49  ;;  %v3197_v49 = vld [vmem:[%s4609_s12 + $0x2] ss:$0 sm:$0xff] }
0x1b87   :  { %v2471_v33 = vpop.xlane.xlu0 %2470 }
0x1b88   :  { %v2472_v57 = vsub.f32 %v2468_v47, %v2471_v33 }
0x1b8a   :  { %v2473_v7 = vmul.f32 1.442695, %v2472_v57  ;;  %v3144_v57 = vld [vmem:[%s4611_s14 + $0x50] sm:$0xff] }
0x1b8c   :  { %3355 = vpow2.f32 %v2473_v7 }
0x1b8f   :  { %v2324_v30 = vpop.xlane.xlu0 %2323 }
0x1b90   :  { %v2325_v10 = vsub.f32 %v2321_v42, %v2324_v30  ;;  %v3143_v30 = vld [vmem:[%s4611_s14 + $0x48] sm:$0xff] }
0x1b92   :  { %v3356_v34 = vpop.eup %3355  ;;  %v2326_v35 = vmul.f32 1.442695, %v2325_v10  ;;  %v3142_v10 = vld [vmem:[%s4611_s14 + $0x40] sm:$0xff] }
0x1b93   :  { %v2475_v55 = vsel %vm242_vm3, %v3356_v34, 0.0 }
0x1b94   :  { %3357 = vpow2.f32 %v2326_v35  ;;  %2476 = vadd.xlane.f32.xlu2 %v2475_v55 }
0x1b9a   :  { %v3358_v15 = vpop.eup %3357 }
0x1b9b   :  { %v2328_v4 = vsel %vm242_vm3, %v3358_v15, 0.0 }
0x1b9c   :  { %2329 = vadd.xlane.f32.xlu1 %v2328_v4 }
0x1ba2   :  { %v2496_v32 = vpop.permute.xlu0 %2495 }
0x1ba3   :  { %2516 = vmatpush.msra.mxu3 %v2496_v32 }
0x1bac   :  { %2220 = vrot.lane.b32.xlu2 %v4277_v58, %s3398_s7  ;;  %v3133_v58 = vld [vmem:[%s4665_s0 + $0x40] sm:$0xff] }
0x1bad   :  { %2557 = vmatpush.msrb.mxu2 %v3133_v58 }
0x1c07   :  { %v2477_v12 = vpop.xlane.xlu2 %2476 }
0x1c08   :  { %3359 = vrcp.f32 %v2477_v12  ;;  %v2489_v31 = vand.u32 2147483648, %v2477_v12  ;;  %v2487_v26 = vand.u32 2147483647, %v2477_v12  ;;  %vm2483_vm12 = vweird.f32 %v2477_v12 }
0x1c0a   :  { %v2490_v63 = vor.u32 1.1754944e-38, %v2489_v31  ;;  %vm2488_vm15 = vcmp.eq.f32.partialorder %v2487_v26, 8.507059e+37  ;;  %v3155_v31 = vld [vmem:[%s4613_s16 + $0xb0] sm:$0xff]  ;;  %v3153_v26 = vld [vmem:[%s4613_s16 + $0xa0] sm:$0xff] }
0x1c0e   :  { %v3360_v41 = vpop.eup %3359 }
0x1c0f   :  { %v2479_v44 = vmul.f32 %v3360_v41, %v2477_v12  ;;  %v2330_v46 = vpop.xlane.xlu1 %2329  ;;  %vm2484_vm14 = vweird.f32 %v3360_v41  ;;  %v2221_v17 = vpop.permute.xlu2 %2220 }
0x1c10   :  { %3361 = vrcp.f32 %v2330_v46  ;;  %vm2485_vm13 = vmor %vm2483_vm12, %vm2484_vm14  ;;  %v2342_v3 = vand.u32 2147483648, %v2330_v46  ;;  %v2340_v61 = vand.u32 2147483647, %v2330_v46  ;;  %vm2336_vm8 = vweird.f32 %v2330_v46 }
0x1c11   :  { %v2480_v56 = vsub.f32 1.0, %v2479_v44  ;;  %v2223_v25 = vsel %vm216_vm1, %v4268_v43, %v2221_v17 }
0x1c12   :  { %v2343_v50 = vor.u32 1.1754944e-38, %v2342_v3  ;;  %vm2341_vm10 = vcmp.eq.f32.partialorder %v2340_v61, 8.507059e+37  ;;  %v3149_v3 = vld [vmem:[%s4613_s16 + $0x80] sm:$0xff] }
0x1c13   :  { %v2481_v39 = vmul.f32 %v3360_v41, %v2480_v56  ;;  %v3156_v56 = vld [vmem:[%s4613_s16 + $0xb8] sm:$0xff] }
0x1c14   :  { %2694 = vmatpush.msrb.mxu1 %v3156_v56 }
0x1c15   :  { %v2482_v2 = vadd.f32 %v3360_v41, %v2481_v39  ;;  %v3154_v39 = vld [vmem:[%s4613_s16 + $0xa8] sm:$0xff] }
0x1c16   :  { %v3362_v18 = vpop.eup %3361  ;;  %2695 = vmatpush.msrb.mxu1 %v3155_v31 }
0x1c17   :  { %v2332_v52 = vmul.f32 %v3362_v18, %v2330_v46  ;;  %v2486_v24 = vsel %vm2485_vm13, %v3360_v41, %v2482_v2  ;;  %vm2337_vm5 = vweird.f32 %v3362_v18  ;;  %v3198_v41 = vld [vmem:[%s4610_s13 + $0x2] ss:$0 sm:$0xff]  ;;  %v3152_v2 = vld [vmem:[%s4613_s16 + $0x98] sm:$0xff] }
0x1c18   :  { %v2491_v53 = vsel %vm2488_vm15, %v2490_v63, %v2486_v24  ;;  %vm2338_vm9 = vmor %vm2336_vm8, %vm2337_vm5  ;;  %2696 = vmatpush.msrb.mxu1 %v3154_v39 }
0x1c19   :  { %v2333_v54 = vsub.f32 1.0, %v2332_v52  ;;  %v2492_v59 = vmul.f32 %v3356_v34, %v2491_v53 }
0x1c1a   :  { %2697 = vmatpush.msrb.mxu1 %v3153_v26 }
0x1c1b   :  { %v2334_v60 = vmul.f32 %v3362_v18, %v2333_v54  ;;  %v2493_v9 = vsel %vm112_vm7, 0.0, %v2492_v59  ;;  %v3151_v54 = vld [vmem:[%s4613_s16 + $0x90] sm:$0xff]  ;;  %v3150_v59 = vld [vmem:[%s4613_s16 + $0x88] sm:$0xff] }
0x1c1c   :  { %3132 = vmatmul.msk.f32.vlgmr.msra.gmra.mxu3 %vm242_vm3, %v2493_v9  ;;  %2698 = vmatpush.msrb.mxu1 %v3152_v2 }
0x1c1d   :  { %v2335_v62 = vadd.f32 %v3362_v18, %v2334_v60  ;;  %v3199_v60 = vld [vmem:[%s4612_s15 + $0x2] ss:$0 sm:$0xff] }
0x1c1e   :  { %2699 = vmatpush.msrb.mxu1 %v3151_v54  ;;  %v4448_v54 = vld [vmem:[%s4616_s19 + $0x2] ss:$0 sm:$0xff] }
0x1c1f   :  { %v2339_v51 = vsel %vm2338_vm9, %v3362_v18, %v2335_v62 }
0x1c20   :  { %v2344_v37 = vsel %vm2341_vm10, %v2343_v50, %v2339_v51  ;;  %2700 = vmatpush.msrb.mxu1 %v3150_v59  ;;  %vm3010_vm10 = vcmask 7168  }
0x1c21   :  { %v2345_v0 = vmul.f32 %v3358_v15, %v2344_v37 }
0x1c22   :  { %2701 = vmatpush.msrb.mxu1 %v3149_v3 }
0x1c23   :  { %v2346_v1 = vsel %vm112_vm7, 0.0, %v2345_v0 }
0x1c24   :  { %3127 = vmatmul.msk.f32.vlgmr.msra.gmra.mxu2 %vm242_vm3, %v2346_v1 }
0x1c2c   :  { %3138 = vmatmul.msk.f32.vlgmr.msrb.gmra.mxu2 %vm153_vm0, %v2223_v25 }
0x1c9f   :  { %v2518_v8 = vpop.f32.mrf.mxu3 }
0x1ca0   :  { %2522 = vrot.lane.b32.xlu1 %v2518_v8, %s3398_s7 }
0x1ca7   :  { %v2367_v38 = vpop.f32.mrf.mxu2 }
0x1caf   :  { %v2559_v5 = vpop.f32.mrf.mxu2 }
0x1cb0   :  { %v2560_v13 = vadd.f32 %v3196_v40, %v2559_v5 }
0x1cb2   :  { %v2565_v22 = vadd.f32 %v2560_v13, %v4101_v48  ;;  %v3145_v48 = vld [vmem:[%s4611_s14 + $0x58] sm:$0xff] }
0x1cb3   :  { %2653 = vmatpush.msrb.mxu0 %v3145_v48 }
0x1cb4   :  { %v2571_v14 = vsel %vm153_vm0, %v2565_v22, 0.0 }
0x1cb5   :  { %2572 = vadd.xlane.f32.xlu0 %v2571_v14  ;;  %2654 = vmatpush.msrb.mxu0 %v3144_v57  ;;  %v3200_v14 = vld [vmem:[%s4614_s17 + $0x2] ss:$0 sm:$0xff]  ;;  %s3400_s17 = smov 32  }
0x1cb7   :  { %2655 = vmatpush.msrb.mxu0 %v3143_v30 }
0x1cb9   :  { %2656 = vmatpush.msrb.mxu0 %v3142_v10 }
0x1d12   :  { %v2523_v19 = vpop.permute.xlu1 %2522 }
0x1d13   :  { %v2525_v43 = vsel %vm216_vm1, %v2367_v38, %v2523_v19 }
0x1d14   :  { %3139 = vmatmul.msk.f32.gmra.mxu2 %vm153_vm0, %v2525_v43 }
0x1d28   :  { %v2573_v20 = vpop.xlane.xlu0 %2572 }
0x1d29   :  { %v2577_v21 = vmul.f32 %v2573_v20, %v3852_v11 }
0x1d2b   :  { %v2579_v47 = vsub.f32 %v2565_v22, %v2577_v21 }
0x1d2d   :  { %v2581_v28 = vmul.f32 %v2579_v47, %v2579_v47 }
0x1d2f   :  { %v2583_v45 = vsel %vm153_vm0, %v2581_v28, 0.0 }
0x1d30   :  { %2584 = vadd.xlane.f32.xlu1 %v2583_v45 }
0x1d97   :  { %v2562_v42 = vpop.f32.mrf.mxu2 }
0x1d98   :  { %v2563_v23 = vadd.f32 %v3196_v40, %v2562_v42 }
0x1d9a   :  { %v2566_v33 = vadd.f32 %v2563_v23, %v4179_v36 }
0x1d9c   :  { %v2574_v7 = vsel %vm153_vm0, %v2566_v33, 0.0 }
0x1d9d   :  { %2575 = vadd.xlane.f32.xlu2 %v2574_v7 }
0x1da3   :  { %v2585_v36 = vpop.xlane.xlu1 %2584 }
0x1da4   :  { %v2589_v34 = vmul.f32 %v2585_v36, %v3852_v11 }
0x1da6   :  { %v2591_v35 = vadd.f32 1e-05, %v2589_v34 }
0x1da8   :  { %3363 = vrsqrt.f32 %v2591_v35  ;;  %vm2599_vm3 = vweird.f32 %v2591_v35 }
0x1dae   :  { %v3364_v55 = vpop.eup %3363 }
0x1daf   :  { %v2594_v15 = vmul.f32 %v3364_v55, %v2591_v35  ;;  %vm2600_vm1 = vweird.f32 %v3364_v55 }
0x1db0   :  { %vm2601_vm7 = vmor %vm2599_vm3, %vm2600_vm1 }
0x1db1   :  { %v2595_v4 = vmul.f32 %v3364_v55, %v2594_v15  ;;  %v2783_v15 = vld [vmem:[%s4617_s20 + $0x30] sm:$0xff] }
0x1db3   :  { %v2596_v32 = vmul.f32 0.5, %v2595_v4  ;;  %v2782_v4 = vld [vmem:[%s4617_s20 + $0x28] sm:$0xff] }
0x1db5   :  { %v2597_v27 = vsub.f32 1.5, %v2596_v32  ;;  %v2780_v32 = vld [vmem:[%s4617_s20 + $0x18] sm:$0xff] }
0x1db7   :  { %v2598_v29 = vmul.f32 %v3364_v55, %v2597_v27  ;;  %v2779_v27 = vld [vmem:[%s4617_s20 + $0x10] sm:$0xff] }
0x1db9   :  { %v2602_v12 = vsel %vm2601_vm7, %v3364_v55, %v2598_v29  ;;  %v2784_v55 = vld [vmem:[%s4617_s20 + $0x38] sm:$0xff]  ;;  %v2778_v29 = vld [vmem:[%s4617_s20 + $0x8] sm:$0xff] }
0x1dba   :  { %v2613_v58 = vmul.f32 %v2602_v12, %v2579_v47  ;;  %2803 = vmatpush.msrb.mxu3 %v2784_v55 }
0x1dbc   :  { %v2618_v44 = vmul.f32 %v3197_v49, %v2613_v58  ;;  %2804 = vmatpush.msrb.mxu3 %v2783_v15  ;;  %v2777_v58 = vld [vmem:[%s4617_s20] sm:$0xff]  ;;  %v2911_v15 = vld [vmem:[%s4621_s24 + $0xa8] sm:$0xff] }
0x1dbe   :  { %v2623_v46 = vadd.f32 %v3198_v41, %v2618_v44  ;;  %2805 = vmatpush.msrb.mxu3 %v2782_v4  ;;  %v2910_v4 = vld [vmem:[%s4621_s24 + $0xa0] sm:$0xff] }
0x1dc0   :  { %3147 = vmatmul.msk.f32.vlgmr.msrb.gmra.mxu0 %vm153_vm0, %v2623_v46 }
0x1e10   :  { %v2576_v18 = vpop.xlane.xlu2 %2575 }
0x1e11   :  { %v2578_v63 = vmul.f32 %v2576_v18, %v3852_v11 }
0x1e13   :  { %v2580_v52 = vsub.f32 %v2566_v33, %v2578_v63 }
0x1e15   :  { %v2582_v24 = vmul.f32 %v2580_v52, %v2580_v52 }
0x1e17   :  { %v2586_v53 = vsel %vm153_vm0, %v2582_v24, 0.0  ;;  %v4442_v24 = vld [vmem:[%s4615_s18 + $0x2] ss:$0 sm:$0xff] }
0x1e18   :  { %2587 = vadd.xlane.f32.xlu0 %v2586_v53 }
0x1e3d   :  { %v2658_v61 = vpop.f32.mrf.mxu0 }
0x1e3e   :  { %v2659_v9 = vadd.f32 %v3199_v60, %v2658_v61  ;;  %v2826_v61 = vld [vmem:[%s4619_s22 + $0x30] sm:$0xff] }
0x1e3f   :  { %2852 = vmatpush.msra.mxu2 %v2826_v61 }
0x1e40   :  { %v2664_v62 = vmax.f32 %v2659_v9, 0.0  ;;  %v2827_v9 = vld [vmem:[%s4619_s22 + $0x38] sm:$0xff] }
0x1e41   :  { %2875 = vmatpush.msra.mxu0 %v2827_v9 }
0x1e42   :  { %3158 = vmatmul.msk.f32.vlgmr.msrb.gmra.mxu1 %vm975_vm6, %v2664_v62  ;;  %v2824_v62 = vld [vmem:[%s4619_s22 + $0x20] sm:$0xff] }
0x1e43   :  { %2853 = vmatpush.msra.mxu2 %v2824_v62 }
0x1e8b   :  { %v2588_v50 = vpop.xlane.xlu0 %2587 }
0x1e8c   :  { %v2590_v51 = vmul.f32 %v2588_v50, %v3852_v11  ;;  %v2825_v50 = vld [vmem:[%s4619_s22 + $0x28] sm:$0xff] }
0x1e8d   :  { %2876 = vmatpush.msra.mxu0 %v2825_v50 }
0x1e8e   :  { %v2592_v37 = vadd.f32 1e-05, %v2590_v51  ;;  %v2822_v51 = vld [vmem:[%s4619_s22 + $0x10] sm:$0xff] }
0x1e8f   :  { %2854 = vmatpush.msra.mxu2 %v2822_v51 }
0x1e90   :  { %3365 = vrsqrt.f32 %v2592_v37  ;;  %vm2609_vm11 = vweird.f32 %v2592_v37 }
0x1e96   :  { %v3366_v0 = vpop.eup %3365 }
0x1e97   :  { %v2604_v1 = vmul.f32 %v3366_v0, %v2592_v37  ;;  %vm2610_vm4 = vweird.f32 %v3366_v0  ;;  %v2823_v37 = vld [vmem:[%s4619_s22 + $0x18] sm:$0xff] }
0x1e98   :  { %vm2611_vm2 = vmor %vm2609_vm11, %vm2610_vm4  ;;  %2877 = vmatpush.msra.mxu0 %v2823_v37 }
0x1e99   :  { %v2605_v17 = vmul.f32 %v3366_v0, %v2604_v1  ;;  %v2820_v1 = vld [vmem:[%s4619_s22] sm:$0xff] }
0x1e9a   :  { %2855 = vmatpush.msra.mxu2 %v2820_v1 }
0x1e9b   :  { %v2606_v25 = vmul.f32 0.5, %v2605_v17  ;;  %v2821_v17 = vld [vmem:[%s4619_s22 + $0x8] sm:$0xff] }
0x1e9c   :  { %2878 = vmatpush.msra.mxu0 %v2821_v17 }
0x1e9d   :  { %v2607_v8 = vsub.f32 1.5, %v2606_v25 }
0x1e9f   :  { %v2608_v38 = vmul.f32 %v3366_v0, %v2607_v8  ;;  %v2921_v8 = vld [vmem:[%s4621_s24 + $0xf8] sm:$0xff] }
0x1ea1   :  { %v2612_v40 = vsel %vm2611_vm2, %v3366_v0, %v2608_v38  ;;  %v2920_v38 = vld [vmem:[%s4621_s24 + $0xf0] sm:$0xff] }
0x1ea2   :  { %v2614_v5 = vmul.f32 %v2612_v40, %v2580_v52 }
0x1ea4   :  { %v2619_v13 = vmul.f32 %v3197_v49, %v2614_v5  ;;  %v2905_v5 = vld [vmem:[%s4621_s24 + $0x78] sm:$0xff] }
0x1ea5   :  { %2926 = vmatpush.msra.mxu1 %v2905_v5 }
0x1ea6   :  { %v2624_v22 = vadd.f32 %v3198_v41, %v2619_v13  ;;  %v2919_v13 = vld [vmem:[%s4621_s24 + $0xe8] sm:$0xff] }
0x1ea8   :  { %3148 = vmatmul.msk.f32.gmra.mxu0 %vm153_vm0, %v2624_v22 }
0x1ebf   :  { %v2703_v19 = vpop.f32.mrf.mxu1 }
0x1ec0   :  { %v2704_v43 = vadd.f32 %v3200_v14, %v2703_v19  ;;  %v2902_v19 = vld [vmem:[%s4621_s24 + $0x60] sm:$0xff] }
0x1ec2   :  { %v2709_v20 = vadd.f32 %v2704_v43, %v2623_v46  ;;  %v2917_v43 = vld [vmem:[%s4621_s24 + $0xd8] sm:$0xff] }
0x1ec4   :  { %v2715_v21 = vsel %vm153_vm0, %v2709_v20, 0.0 }
0x1ec5   :  { %2716 = vadd.xlane.f32.xlu2 %v2715_v21  ;;  %v2916_v21 = vld [vmem:[%s4621_s24 + $0xd0] sm:$0xff] }
0x1f25   :  { %v2661_v47 = vpop.f32.mrf.mxu0 }
0x1f26   :  { %v2662_v28 = vadd.f32 %v3199_v60, %v2661_v47 }
0x1f28   :  { %v2665_v45 = vmax.f32 %v2662_v28, 0.0  ;;  %v2900_v28 = vld [vmem:[%s4621_s24 + $0x50] sm:$0xff] }
0x1f2a   :  { %3159 = vmatmul.msk.f32.gmra.mxu1 %vm975_vm6, %v2665_v45 }
0x1f38   :  { %v2717_v42 = vpop.xlane.xlu2 %2716 }
0x1f39   :  { %v2721_v23 = vmul.f32 %v2717_v42, %v3852_v11  ;;  %v2915_v42 = vld [vmem:[%s4621_s24 + $0xc8] sm:$0xff] }
0x1f3b   :  { %v2723_v48 = vsub.f32 %v2709_v20, %v2721_v23  ;;  %v2901_v20 = vld [vmem:[%s4621_s24 + $0x58] sm:$0xff]  ;;  %v2899_v23 = vld [vmem:[%s4621_s24 + $0x48] sm:$0xff] }
0x1f3d   :  { %v2725_v33 = vmul.f32 %v2723_v48, %v2723_v48 }
0x1f3f   :  { %v2727_v57 = vsel %vm153_vm0, %v2725_v33, 0.0  ;;  %v2914_v33 = vld [vmem:[%s4621_s24 + $0xc0] sm:$0xff] }
0x1f40   :  { %2728 = vadd.xlane.f32.xlu1 %v2727_v57  ;;  %v2898_v57 = vld [vmem:[%s4621_s24 + $0x40] sm:$0xff] }
0x1f59   :  { %2771 = vrot.lane.b32.xlu1 %v3655_v6, %s3400_s17 }
0x1fa7   :  { %v2706_v7 = vpop.f32.mrf.mxu1 }
0x1fa8   :  { %v2707_v30 = vadd.f32 %v3200_v14, %v2706_v7  ;;  %v2918_v14 = vld [vmem:[%s4621_s24 + $0xe0] sm:$0xff] }
0x1faa   :  { %v2710_v10 = vadd.f32 %v2707_v30, %v2624_v22  ;;  %v2903_v22 = vld [vmem:[%s4621_s24 + $0x68] sm:$0xff]  ;;  %v2913_v30 = vld [vmem:[%s4621_s24 + $0xb8] sm:$0xff] }
0x1fac   :  { %v2718_v36 = vsel %vm153_vm0, %v2710_v10, 0.0 }
0x1fad   :  { %2719 = vadd.xlane.f32.xlu0 %v2718_v36 }
0x1fb3   :  { %v2729_v34 = vpop.xlane.xlu1 %2728 }
0x1fb4   :  { %v2733_v35 = vmul.f32 %v2729_v34, %v3852_v11  ;;  %v2912_v34 = vld [vmem:[%s4621_s24 + $0xb0] sm:$0xff] }
0x1fb6   :  { %v2735_v6 = vadd.f32 1e-05, %v2733_v35  ;;  %v2896_v35 = vld [vmem:[%s4621_s24 + $0x30] sm:$0xff] }
0x1fb8   :  { %3367 = vrsqrt.f32 %v2735_v6  ;;  %vm2743_vm12 = vweird.f32 %v2735_v6 }
0x1fbe   :  { %v3368_v49 = vpop.eup %3367 }
0x1fbf   :  { %v2738_v12 = vmul.f32 %v3368_v49, %v2735_v6  ;;  %vm2744_vm14 = vweird.f32 %v3368_v49 }
0x1fc0   :  { %vm2745_vm13 = vmor %vm2743_vm12, %vm2744_vm14 }
0x1fc1   :  { %2769 = vrot.lane.b32.xlu0 %v3569_v16, %s3400_s17  ;;  %v2781_v16 = vld [vmem:[%s4617_s20 + $0x20] sm:$0xff]  ;;  %v2739_v41 = vmul.f32 %v3368_v49, %v2738_v12  ;;  %s4668_s20 = sld [smem:[#allocation17_spill]] }
0x1fc2   :  { %2806 = vmatpush.msrb.mxu3 %v2781_v16 }
0x1fc3   :  { %v2740_v44 = vmul.f32 0.5, %v2739_v41 }
0x1fc4   :  { %2807 = vmatpush.msrb.mxu3 %v2780_v32  ;;  %v2909_v32 = vld [vmem:[%s4621_s24 + $0x98] sm:$0xff] }
0x1fc5   :  { %v2741_v46 = vsub.f32 1.5, %v2740_v44 }
0x1fc6   :  { %2808 = vmatpush.msrb.mxu3 %v2779_v27 }
0x1fc7   :  { %v2742_v39 = vmul.f32 %v3368_v49, %v2741_v46 }
0x1fc8   :  { %2809 = vmatpush.msrb.mxu3 %v2778_v29  ;;  %v3203_v29 = vld [vmem:[%s4618_s21] ss:$0 sm:$0xff] }
0x1fc9   :  { %v2746_v18 = vsel %vm2745_vm13, %v3368_v49, %v2742_v39  ;;  %v2894_v39 = vld [vmem:[%s4621_s24 + $0x20] sm:$0xff] }
0x1fca   :  { %2810 = vmatpush.msrb.mxu3 %v2777_v58  ;;  %v2757_v52 = vmul.f32 %v2746_v18, %v2723_v48  ;;  %v2906_v18 = vld [vmem:[%s4621_s24 + $0x80] sm:$0xff] }
0x1fcb   :  { %v2772_v12 = vpop.permute.xlu1 %2771 }
0x1fcc   :  { %v2762_v53 = vmul.f32 %v4442_v24, %v2757_v52  ;;  %2949 = vmatpush.msra.mxu3 %v2921_v8  ;;  %v2891_v52 = vld [vmem:[%s4621_s24 + $0x8] sm:$0xff] }
0x1fce   :  { %v2767_v59 = vadd.f32 %v4448_v54, %v2762_v53  ;;  %2950 = vmatpush.msra.mxu3 %v2920_v38  ;;  %v2828_v53 = vld [vmem:[%s4668_s20] sm:$0x3] }
0x1fcf   :  { %v2830_v62 = vperm.slane %v2828_v53, 0 }
0x1fd0   :  { %2951 = vmatpush.msra.mxu3 %v2919_v13 }
0x1fd2   :  { %2952 = vmatpush.msra.mxu3 %v2918_v14 }
0x1fd4   :  { %2953 = vmatpush.msra.mxu3 %v2917_v43 }
0x1fd6   :  { %2954 = vmatpush.msra.mxu3 %v2916_v21 }
0x1fd8   :  { %2955 = vmatpush.msra.mxu3 %v2915_v42 }
0x1fda   :  { %2956 = vmatpush.msra.mxu3 %v2914_v33 }
0x1fdc   :  { %2957 = vmatpush.msra.mxu3 %v2913_v30 }
0x1fde   :  { %2958 = vmatpush.msra.mxu3 %v2912_v34 }
0x1fe0   :  { %2959 = vmatpush.msra.mxu3 %v2911_v15 }
0x1fe2   :  { %2960 = vmatpush.msra.mxu3 %v2910_v4 }
0x1fe4   :  { %2961 = vmatpush.msra.mxu3 %v2909_v32 }
0x2020   :  { %v2720_v56 = vpop.xlane.xlu0 %2719 }
0x2021   :  { %v2722_v31 = vmul.f32 %v2720_v56, %v3852_v11  ;;  %v2895_v56 = vld [vmem:[%s4621_s24 + $0x28] sm:$0xff] }
0x2023   :  { %v4434_v26 = vsub.f32 %v2710_v10, %v2722_v31  ;;  %v2897_v10 = vld [vmem:[%s4621_s24 + $0x38] sm:$0xff]  ;;  %v2908_v31 = vld [vmem:[%s4621_s24 + $0x90] sm:$0xff] }
0x2024   :  { %2962 = vmatpush.msra.mxu3 %v2908_v31 }
0x2025   :  { %v2726_v2 = vmul.f32 %v4434_v26, %v4434_v26 }
0x2027   :  { %v2730_v63 = vsel %vm153_vm0, %v2726_v2, 0.0  ;;  %v2893_v2 = vld [vmem:[%s4621_s24 + $0x18] sm:$0xff] }
0x2028   :  { %2731 = vadd.xlane.f32.xlu2 %v2730_v63  ;;  %v2892_v63 = vld [vmem:[%s4621_s24 + $0x10] sm:$0xff] }
0x2033   :  { %v2770_v3 = vpop.permute.xlu0 %2769 }
0x2034   :  { %v2775_v60 = vsel %vm153_vm0, %v2767_v59, %v2770_v3 }
0x2035   :  { %3162 = vmatmul.msk.f32.vlgmr.msrb.gmra.mxu3 %vm975_vm6, %v2775_v60 }
0x209b   :  { %v2732_v0 = vpop.xlane.xlu2 %2731 }
0x209c   :  { %v2734_v25 = vmul.f32 %v2732_v0, %v3852_v11  ;;  %v2904_v11 = vld [vmem:[%s4621_s24 + $0x70] sm:$0xff] }
0x209d   :  { %2927 = vmatpush.msra.mxu1 %v2904_v11 }
0x209e   :  { %v2736_v40 = vadd.f32 1e-05, %v2734_v25  ;;  %v3204_v25 = vld [vmem:[#allocation2] ss:$0 sm:$0xff] }
0x209f   :  { %2928 = vmatpush.msra.mxu1 %v2903_v22 }
0x20a0   :  { %3369 = vrsqrt.f32 %v2736_v40  ;;  %vm2753_vm5 = vweird.f32 %v2736_v40 }
0x20a1   :  { %2929 = vmatpush.msra.mxu1 %v2902_v19 }
0x20a3   :  { %2930 = vmatpush.msra.mxu1 %v2901_v20 }
0x20a5   :  { %2931 = vmatpush.msra.mxu1 %v2900_v28 }
0x20a6   :  { %v3370_v47 = vpop.eup %3369 }
0x20a7   :  { %v2748_v45 = vmul.f32 %v3370_v47, %v2736_v40  ;;  %2932 = vmatpush.msra.mxu1 %v2899_v23  ;;  %vm2754_vm15 = vweird.f32 %v3370_v47 }
0x20a8   :  { %vm2755_vm8 = vmor %vm2753_vm5, %vm2754_vm15 }
0x20a9   :  { %v2749_v48 = vmul.f32 %v3370_v47, %v2748_v45  ;;  %2933 = vmatpush.msra.mxu1 %v2898_v57 }
0x20ab   :  { %v2750_v7 = vmul.f32 0.5, %v2749_v48  ;;  %2934 = vmatpush.msra.mxu1 %v2897_v10 }
0x20ad   :  { %v2751_v36 = vsub.f32 1.5, %v2750_v7  ;;  %2935 = vmatpush.msra.mxu1 %v2896_v35 }
0x20af   :  { %v2752_v55 = vmul.f32 %v3370_v47, %v2751_v36  ;;  %2936 = vmatpush.msra.mxu1 %v2895_v56 }
0x20b1   :  { %v2756_v6 = vsel %vm2755_vm8, %v3370_v47, %v2752_v55  ;;  %2937 = vmatpush.msra.mxu1 %v2894_v39 }
0x20b2   :  { %v2758_v16 = vmul.f32 %v2756_v6, %v4434_v26  ;;  %v2907_v26 = vld [vmem:[%s4621_s24 + $0x88] sm:$0xff] }
0x20b3   :  { %2963 = vmatpush.msra.mxu3 %v2907_v26  ;;  %2938 = vmatpush.msra.mxu1 %v2893_v2 }
0x20b4   :  { %v2763_v27 = vmul.f32 %v4442_v24, %v2758_v16  ;;  %v2890_v24 = vld [vmem:[%s4621_s24] sm:$0xff] }
0x20b5   :  { %2964 = vmatpush.msra.mxu3 %v2906_v18  ;;  %2939 = vmatpush.msra.mxu1 %v2892_v63 }
0x20b6   :  { %v2768_v49 = vadd.f32 %v4448_v54, %v2763_v27  ;;  %v2831_v54 = vperm.slane %v2828_v53, 1 }
0x20b7   :  { %2940 = vmatpush.msra.mxu1 %v2891_v52 }
0x20b8   :  { %v2812_v58 = vpop.f32.mrf.mxu3  ;;  %v2776_v41 = vsel %vm153_vm0, %v2768_v49, %v2772_v12 }
0x20b9   :  { %v2813_v44 = vadd.f32 %v3203_v29, %v2812_v58  ;;  %3163 = vmatmul.msk.f32.gmra.mxu3 %vm975_vm6, %v2776_v41  ;;  %2941 = vmatpush.msra.mxu1 %v2890_v24 }
0x20bb   :  { %v2818_v46 = vmax.f32 %v2813_v44, 0.0 }
0x20bd   :  { %3164 = vmatmul.msk.f32.vlgmr.msra.gmra.mxu2 %vm153_vm0, %v2818_v46  ;;  %3166 = vmatmul.msk.f32.vlgmr.msra.gmra.mxu0 %vm153_vm0, %v2818_v46 }
0x213a   :  { %v2880_v59 = vpop.f32.mrf.mxu0 }
0x213b   :  { %v2881_v3 = vadd.f32 %v2880_v59, %v2831_v54 }
0x213c   :  { %v2815_v60 = vpop.f32.mrf.mxu3 }
0x213d   :  { %v2887_v61 = vmax.f32 %v2881_v3, 0.0  ;;  %v2816_v9 = vadd.f32 %v3203_v29, %v2815_v60 }
0x213f   :  { %v2819_v50 = vmax.f32 %v2816_v9, 0.0  ;;  %2965 = vmatmul.f32.vlgmr.msra.gmra.mxu3 %v2887_v61 }
0x2140   :  { %v2857_v51 = vpop.f32.mrf.mxu2 }
0x2141   :  { %v2858_v37 = vadd.f32 %v2857_v51, %v2830_v62  ;;  %3165 = vmatmul.msk.f32.gmra.mxu2 %vm153_vm0, %v2819_v50  ;;  %3167 = vmatmul.msk.f32.gmra.mxu0 %vm153_vm0, %v2819_v50 }
0x2143   :  { %v2886_v0 = vmax.f32 %v2858_v37, 0.0 }
0x2145   :  { %2942 = vmatmul.f32.vlgmr.msra.gmra.mxu1 %v2886_v0 }
0x21be   :  { %v2883_v1 = vpop.f32.mrf.mxu0 }
0x21bf   :  { %v2884_v17 = vadd.f32 %v2883_v1, %v2831_v54 }
0x21c1   :  { %v2889_v8 = vmax.f32 %v2884_v17, 0.0 }
0x21c2   :  { %v2943_v38 = vpop.f32.mrf.mxu1  ;;  %v2966_v5 = vpop.f32.mrf.mxu3 }
0x21c3   :  { %v2944_v40 = vadd.f32 %v3204_v25, %v2943_v38  ;;  %2968 = vmatmul.f32.gmra.mxu3 %v2889_v8 }
0x21c4   :  { %v2860_v11 = vpop.f32.mrf.mxu2 }
0x21c5   :  { %v2967_v13 = vadd.f32 %v2966_v5, %v2944_v40  ;;  %v2861_v22 = vadd.f32 %v2860_v11, %v2830_v62 }
0x21c7   :  { %v3168_v14 = vmul.f32 -1.442695, %v2967_v13  ;;  %v2888_v19 = vmax.f32 %v2861_v22, 0.0 }
0x21c9   :  { %3371 = vpow2.f32 %v3168_v14  ;;  %2945 = vmatmul.f32.gmra.mxu1 %v2888_v19 }
0x21cf   :  { %v3372_v43 = vpop.eup %3371 }
0x21d0   :  { %v2978_v20 = vadd.f32 1.0, %v3372_v43 }
0x21d2   :  { %3373 = vrcp.f32 %v2978_v20  ;;  %v2991_v45 = vand.u32 2147483648, %v2978_v20  ;;  %v2989_v23 = vand.u32 2147483647, %v2978_v20  ;;  %vm2985_vm6 = vweird.f32 %v2978_v20 }
0x21d4   :  { %v2992_v33 = vor.u32 1.1754944e-38, %v2991_v45  ;;  %vm2990_vm1 = vcmp.eq.f32.partialorder %v2989_v23, 8.507059e+37 }
0x21d8   :  { %v3374_v21 = vpop.eup %3373 }
0x21d9   :  { %v2981_v47 = vmul.f32 %v3374_v21, %v2978_v20  ;;  %vm2986_vm0 = vweird.f32 %v3374_v21 }
0x21da   :  { %vm2987_vm9 = vmor %vm2985_vm6, %vm2986_vm0 }
0x21db   :  { %v2982_v28 = vsub.f32 1.0, %v2981_v47 }
0x21dd   :  { %v2983_v42 = vmul.f32 %v3374_v21, %v2982_v28 }
0x21df   :  { %v2984_v48 = vadd.f32 %v3374_v21, %v2983_v42 }
0x21e1   :  { %v2988_v57 = vsel %vm2987_vm9, %v3374_v21, %v2984_v48 }
0x21e2   :  { %v2993_v7 = vsel %vm2990_vm1, %v2992_v33, %v2988_v57 }
0x21e3   :  { %3011 = vst.msk [vmem:[%s4669_s10] sm:$0xff] %vm3010_vm10, %v2993_v7 }
0x2246   :  { %v2946_v30 = vpop.f32.mrf.mxu1  ;;  %v2969_v36 = vpop.f32.mrf.mxu3 }
0x2247   :  { %v2947_v10 = vadd.f32 %v3204_v25, %v2946_v30 }
0x2249   :  { %v2970_v34 = vadd.f32 %v2969_v36, %v2947_v10 }
0x224b   :  { %v3169_v35 = vmul.f32 -1.442695, %v2970_v34 }
0x224d   :  { %3375 = vpow2.f32 %v3169_v35 }
0x2253   :  { %v3376_v55 = vpop.eup %3375 }
0x2254   :  { %v2979_v15 = vadd.f32 1.0, %v3376_v55 }
0x2256   :  { %3377 = vrcp.f32 %v2979_v15  ;;  %v3006_v32 = vand.u32 2147483648, %v2979_v15  ;;  %v3004_v29 = vand.u32 2147483647, %v2979_v15  ;;  %vm3000_vm7 = vweird.f32 %v2979_v15 }
0x2258   :  { %v3007_v12 = vor.u32 1.1754944e-38, %v3006_v32  ;;  %vm3005_vm11 = vcmp.eq.f32.partialorder %v3004_v29, 8.507059e+37 }
0x225c   :  { %v3378_v6 = vpop.eup %3377 }
0x225d   :  { %v2996_v4 = vmul.f32 %v3378_v6, %v2979_v15  ;;  %vm3001_vm3 = vweird.f32 %v3378_v6 }
0x225e   :  { %vm3002_vm4 = vmor %vm3000_vm7, %vm3001_vm3 }
0x225f   :  { %v2997_v16 = vsub.f32 1.0, %v2996_v4 }
0x2261   :  { %v2998_v27 = vmul.f32 %v3378_v6, %v2997_v16 }
0x2263   :  { %v2999_v49 = vadd.f32 %v3378_v6, %v2998_v27 }
0x2265   :  { %v3003_v58 = vsel %vm3002_vm4, %v3378_v6, %v2999_v49 }
0x2266   :  { %v3008_v41 = vsel %vm3005_vm11, %v3007_v12, %v3003_v58 }
0x2267   :  { %3012 = vst.msk [vmem:[%s4669_s10 + $0x8] sm:$0xff] %vm3010_vm10, %v3008_v41 }
0x2268   :  { %3017 = vsyncpa [#allocation4], 1 }

</bundles_post_ra>
